<compile_context>
chip_gen: v7x
topology: tpu7x:2x2x1
jax: 0.10.0
libtpu: 0.0.40
codegen_flags: <defaults>
</compile_context>

<pallas_src>
import jax
import jax.numpy as jnp
from jax.experimental import pallas as pl
from jax.experimental.pallas import tpu as pltpu

# ---- module hyper-parameters (match the PyTorch ConvClassifier instance) ----
IN_SIZE = (4, 16, 16)      # (C, H, W)
OUT_CLASSES = 10
FILTERS = [8, 8, 16, 16]   # N = 4 conv layers
POOL_EVERY = 2             # P
HIDDEN_DIMS = [32]         # M = 1 hidden Linear layer

N_CONV = len(FILTERS)
N_LIN = len(HIDDEN_DIMS) + 1
N_POOLS = N_CONV // POOL_EVERY
FEAT_H = IN_SIZE[1] // (2 ** N_POOLS)
FEAT_W = IN_SIZE[2] // (2 ** N_POOLS)
FEAT_C = FILTERS[-1]
FLAT_DIM = FEAT_H * FEAT_W * FEAT_C
OUT_PAD = ((OUT_CLASSES + 127) // 128) * 128      # lane-dense logits (>=128)

# The PyTorch module computes the classifier in_dim with 2**pool_every; assert
# that this matches the actual post-conv feature-map size for this config.
assert int((IN_SIZE[1] / 2 ** POOL_EVERY) * (IN_SIZE[2] / 2 ** POOL_EVERY)
           * FILTERS[-1]) == FLAT_DIM, "classifier in_dim formula mismatch"
assert IN_SIZE[1] % (2 ** N_POOLS) == 0 and IN_SIZE[2] % (2 ** N_POOLS) == 0


def _stage_plan():
    """Group convs into pooling stages; H/W are constant within a stage."""
    stages, convs = [], []
    h, w = IN_SIZE[1], IN_SIZE[2]
    c_in = IN_SIZE[0]
    for i, f in enumerate(FILTERS):
        convs.append((c_in, f))
        c_in = f
        if (i + 1) % POOL_EVERY == 0:
            stages.append(dict(H=h, W=w, convs=tuple(convs), pool=True))
            h //= 2
            w //= 2
            convs = []
    if convs:
        stages.append(dict(H=h, W=w, convs=tuple(convs), pool=False))
    return tuple(stages)


STAGES = _stage_plan()
for _st in STAGES:
    # The (BT*H*W, C) <-> (BT, H, W, C) reshapes are layout no-ops only when
    # the spatial W sits on whole sublane tiles.
    assert _st["W"] % 8 == 0, "kernel relies on W being a sublane multiple"
    assert _st["H"] % 2 == 0 and _st["W"] % 2 == 0


# ----------------------------- fused forward kernel --------------------------
def _make_kernel(BT):
    n_stage = len(STAGES)

    def kernel(*refs):
        x_ref = refs[0]
        conv_refs = refs[1:1 + 2 * N_CONV]
        lin_refs = refs[1 + 2 * N_CONV:1 + 2 * N_CONV + 2 * N_LIN]
        o_ref = refs[1 + 2 * N_CONV + 2 * N_LIN]
        sc = refs[1 + 2 * N_CONV + 2 * N_LIN + 1:]
        pad_refs = sc[:n_stage]
        pool_ref = sc[n_stage]
        flat_src_ref = sc[n_stage + 1]
        flat_ref = sc[n_stage + 2]

        # Zero the SAME-padding scratches once per grid step (interiors are
        # fully rewritten before every read; only the halo ring must be zero,
        # and it is never written afterwards).
        for pr in pad_refs:
            pr[...] = jnp.zeros(pr.shape, pr.dtype)

        x = x_ref[...].astype(jnp.float32)                # (BT, H0, W0, C0)
        li = 0
        for s, st in enumerate(STAGES):
            H, W = st["H"], st["W"]
            pad_ref = pad_refs[s]
            for (cin, cout) in st["convs"]:
                w_ref, b_ref = conv_refs[2 * li], conv_refs[2 * li + 1]
                li += 1
                # In-kernel SAME padding: store the interior (halo is zero).
                pad_ref[:, 1:H + 1, 1:W + 1, :cin] = x
                # 3x3 conv as 9 shifted-window MXU matmuls with the batch
                # folded into M (M = BT*H*W), bf16 operands, f32 accumulation.
                m = BT * H * W
                acc = jnp.zeros((m, cout), jnp.float32)
                for kh in range(3):
                    for kw in range(3):
                        tap = pad_ref[:, kh:kh + H, kw:kw + W, :cin]
                        acc = acc + jnp.dot(
                            tap.reshape(m, cin).astype(jnp.bfloat16),
                            w_ref[kh, kw],
                            preferred_element_type=jnp.float32)
                # Bias + ReLU epilogue kept in f32 (v5e has no bf16 VALU).
                y = jnp.maximum(acc + b_ref[...], 0.0)
                x = y.reshape(BT, H, W, cout)
            if st["pool"]:
                C = st["convs"][-1][1]
                H2, W2 = H // 2, W // 2
                # 2x2 max-pool. Row pairs: leading-dim-only reshape (free).
                xr = x.reshape(BT * H2, 2, W, C)
                yh = jnp.maximum(xr[:, 0], xr[:, 1])       # (BT*H2, W, C)
                # Column pairs: even/odd sublane-strided reads via scratch.
                rows = BT * H2
                pool_ref[:rows, :W, :C] = yh
                ev = pool_ref[:rows, pl.ds(0, W2, stride=2), :C]
                od = pool_ref[:rows, pl.ds(1, W2, stride=2), :C]
                x = jnp.maximum(ev, od).reshape(BT, H2, W2, C)

        # Flatten (NHWC order) into a lane-dense (BT, FLAT_DIM) buffer.  The
        # first Linear weight's rows were permuted at pack time to match this
        # order, so it equals torch.flatten on NCHW features.
        flat_src_ref[...] = x                              # (BT, FH, FW, FC)
        for h in range(FEAT_H):
            for w in range(FEAT_W):
                off = (h * FEAT_W + w) * FEAT_C
                flat_ref[:, off:off + FEAT_C] = flat_src_ref[:, h, w, :]
        feats = flat_ref[...]                              # (BT, FLAT_DIM) f32

        for j in range(N_LIN):
            w_ref, b_ref = lin_refs[2 * j], lin_refs[2 * j + 1]
            feats = jnp.dot(feats.astype(jnp.bfloat16), w_ref[...],
                            preferred_element_type=jnp.float32) + b_ref[...]
            if j < N_LIN - 1:
                feats = jnp.maximum(feats, 0.0)

        # Lane-dense output store: classes zero-padded to OUT_PAD at pack time,
        # so this is a full-width (BT, 128) unmasked store.
        o_ref[:, 0, :] = feats

    return kernel


# ---------------------------------- wrapper -----------------------------------
def _choose_bt(batch):
    """Largest batch tile <= 8 that divides the batch while keeping >= 2 grid
    steps (so the 'parallel' axis can shard across v7x's two TensorCores).
    Sweep the cap upward for large batches; re-derive VMEM on v7x (64 MiB)."""
    for bt in (8, 4, 2, 1):
        if batch % bt == 0 and batch // bt >= 2:
            return bt
    return batch                       # batch too small to split (e.g. B == 1)


def conv_classifier_forward(x_nchw, packed):
    B = x_nchw.shape[0]
    C, H, W = IN_SIZE
    BT = _choose_bt(B)
    # Single tiny entry relayout NCHW -> NHWC so channels sit on the lane axis.
    x_nhwc = jnp.transpose(x_nchw, (0, 2, 3, 1)).astype(jnp.float32)

    def full_spec(shape):
        nd = len(shape)
        return pl.BlockSpec(shape, lambda b, nd=nd: (0,) * nd)

    in_specs = [pl.BlockSpec((BT, H, W, C), lambda b: (b, 0, 0, 0))]
    in_specs += [full_spec(tuple(p.shape)) for p in packed]

    # Scratch: one f32 SAME-pad buffer per pooling stage, a pool staging buffer,
    # and two small flatten buffers.  Total is a few MiB -> fits v5e/v6e/v7x.
    scratch = []
    pool_rows = pool_w = pool_c = 0
    for st in STAGES:
        max_cin = max(cin for (cin, _) in st["convs"])
        scratch.append(
            pltpu.VMEM((BT, st["H"] + 2, st["W"] + 2, max_cin), jnp.float32))
        if st["pool"]:
            pool_rows = max(pool_rows, BT * (st["H"] // 2))
            pool_w = max(pool_w, st["W"])
            pool_c = max(pool_c, st["convs"][-1][1])
    assert pool_rows > 0
    scratch.append(pltpu.VMEM((pool_rows, pool_w, pool_c), jnp.float32))
    scratch.append(pltpu.VMEM((BT, FEAT_H, FEAT_W, FEAT_C), jnp.float32))
    scratch.append(pltpu.VMEM((BT, FLAT_DIM), jnp.float32))

    out = pl.pallas_call(
        _make_kernel(BT),
        out_shape=jax.ShapeDtypeStruct((B, 1, OUT_PAD), jnp.float32),
        grid=(B // BT,),
        in_specs=in_specs,
        out_specs=pl.BlockSpec((BT, 1, OUT_PAD), lambda b: (b, 0, 0)),
        scratch_shapes=scratch,
        compiler_params=pltpu.CompilerParams(
            # batch tiles shard across v7x's 2 TensorCores; serial elsewhere
            dimension_semantics=("parallel",),
            # explicit budget, well under v7x's 64 MiB physical VMEM
            vmem_limit_bytes=32 * 1024 * 1024),
    )(x_nhwc, *packed)
    return out.reshape(B, OUT_PAD)[:, :OUT_CLASSES]


# --------------------- parameters (PyTorch layouts) + packing ------------------
def init_params(key):
    """Random params in PyTorch layouts: conv (Cout,Cin,3,3)/(Cout,), linear (out,in)/(out,)."""
    convs, linears = [], []
    c_in = IN_SIZE[0]
    for f in FILTERS:
        key, kw_, kb_ = jax.random.split(key, 3)
        fan_in = 3 * 3 * c_in
        w = jax.random.normal(kw_, (f, c_in, 3, 3), jnp.float32) / jnp.sqrt(fan_in)
        b = jax.random.normal(kb_, (f,), jnp.float32) * 0.01
        convs.append((w, b))
        c_in = f
    dims = [FLAT_DIM] + list(HIDDEN_DIMS) + [OUT_CLASSES]
    for d_in, d_out in zip(dims[:-1], dims[1:]):
        key, kw_, kb_ = jax.random.split(key, 3)
        w = jax.random.normal(kw_, (d_out, d_in), jnp.float32) / jnp.sqrt(d_in)
        b = jax.random.normal(kb_, (d_out,), jnp.float32) * 0.01
        linears.append((w, b))
    return {"convs": convs, "linears": linears}


def pack_params(params):
    """One-time host-side packing for the fused kernel:
       * conv weights -> (3,3,Cin,Cout) bf16, biases -> (1,Cout) f32
       * linear weights -> (in,out) bf16; the FIRST one has its rows permuted
         from NCHW-flatten order to NHWC-flatten order (folds the pre-flatten
         transpose into the weight); the LAST one is zero-padded to OUT_PAD
         columns (lane-dense output store); biases -> (1,out) f32.
    """
    packed = []
    for w, b in params["convs"]:
        packed.append(jnp.transpose(w, (2, 3, 1, 0)).astype(jnp.bfloat16))
        packed.append(b.reshape(1, -1).astype(jnp.float32))
    # NHWC flatten index j = (h*W + w)*C + c  <->  NCHW flatten index c*H*W + h*W + w
    perm = jnp.array([c * FEAT_H * FEAT_W + h * FEAT_W + w
                      for h in range(FEAT_H)
                      for w in range(FEAT_W)
                      for c in range(FEAT_C)], dtype=jnp.int32)
    n_lin = len(params["linears"])
    for j, (w, b) in enumerate(params["linears"]):
        wt = jnp.transpose(w)                        # (in, out)
        bb = b.reshape(1, -1)
        if j == 0:
            wt = wt[perm, :]
        if j == n_lin - 1:
            wt = jnp.pad(wt, ((0, 0), (0, OUT_PAD - wt.shape[1])))
            bb = jnp.pad(bb, ((0, 0), (0, OUT_PAD - bb.shape[1])))
        packed.append(wt.astype(jnp.bfloat16))
        packed.append(bb.astype(jnp.float32))
    return tuple(packed)


# -------------------------- pure-JAX (XLA) reference ---------------------------
def reference_forward(x_nchw, params):
    """f32 reference with exact PyTorch ConvClassifier semantics."""
    x = x_nchw
    for i, (w, b) in enumerate(params["convs"]):
        x = jax.lax.conv_general_dilated(
            x, w, window_strides=(1, 1), padding=((1, 1), (1, 1)),
            dimension_numbers=("NCHW", "OIHW", "NCHW"))
        x = jnp.maximum(x + b[None, :, None, None], 0.0)
        if (i + 1) % POOL_EVERY == 0:
            x = jax.lax.reduce_window(x, -jnp.inf, jax.lax.max,
                                      (1, 1, 2, 2), (1, 1, 2, 2), "VALID")
    feats = x.reshape(x.shape[0], -1)                # torch.flatten on NCHW
    for j, (w, b) in enumerate(params["linears"]):
        feats = feats @ w.T + b[None, :]
        if j < len(params["linears"]) - 1:
            feats = jnp.maximum(feats, 0.0)
    return feats


if __name__ == "__main__":
    key = jax.random.PRNGKey(0)
    key, kx = jax.random.split(key)
    x = jax.random.normal(kx, (2,) + IN_SIZE, jnp.float32)   # (B=2, C=4, H=16, W=16)
    params = init_params(key)
    packed = pack_params(params)

    fwd = jax.jit(conv_classifier_forward)
    scores = jax.block_until_ready(fwd(x, packed))

    assert scores.shape == (2, OUT_CLASSES), scores.shape
    assert bool(jnp.all(jnp.isfinite(scores)))

    # Numerical check vs f32 reference.  The kernel uses bf16 MXU operands with
    # f32 accumulation and f32 activations, so errors are ~1e-2; a structural /
    # permutation bug would produce O(1) errors and still be caught.
    ref = reference_forward(x, params)
    max_err = float(jnp.max(jnp.abs(scores - ref)))
    assert max_err < 0.2, f"max |err| vs reference = {max_err}"

    print("KERNEL_OK")
</pallas_src>

<mosaic_0001>
module attributes {stable_mosaic.version = 11 : i64} {
  func.func @kernel(%arg0: i32, %arg1: memref<1x16x16x4xf32, #tpu.memory_space<vmem>>, %arg2: memref<3x3x4x8xbf16, #tpu.memory_space<vmem>>, %arg3: memref<1x8xf32, #tpu.memory_space<vmem>>, %arg4: memref<3x3x8x8xbf16, #tpu.memory_space<vmem>>, %arg5: memref<1x8xf32, #tpu.memory_space<vmem>>, %arg6: memref<3x3x8x16xbf16, #tpu.memory_space<vmem>>, %arg7: memref<1x16xf32, #tpu.memory_space<vmem>>, %arg8: memref<3x3x16x16xbf16, #tpu.memory_space<vmem>>, %arg9: memref<1x16xf32, #tpu.memory_space<vmem>>, %arg10: memref<256x32xbf16, #tpu.memory_space<vmem>>, %arg11: memref<1x32xf32, #tpu.memory_space<vmem>>, %arg12: memref<32x128xbf16, #tpu.memory_space<vmem>>, %arg13: memref<1x128xf32, #tpu.memory_space<vmem>>, %arg14: memref<1x1x128xf32, #tpu.memory_space<vmem>>, %arg15: memref<1x18x18x8xf32, #tpu.memory_space<vmem>>, %arg16: memref<1x10x10x16xf32, #tpu.memory_space<vmem>>, %arg17: memref<8x16x16xf32, #tpu.memory_space<vmem>>, %arg18: memref<1x4x4x16xf32, #tpu.memory_space<vmem>>, %arg19: memref<1x256xf32, #tpu.memory_space<vmem>>) attributes {dimension_semantics = [#tpu.dimension_semantics<parallel>], iteration_bounds = array<i64: 2>, scalar_prefetch = 0 : i64, scratch_operands = 5 : i64, tpu.core_type = #tpu.core_type<tc>, window_params = [{transform_indices = @transform_0, window_bounds = array<i64: 1, 16, 16, 4>}, {pipeline_mode = #tpu.pipeline_mode<synchronous>, transform_indices = @transform_1, window_bounds = array<i64: 3, 3, 4, 8>}, {pipeline_mode = #tpu.pipeline_mode<synchronous>, transform_indices = @transform_2, window_bounds = array<i64: 1, 8>}, {pipeline_mode = #tpu.pipeline_mode<synchronous>, transform_indices = @transform_3, window_bounds = array<i64: 3, 3, 8, 8>}, {pipeline_mode = #tpu.pipeline_mode<synchronous>, transform_indices = @transform_4, window_bounds = array<i64: 1, 8>}, {pipeline_mode = #tpu.pipeline_mode<synchronous>, transform_indices = @transform_5, window_bounds = array<i64: 3, 3, 8, 16>}, {pipeline_mode = #tpu.pipeline_mode<synchronous>, transform_indices = @transform_6, window_bounds = array<i64: 1, 16>}, {pipeline_mode = #tpu.pipeline_mode<synchronous>, transform_indices = @transform_7, window_bounds = array<i64: 3, 3, 16, 16>}, {pipeline_mode = #tpu.pipeline_mode<synchronous>, transform_indices = @transform_8, window_bounds = array<i64: 1, 16>}, {pipeline_mode = #tpu.pipeline_mode<synchronous>, transform_indices = @transform_9, window_bounds = array<i64: 256, 32>}, {pipeline_mode = #tpu.pipeline_mode<synchronous>, transform_indices = @transform_10, window_bounds = array<i64: 1, 32>}, {pipeline_mode = #tpu.pipeline_mode<synchronous>, transform_indices = @transform_11, window_bounds = array<i64: 32, 128>}, {pipeline_mode = #tpu.pipeline_mode<synchronous>, transform_indices = @transform_12, window_bounds = array<i64: 1, 128>}, {transform_indices = @transform_13, window_bounds = array<i64: 1, 1, 128>}]} {
    %cst = arith.constant 0.000000e+00 : f32
    %0 = vector.broadcast %cst : f32 to vector<1x18x18x8xf32>
    %c0 = arith.constant 0 : index
    %c0_0 = arith.constant 0 : index
    %c0_1 = arith.constant 0 : index
    %c0_2 = arith.constant 0 : index
    %1 = vector.load %arg15[%c0, %c0_0, %c0_1, %c0_2] : memref<1x18x18x8xf32, #tpu.memory_space<vmem>>, vector<1x18x18x8xf32>
    tpu.vector_store %arg15[%c0, %c0_0, %c0_1, %c0_2], %0 {strides = array<i32>} : memref<1x18x18x8xf32, #tpu.memory_space<vmem>>, vector<1x18x18x8xf32>,
    %cst_3 = arith.constant 0.000000e+00 : f32
    %2 = vector.broadcast %cst_3 : f32 to vector<1x10x10x16xf32>
    %c0_4 = arith.constant 0 : index
    %c0_5 = arith.constant 0 : index
    %c0_6 = arith.constant 0 : index
    %c0_7 = arith.constant 0 : index
    %3 = vector.load %arg16[%c0_4, %c0_5, %c0_6, %c0_7] : memref<1x10x10x16xf32, #tpu.memory_space<vmem>>, vector<1x10x10x16xf32>
    tpu.vector_store %arg16[%c0_4, %c0_5, %c0_6, %c0_7], %2 {strides = array<i32>} : memref<1x10x10x16xf32, #tpu.memory_space<vmem>>, vector<1x10x10x16xf32>,
    %c0_8 = arith.constant 0 : index
    %c0_9 = arith.constant 0 : index
    %c0_10 = arith.constant 0 : index
    %c0_11 = arith.constant 0 : index
    %4 = vector.load %arg1[%c0_8, %c0_9, %c0_10, %c0_11] : memref<1x16x16x4xf32, #tpu.memory_space<vmem>>, vector<1x16x16x4xf32>
    %c0_12 = arith.constant 0 : index
    %c1 = arith.constant 1 : index
    %c1_13 = arith.constant 1 : index
    %c0_14 = arith.constant 0 : index
    %5 = vector.load %arg15[%c0_12, %c1, %c1_13, %c0_14] : memref<1x18x18x8xf32, #tpu.memory_space<vmem>>, vector<1x16x16x4xf32>
    tpu.vector_store %arg15[%c0_12, %c1, %c1_13, %c0_14], %4 {strides = array<i32>} : memref<1x18x18x8xf32, #tpu.memory_space<vmem>>, vector<1x16x16x4xf32>,
    %cst_15 = arith.constant 0.000000e+00 : f32
    %6 = vector.broadcast %cst_15 : f32 to vector<256x8xf32>
    %c0_16 = arith.constant 0 : index
    %c0_17 = arith.constant 0 : index
    %c0_18 = arith.constant 0 : index
    %c0_19 = arith.constant 0 : index
    %7 = vector.load %arg15[%c0_16, %c0_17, %c0_18, %c0_19] : memref<1x18x18x8xf32, #tpu.memory_space<vmem>>, vector<1x16x16x4xf32>
    %8 = vector.shape_cast %7 : vector<1x16x16x4xf32> to vector<256x4xf32>
    %9 = arith.truncf %8 : vector<256x4xf32> to vector<256x4xbf16>
    %c0_20 = arith.constant 0 : index
    %c0_21 = arith.constant 0 : index
    %c0_22 = arith.constant 0 : index
    %c0_23 = arith.constant 0 : index
    %10 = vector.load %arg2[%c0_20, %c0_21, %c0_22, %c0_23] : memref<3x3x4x8xbf16, #tpu.memory_space<vmem>>, vector<1x1x4x8xbf16>
    %11 = vector.shape_cast %10 : vector<1x1x4x8xbf16> to vector<4x8xbf16>
    %cst_24 = arith.constant dense<0.000000e+00> : vector<256x8xf32>
    %12 = tpu.matmul %9, %11, %cst_24 {dimension_numbers = #tpu.dot_dimension_numbers<[1], [0], [0], [1], [0, 0, 1, 1], [], []>} : vector<256x4xbf16>, vector<4x8xbf16>, vector<256x8xf32> -> vector<256x8xf32>
    %13 = arith.addf %6, %12 : vector<256x8xf32>
    %c0_25 = arith.constant 0 : index
    %c0_26 = arith.constant 0 : index
    %c1_27 = arith.constant 1 : index
    %c0_28 = arith.constant 0 : index
    %14 = vector.load %arg15[%c0_25, %c0_26, %c1_27, %c0_28] : memref<1x18x18x8xf32, #tpu.memory_space<vmem>>, vector<1x16x16x4xf32>
    %15 = vector.shape_cast %14 : vector<1x16x16x4xf32> to vector<256x4xf32>
    %16 = arith.truncf %15 : vector<256x4xf32> to vector<256x4xbf16>
    %c0_29 = arith.constant 0 : index
    %c1_30 = arith.constant 1 : index
    %c0_31 = arith.constant 0 : index
    %c0_32 = arith.constant 0 : index
    %17 = vector.load %arg2[%c0_29, %c1_30, %c0_31, %c0_32] : memref<3x3x4x8xbf16, #tpu.memory_space<vmem>>, vector<1x1x4x8xbf16>
    %18 = vector.shape_cast %17 : vector<1x1x4x8xbf16> to vector<4x8xbf16>
    %cst_33 = arith.constant dense<0.000000e+00> : vector<256x8xf32>
    %19 = tpu.matmul %16, %18, %cst_33 {dimension_numbers = #tpu.dot_dimension_numbers<[1], [0], [0], [1], [0, 0, 1, 1], [], []>} : vector<256x4xbf16>, vector<4x8xbf16>, vector<256x8xf32> -> vector<256x8xf32>
    %20 = arith.addf %13, %19 : vector<256x8xf32>
    %c0_34 = arith.constant 0 : index
    %c0_35 = arith.constant 0 : index
    %c2 = arith.constant 2 : index
    %c0_36 = arith.constant 0 : index
    %21 = vector.load %arg15[%c0_34, %c0_35, %c2, %c0_36] : memref<1x18x18x8xf32, #tpu.memory_space<vmem>>, vector<1x16x16x4xf32>
    %22 = vector.shape_cast %21 : vector<1x16x16x4xf32> to vector<256x4xf32>
    %23 = arith.truncf %22 : vector<256x4xf32> to vector<256x4xbf16>
    %c0_37 = arith.constant 0 : index
    %c2_38 = arith.constant 2 : index
    %c0_39 = arith.constant 0 : index
    %c0_40 = arith.constant 0 : index
    %24 = vector.load %arg2[%c0_37, %c2_38, %c0_39, %c0_40] : memref<3x3x4x8xbf16, #tpu.memory_space<vmem>>, vector<1x1x4x8xbf16>
    %25 = vector.shape_cast %24 : vector<1x1x4x8xbf16> to vector<4x8xbf16>
    %cst_41 = arith.constant dense<0.000000e+00> : vector<256x8xf32>
    %26 = tpu.matmul %23, %25, %cst_41 {dimension_numbers = #tpu.dot_dimension_numbers<[1], [0], [0], [1], [0, 0, 1, 1], [], []>} : vector<256x4xbf16>, vector<4x8xbf16>, vector<256x8xf32> -> vector<256x8xf32>
    %27 = arith.addf %20, %26 : vector<256x8xf32>
    %c0_42 = arith.constant 0 : index
    %c1_43 = arith.constant 1 : index
    %c0_44 = arith.constant 0 : index
    %c0_45 = arith.constant 0 : index
    %28 = vector.load %arg15[%c0_42, %c1_43, %c0_44, %c0_45] : memref<1x18x18x8xf32, #tpu.memory_space<vmem>>, vector<1x16x16x4xf32>
    %29 = vector.shape_cast %28 : vector<1x16x16x4xf32> to vector<256x4xf32>
    %30 = arith.truncf %29 : vector<256x4xf32> to vector<256x4xbf16>
    %c1_46 = arith.constant 1 : index
    %c0_47 = arith.constant 0 : index
    %c0_48 = arith.constant 0 : index
    %c0_49 = arith.constant 0 : index
    %31 = vector.load %arg2[%c1_46, %c0_47, %c0_48, %c0_49] : memref<3x3x4x8xbf16, #tpu.memory_space<vmem>>, vector<1x1x4x8xbf16>
    %32 = vector.shape_cast %31 : vector<1x1x4x8xbf16> to vector<4x8xbf16>
    %cst_50 = arith.constant dense<0.000000e+00> : vector<256x8xf32>
    %33 = tpu.matmul %30, %32, %cst_50 {dimension_numbers = #tpu.dot_dimension_numbers<[1], [0], [0], [1], [0, 0, 1, 1], [], []>} : vector<256x4xbf16>, vector<4x8xbf16>, vector<256x8xf32> -> vector<256x8xf32>
    %34 = arith.addf %27, %33 : vector<256x8xf32>
    %c0_51 = arith.constant 0 : index
    %c1_52 = arith.constant 1 : index
    %c1_53 = arith.constant 1 : index
    %c0_54 = arith.constant 0 : index
    %35 = vector.load %arg15[%c0_51, %c1_52, %c1_53, %c0_54] : memref<1x18x18x8xf32, #tpu.memory_space<vmem>>, vector<1x16x16x4xf32>
    %36 = vector.shape_cast %35 : vector<1x16x16x4xf32> to vector<256x4xf32>
    %37 = arith.truncf %36 : vector<256x4xf32> to vector<256x4xbf16>
    %c1_55 = arith.constant 1 : index
    %c1_56 = arith.constant 1 : index
    %c0_57 = arith.constant 0 : index
    %c0_58 = arith.constant 0 : index
    %38 = vector.load %arg2[%c1_55, %c1_56, %c0_57, %c0_58] : memref<3x3x4x8xbf16, #tpu.memory_space<vmem>>, vector<1x1x4x8xbf16>
    %39 = vector.shape_cast %38 : vector<1x1x4x8xbf16> to vector<4x8xbf16>
    %cst_59 = arith.constant dense<0.000000e+00> : vector<256x8xf32>
    %40 = tpu.matmul %37, %39, %cst_59 {dimension_numbers = #tpu.dot_dimension_numbers<[1], [0], [0], [1], [0, 0, 1, 1], [], []>} : vector<256x4xbf16>, vector<4x8xbf16>, vector<256x8xf32> -> vector<256x8xf32>
    %41 = arith.addf %34, %40 : vector<256x8xf32>
    %c0_60 = arith.constant 0 : index
    %c1_61 = arith.constant 1 : index
    %c2_62 = arith.constant 2 : index
    %c0_63 = arith.constant 0 : index
    %42 = vector.load %arg15[%c0_60, %c1_61, %c2_62, %c0_63] : memref<1x18x18x8xf32, #tpu.memory_space<vmem>>, vector<1x16x16x4xf32>
    %43 = vector.shape_cast %42 : vector<1x16x16x4xf32> to vector<256x4xf32>
    %44 = arith.truncf %43 : vector<256x4xf32> to vector<256x4xbf16>
    %c1_64 = arith.constant 1 : index
    %c2_65 = arith.constant 2 : index
    %c0_66 = arith.constant 0 : index
    %c0_67 = arith.constant 0 : index
    %45 = vector.load %arg2[%c1_64, %c2_65, %c0_66, %c0_67] : memref<3x3x4x8xbf16, #tpu.memory_space<vmem>>, vector<1x1x4x8xbf16>
    %46 = vector.shape_cast %45 : vector<1x1x4x8xbf16> to vector<4x8xbf16>
    %cst_68 = arith.constant dense<0.000000e+00> : vector<256x8xf32>
    %47 = tpu.matmul %44, %46, %cst_68 {dimension_numbers = #tpu.dot_dimension_numbers<[1], [0], [0], [1], [0, 0, 1, 1], [], []>} : vector<256x4xbf16>, vector<4x8xbf16>, vector<256x8xf32> -> vector<256x8xf32>
    %48 = arith.addf %41, %47 : vector<256x8xf32>
    %c0_69 = arith.constant 0 : index
    %c2_70 = arith.constant 2 : index
    %c0_71 = arith.constant 0 : index
    %c0_72 = arith.constant 0 : index
    %49 = vector.load %arg15[%c0_69, %c2_70, %c0_71, %c0_72] : memref<1x18x18x8xf32, #tpu.memory_space<vmem>>, vector<1x16x16x4xf32>
    %50 = vector.shape_cast %49 : vector<1x16x16x4xf32> to vector<256x4xf32>
    %51 = arith.truncf %50 : vector<256x4xf32> to vector<256x4xbf16>
    %c2_73 = arith.constant 2 : index
    %c0_74 = arith.constant 0 : index
    %c0_75 = arith.constant 0 : index
    %c0_76 = arith.constant 0 : index
    %52 = vector.load %arg2[%c2_73, %c0_74, %c0_75, %c0_76] : memref<3x3x4x8xbf16, #tpu.memory_space<vmem>>, vector<1x1x4x8xbf16>
    %53 = vector.shape_cast %52 : vector<1x1x4x8xbf16> to vector<4x8xbf16>
    %cst_77 = arith.constant dense<0.000000e+00> : vector<256x8xf32>
    %54 = tpu.matmul %51, %53, %cst_77 {dimension_numbers = #tpu.dot_dimension_numbers<[1], [0], [0], [1], [0, 0, 1, 1], [], []>} : vector<256x4xbf16>, vector<4x8xbf16>, vector<256x8xf32> -> vector<256x8xf32>
    %55 = arith.addf %48, %54 : vector<256x8xf32>
    %c0_78 = arith.constant 0 : index
    %c2_79 = arith.constant 2 : index
    %c1_80 = arith.constant 1 : index
    %c0_81 = arith.constant 0 : index
    %56 = vector.load %arg15[%c0_78, %c2_79, %c1_80, %c0_81] : memref<1x18x18x8xf32, #tpu.memory_space<vmem>>, vector<1x16x16x4xf32>
    %57 = vector.shape_cast %56 : vector<1x16x16x4xf32> to vector<256x4xf32>
    %58 = arith.truncf %57 : vector<256x4xf32> to vector<256x4xbf16>
    %c2_82 = arith.constant 2 : index
    %c1_83 = arith.constant 1 : index
    %c0_84 = arith.constant 0 : index
    %c0_85 = arith.constant 0 : index
    %59 = vector.load %arg2[%c2_82, %c1_83, %c0_84, %c0_85] : memref<3x3x4x8xbf16, #tpu.memory_space<vmem>>, vector<1x1x4x8xbf16>
    %60 = vector.shape_cast %59 : vector<1x1x4x8xbf16> to vector<4x8xbf16>
    %cst_86 = arith.constant dense<0.000000e+00> : vector<256x8xf32>
    %61 = tpu.matmul %58, %60, %cst_86 {dimension_numbers = #tpu.dot_dimension_numbers<[1], [0], [0], [1], [0, 0, 1, 1], [], []>} : vector<256x4xbf16>, vector<4x8xbf16>, vector<256x8xf32> -> vector<256x8xf32>
    %62 = arith.addf %55, %61 : vector<256x8xf32>
    %c0_87 = arith.constant 0 : index
    %c2_88 = arith.constant 2 : index
    %c2_89 = arith.constant 2 : index
    %c0_90 = arith.constant 0 : index
    %63 = vector.load %arg15[%c0_87, %c2_88, %c2_89, %c0_90] : memref<1x18x18x8xf32, #tpu.memory_space<vmem>>, vector<1x16x16x4xf32>
    %64 = vector.shape_cast %63 : vector<1x16x16x4xf32> to vector<256x4xf32>
    %65 = arith.truncf %64 : vector<256x4xf32> to vector<256x4xbf16>
    %c2_91 = arith.constant 2 : index
    %c2_92 = arith.constant 2 : index
    %c0_93 = arith.constant 0 : index
    %c0_94 = arith.constant 0 : index
    %66 = vector.load %arg2[%c2_91, %c2_92, %c0_93, %c0_94] : memref<3x3x4x8xbf16, #tpu.memory_space<vmem>>, vector<1x1x4x8xbf16>
    %67 = vector.shape_cast %66 : vector<1x1x4x8xbf16> to vector<4x8xbf16>
    %cst_95 = arith.constant dense<0.000000e+00> : vector<256x8xf32>
    %68 = tpu.matmul %65, %67, %cst_95 {dimension_numbers = #tpu.dot_dimension_numbers<[1], [0], [0], [1], [0, 0, 1, 1], [], []>} : vector<256x4xbf16>, vector<4x8xbf16>, vector<256x8xf32> -> vector<256x8xf32>
    %69 = arith.addf %62, %68 : vector<256x8xf32>
    %c0_96 = arith.constant 0 : index
    %c0_97 = arith.constant 0 : index
    %70 = vector.load %arg3[%c0_96, %c0_97] : memref<1x8xf32, #tpu.memory_space<vmem>>, vector<1x8xf32>
    %71 = vector.broadcast %70 : vector<1x8xf32> to vector<256x8xf32>
    %72 = arith.addf %69, %71 : vector<256x8xf32>
    %cst_98 = arith.constant 0.000000e+00 : f32
    %73 = vector.broadcast %cst_98 : f32 to vector<256x8xf32>
    %74 = arith.maximumf %72, %73 : vector<256x8xf32>
    %75 = vector.shape_cast %74 : vector<256x8xf32> to vector<1x16x16x8xf32>
    %c0_99 = arith.constant 0 : index
    %c1_100 = arith.constant 1 : index
    %c1_101 = arith.constant 1 : index
    %c0_102 = arith.constant 0 : index
    %76 = vector.load %arg15[%c0_99, %c1_100, %c1_101, %c0_102] : memref<1x18x18x8xf32, #tpu.memory_space<vmem>>, vector<1x16x16x8xf32>
    tpu.vector_store %arg15[%c0_99, %c1_100, %c1_101, %c0_102], %75 {strides = array<i32>} : memref<1x18x18x8xf32, #tpu.memory_space<vmem>>, vector<1x16x16x8xf32>,
    %cst_103 = arith.constant 0.000000e+00 : f32
    %77 = vector.broadcast %cst_103 : f32 to vector<256x8xf32>
    %c0_104 = arith.constant 0 : index
    %c0_105 = arith.constant 0 : index
    %c0_106 = arith.constant 0 : index
    %c0_107 = arith.constant 0 : index
    %78 = vector.load %arg15[%c0_104, %c0_105, %c0_106, %c0_107] : memref<1x18x18x8xf32, #tpu.memory_space<vmem>>, vector<1x16x16x8xf32>
    %79 = vector.shape_cast %78 : vector<1x16x16x8xf32> to vector<256x8xf32>
    %80 = arith.truncf %79 : vector<256x8xf32> to vector<256x8xbf16>
    %c0_108 = arith.constant 0 : index
    %c0_109 = arith.constant 0 : index
    %c0_110 = arith.constant 0 : index
    %c0_111 = arith.constant 0 : index
    %81 = vector.load %arg4[%c0_108, %c0_109, %c0_110, %c0_111] : memref<3x3x8x8xbf16, #tpu.memory_space<vmem>>, vector<1x1x8x8xbf16>
    %82 = vector.shape_cast %81 : vector<1x1x8x8xbf16> to vector<8x8xbf16>
    %cst_112 = arith.constant dense<0.000000e+00> : vector<256x8xf32>
    %83 = tpu.matmul %80, %82, %cst_112 {dimension_numbers = #tpu.dot_dimension_numbers<[1], [0], [0], [1], [0, 0, 1, 1], [], []>} : vector<256x8xbf16>, vector<8x8xbf16>, vector<256x8xf32> -> vector<256x8xf32>
    %84 = arith.addf %77, %83 : vector<256x8xf32>
    %c0_113 = arith.constant 0 : index
    %c0_114 = arith.constant 0 : index
    %c1_115 = arith.constant 1 : index
    %c0_116 = arith.constant 0 : index
    %85 = vector.load %arg15[%c0_113, %c0_114, %c1_115, %c0_116] : memref<1x18x18x8xf32, #tpu.memory_space<vmem>>, vector<1x16x16x8xf32>
    %86 = vector.shape_cast %85 : vector<1x16x16x8xf32> to vector<256x8xf32>
    %87 = arith.truncf %86 : vector<256x8xf32> to vector<256x8xbf16>
    %c0_117 = arith.constant 0 : index
    %c1_118 = arith.constant 1 : index
    %c0_119 = arith.constant 0 : index
    %c0_120 = arith.constant 0 : index
    %88 = vector.load %arg4[%c0_117, %c1_118, %c0_119, %c0_120] : memref<3x3x8x8xbf16, #tpu.memory_space<vmem>>, vector<1x1x8x8xbf16>
    %89 = vector.shape_cast %88 : vector<1x1x8x8xbf16> to vector<8x8xbf16>
    %cst_121 = arith.constant dense<0.000000e+00> : vector<256x8xf32>
    %90 = tpu.matmul %87, %89, %cst_121 {dimension_numbers = #tpu.dot_dimension_numbers<[1], [0], [0], [1], [0, 0, 1, 1], [], []>} : vector<256x8xbf16>, vector<8x8xbf16>, vector<256x8xf32> -> vector<256x8xf32>
    %91 = arith.addf %84, %90 : vector<256x8xf32>
    %c0_122 = arith.constant 0 : index
    %c0_123 = arith.constant 0 : index
    %c2_124 = arith.constant 2 : index
    %c0_125 = arith.constant 0 : index
    %92 = vector.load %arg15[%c0_122, %c0_123, %c2_124, %c0_125] : memref<1x18x18x8xf32, #tpu.memory_space<vmem>>, vector<1x16x16x8xf32>
    %93 = vector.shape_cast %92 : vector<1x16x16x8xf32> to vector<256x8xf32>
    %94 = arith.truncf %93 : vector<256x8xf32> to vector<256x8xbf16>
    %c0_126 = arith.constant 0 : index
    %c2_127 = arith.constant 2 : index
    %c0_128 = arith.constant 0 : index
    %c0_129 = arith.constant 0 : index
    %95 = vector.load %arg4[%c0_126, %c2_127, %c0_128, %c0_129] : memref<3x3x8x8xbf16, #tpu.memory_space<vmem>>, vector<1x1x8x8xbf16>
    %96 = vector.shape_cast %95 : vector<1x1x8x8xbf16> to vector<8x8xbf16>
    %cst_130 = arith.constant dense<0.000000e+00> : vector<256x8xf32>
    %97 = tpu.matmul %94, %96, %cst_130 {dimension_numbers = #tpu.dot_dimension_numbers<[1], [0], [0], [1], [0, 0, 1, 1], [], []>} : vector<256x8xbf16>, vector<8x8xbf16>, vector<256x8xf32> -> vector<256x8xf32>
    %98 = arith.addf %91, %97 : vector<256x8xf32>
    %c0_131 = arith.constant 0 : index
    %c1_132 = arith.constant 1 : index
    %c0_133 = arith.constant 0 : index
    %c0_134 = arith.constant 0 : index
    %99 = vector.load %arg15[%c0_131, %c1_132, %c0_133, %c0_134] : memref<1x18x18x8xf32, #tpu.memory_space<vmem>>, vector<1x16x16x8xf32>
    %100 = vector.shape_cast %99 : vector<1x16x16x8xf32> to vector<256x8xf32>
    %101 = arith.truncf %100 : vector<256x8xf32> to vector<256x8xbf16>
    %c1_135 = arith.constant 1 : index
    %c0_136 = arith.constant 0 : index
    %c0_137 = arith.constant 0 : index
    %c0_138 = arith.constant 0 : index
    %102 = vector.load %arg4[%c1_135, %c0_136, %c0_137, %c0_138] : memref<3x3x8x8xbf16, #tpu.memory_space<vmem>>, vector<1x1x8x8xbf16>
    %103 = vector.shape_cast %102 : vector<1x1x8x8xbf16> to vector<8x8xbf16>
    %cst_139 = arith.constant dense<0.000000e+00> : vector<256x8xf32>
    %104 = tpu.matmul %101, %103, %cst_139 {dimension_numbers = #tpu.dot_dimension_numbers<[1], [0], [0], [1], [0, 0, 1, 1], [], []>} : vector<256x8xbf16>, vector<8x8xbf16>, vector<256x8xf32> -> vector<256x8xf32>
    %105 = arith.addf %98, %104 : vector<256x8xf32>
    %c0_140 = arith.constant 0 : index
    %c1_141 = arith.constant 1 : index
    %c1_142 = arith.constant 1 : index
    %c0_143 = arith.constant 0 : index
    %106 = vector.load %arg15[%c0_140, %c1_141, %c1_142, %c0_143] : memref<1x18x18x8xf32, #tpu.memory_space<vmem>>, vector<1x16x16x8xf32>
    %107 = vector.shape_cast %106 : vector<1x16x16x8xf32> to vector<256x8xf32>
    %108 = arith.truncf %107 : vector<256x8xf32> to vector<256x8xbf16>
    %c1_144 = arith.constant 1 : index
    %c1_145 = arith.constant 1 : index
    %c0_146 = arith.constant 0 : index
    %c0_147 = arith.constant 0 : index
    %109 = vector.load %arg4[%c1_144, %c1_145, %c0_146, %c0_147] : memref<3x3x8x8xbf16, #tpu.memory_space<vmem>>, vector<1x1x8x8xbf16>
    %110 = vector.shape_cast %109 : vector<1x1x8x8xbf16> to vector<8x8xbf16>
    %cst_148 = arith.constant dense<0.000000e+00> : vector<256x8xf32>
    %111 = tpu.matmul %108, %110, %cst_148 {dimension_numbers = #tpu.dot_dimension_numbers<[1], [0], [0], [1], [0, 0, 1, 1], [], []>} : vector<256x8xbf16>, vector<8x8xbf16>, vector<256x8xf32> -> vector<256x8xf32>
    %112 = arith.addf %105, %111 : vector<256x8xf32>
    %c0_149 = arith.constant 0 : index
    %c1_150 = arith.constant 1 : index
    %c2_151 = arith.constant 2 : index
    %c0_152 = arith.constant 0 : index
    %113 = vector.load %arg15[%c0_149, %c1_150, %c2_151, %c0_152] : memref<1x18x18x8xf32, #tpu.memory_space<vmem>>, vector<1x16x16x8xf32>
    %114 = vector.shape_cast %113 : vector<1x16x16x8xf32> to vector<256x8xf32>
    %115 = arith.truncf %114 : vector<256x8xf32> to vector<256x8xbf16>
    %c1_153 = arith.constant 1 : index
    %c2_154 = arith.constant 2 : index
    %c0_155 = arith.constant 0 : index
    %c0_156 = arith.constant 0 : index
    %116 = vector.load %arg4[%c1_153, %c2_154, %c0_155, %c0_156] : memref<3x3x8x8xbf16, #tpu.memory_space<vmem>>, vector<1x1x8x8xbf16>
    %117 = vector.shape_cast %116 : vector<1x1x8x8xbf16> to vector<8x8xbf16>
    %cst_157 = arith.constant dense<0.000000e+00> : vector<256x8xf32>
    %118 = tpu.matmul %115, %117, %cst_157 {dimension_numbers = #tpu.dot_dimension_numbers<[1], [0], [0], [1], [0, 0, 1, 1], [], []>} : vector<256x8xbf16>, vector<8x8xbf16>, vector<256x8xf32> -> vector<256x8xf32>
    %119 = arith.addf %112, %118 : vector<256x8xf32>
    %c0_158 = arith.constant 0 : index
    %c2_159 = arith.constant 2 : index
    %c0_160 = arith.constant 0 : index
    %c0_161 = arith.constant 0 : index
    %120 = vector.load %arg15[%c0_158, %c2_159, %c0_160, %c0_161] : memref<1x18x18x8xf32, #tpu.memory_space<vmem>>, vector<1x16x16x8xf32>
    %121 = vector.shape_cast %120 : vector<1x16x16x8xf32> to vector<256x8xf32>
    %122 = arith.truncf %121 : vector<256x8xf32> to vector<256x8xbf16>
    %c2_162 = arith.constant 2 : index
    %c0_163 = arith.constant 0 : index
    %c0_164 = arith.constant 0 : index
    %c0_165 = arith.constant 0 : index
    %123 = vector.load %arg4[%c2_162, %c0_163, %c0_164, %c0_165] : memref<3x3x8x8xbf16, #tpu.memory_space<vmem>>, vector<1x1x8x8xbf16>
    %124 = vector.shape_cast %123 : vector<1x1x8x8xbf16> to vector<8x8xbf16>
    %cst_166 = arith.constant dense<0.000000e+00> : vector<256x8xf32>
    %125 = tpu.matmul %122, %124, %cst_166 {dimension_numbers = #tpu.dot_dimension_numbers<[1], [0], [0], [1], [0, 0, 1, 1], [], []>} : vector<256x8xbf16>, vector<8x8xbf16>, vector<256x8xf32> -> vector<256x8xf32>
    %126 = arith.addf %119, %125 : vector<256x8xf32>
    %c0_167 = arith.constant 0 : index
    %c2_168 = arith.constant 2 : index
    %c1_169 = arith.constant 1 : index
    %c0_170 = arith.constant 0 : index
    %127 = vector.load %arg15[%c0_167, %c2_168, %c1_169, %c0_170] : memref<1x18x18x8xf32, #tpu.memory_space<vmem>>, vector<1x16x16x8xf32>
    %128 = vector.shape_cast %127 : vector<1x16x16x8xf32> to vector<256x8xf32>
    %129 = arith.truncf %128 : vector<256x8xf32> to vector<256x8xbf16>
    %c2_171 = arith.constant 2 : index
    %c1_172 = arith.constant 1 : index
    %c0_173 = arith.constant 0 : index
    %c0_174 = arith.constant 0 : index
    %130 = vector.load %arg4[%c2_171, %c1_172, %c0_173, %c0_174] : memref<3x3x8x8xbf16, #tpu.memory_space<vmem>>, vector<1x1x8x8xbf16>
    %131 = vector.shape_cast %130 : vector<1x1x8x8xbf16> to vector<8x8xbf16>
    %cst_175 = arith.constant dense<0.000000e+00> : vector<256x8xf32>
    %132 = tpu.matmul %129, %131, %cst_175 {dimension_numbers = #tpu.dot_dimension_numbers<[1], [0], [0], [1], [0, 0, 1, 1], [], []>} : vector<256x8xbf16>, vector<8x8xbf16>, vector<256x8xf32> -> vector<256x8xf32>
    %133 = arith.addf %126, %132 : vector<256x8xf32>
    %c0_176 = arith.constant 0 : index
    %c2_177 = arith.constant 2 : index
    %c2_178 = arith.constant 2 : index
    %c0_179 = arith.constant 0 : index
    %134 = vector.load %arg15[%c0_176, %c2_177, %c2_178, %c0_179] : memref<1x18x18x8xf32, #tpu.memory_space<vmem>>, vector<1x16x16x8xf32>
    %135 = vector.shape_cast %134 : vector<1x16x16x8xf32> to vector<256x8xf32>
    %136 = arith.truncf %135 : vector<256x8xf32> to vector<256x8xbf16>
    %c2_180 = arith.constant 2 : index
    %c2_181 = arith.constant 2 : index
    %c0_182 = arith.constant 0 : index
    %c0_183 = arith.constant 0 : index
    %137 = vector.load %arg4[%c2_180, %c2_181, %c0_182, %c0_183] : memref<3x3x8x8xbf16, #tpu.memory_space<vmem>>, vector<1x1x8x8xbf16>
    %138 = vector.shape_cast %137 : vector<1x1x8x8xbf16> to vector<8x8xbf16>
    %cst_184 = arith.constant dense<0.000000e+00> : vector<256x8xf32>
    %139 = tpu.matmul %136, %138, %cst_184 {dimension_numbers = #tpu.dot_dimension_numbers<[1], [0], [0], [1], [0, 0, 1, 1], [], []>} : vector<256x8xbf16>, vector<8x8xbf16>, vector<256x8xf32> -> vector<256x8xf32>
    %140 = arith.addf %133, %139 : vector<256x8xf32>
    %c0_185 = arith.constant 0 : index
    %c0_186 = arith.constant 0 : index
    %141 = vector.load %arg5[%c0_185, %c0_186] : memref<1x8xf32, #tpu.memory_space<vmem>>, vector<1x8xf32>
    %142 = vector.broadcast %141 : vector<1x8xf32> to vector<256x8xf32>
    %143 = arith.addf %140, %142 : vector<256x8xf32>
    %cst_187 = arith.constant 0.000000e+00 : f32
    %144 = vector.broadcast %cst_187 : f32 to vector<256x8xf32>
    %145 = arith.maximumf %143, %144 : vector<256x8xf32>
    %146 = vector.shape_cast %145 : vector<256x8xf32> to vector<1x16x16x8xf32>
    %147 = vector.shape_cast %146 : vector<1x16x16x8xf32> to vector<8x2x16x8xf32>
    %148 = vector.extract_strided_slice %147 {offsets = [0, 0, 0, 0], sizes = [8, 1, 16, 8], strides = [1, 1, 1, 1]} : vector<8x2x16x8xf32> to vector<8x1x16x8xf32>
    %149 = vector.shape_cast %148 : vector<8x1x16x8xf32> to vector<8x16x8xf32>
    %150 = vector.extract_strided_slice %147 {offsets = [0, 1, 0, 0], sizes = [8, 1, 16, 8], strides = [1, 1, 1, 1]} : vector<8x2x16x8xf32> to vector<8x1x16x8xf32>
    %151 = vector.shape_cast %150 : vector<8x1x16x8xf32> to vector<8x16x8xf32>
    %152 = arith.maximumf %149, %151 : vector<8x16x8xf32>
    %c0_188 = arith.constant 0 : index
    %c0_189 = arith.constant 0 : index
    %c0_190 = arith.constant 0 : index
    %153 = vector.load %arg17[%c0_188, %c0_189, %c0_190] : memref<8x16x16xf32, #tpu.memory_space<vmem>>, vector<8x16x8xf32>
    tpu.vector_store %arg17[%c0_188, %c0_189, %c0_190], %152 {strides = array<i32>} : memref<8x16x16xf32, #tpu.memory_space<vmem>>, vector<8x16x8xf32>,
    %c0_191 = arith.constant 0 : index
    %c0_192 = arith.constant 0 : index
    %c0_193 = arith.constant 0 : index
    %154 = tpu.strided_load %arg17[%c0_191, %c0_192, %c0_193] {strides = array<i32: 1, 2, 1>} : memref<8x16x16xf32, #tpu.memory_space<vmem>>, vector<8x8x8xf32>
    %c0_194 = arith.constant 0 : index
    %c1_195 = arith.constant 1 : index
    %c0_196 = arith.constant 0 : index
    %155 = tpu.strided_load %arg17[%c0_194, %c1_195, %c0_196] {strides = array<i32: 1, 2, 1>} : memref<8x16x16xf32, #tpu.memory_space<vmem>>, vector<8x8x8xf32>
    %156 = arith.maximumf %154, %155 : vector<8x8x8xf32>
    %157 = vector.shape_cast %156 : vector<8x8x8xf32> to vector<1x8x8x8xf32>
    %c0_197 = arith.constant 0 : index
    %c1_198 = arith.constant 1 : index
    %c1_199 = arith.constant 1 : index
    %c0_200 = arith.constant 0 : index
    %158 = vector.load %arg16[%c0_197, %c1_198, %c1_199, %c0_200] : memref<1x10x10x16xf32, #tpu.memory_space<vmem>>, vector<1x8x8x8xf32>
    tpu.vector_store %arg16[%c0_197, %c1_198, %c1_199, %c0_200], %157 {strides = array<i32>} : memref<1x10x10x16xf32, #tpu.memory_space<vmem>>, vector<1x8x8x8xf32>,
    %cst_201 = arith.constant 0.000000e+00 : f32
    %159 = vector.broadcast %cst_201 : f32 to vector<64x16xf32>
    %c0_202 = arith.constant 0 : index
    %c0_203 = arith.constant 0 : index
    %c0_204 = arith.constant 0 : index
    %c0_205 = arith.constant 0 : index
    %160 = vector.load %arg16[%c0_202, %c0_203, %c0_204, %c0_205] : memref<1x10x10x16xf32, #tpu.memory_space<vmem>>, vector<1x8x8x8xf32>
    %161 = vector.shape_cast %160 : vector<1x8x8x8xf32> to vector<64x8xf32>
    %162 = arith.truncf %161 : vector<64x8xf32> to vector<64x8xbf16>
    %c0_206 = arith.constant 0 : index
    %c0_207 = arith.constant 0 : index
    %c0_208 = arith.constant 0 : index
    %c0_209 = arith.constant 0 : index
    %163 = vector.load %arg6[%c0_206, %c0_207, %c0_208, %c0_209] : memref<3x3x8x16xbf16, #tpu.memory_space<vmem>>, vector<1x1x8x16xbf16>
    %164 = vector.shape_cast %163 : vector<1x1x8x16xbf16> to vector<8x16xbf16>
    %cst_210 = arith.constant dense<0.000000e+00> : vector<64x16xf32>
    %165 = tpu.matmul %162, %164, %cst_210 {dimension_numbers = #tpu.dot_dimension_numbers<[1], [0], [0], [1], [0, 0, 1, 1], [], []>} : vector<64x8xbf16>, vector<8x16xbf16>, vector<64x16xf32> -> vector<64x16xf32>
    %166 = arith.addf %159, %165 : vector<64x16xf32>
    %c0_211 = arith.constant 0 : index
    %c0_212 = arith.constant 0 : index
    %c1_213 = arith.constant 1 : index
    %c0_214 = arith.constant 0 : index
    %167 = vector.load %arg16[%c0_211, %c0_212, %c1_213, %c0_214] : memref<1x10x10x16xf32, #tpu.memory_space<vmem>>, vector<1x8x8x8xf32>
    %168 = vector.shape_cast %167 : vector<1x8x8x8xf32> to vector<64x8xf32>
    %169 = arith.truncf %168 : vector<64x8xf32> to vector<64x8xbf16>
    %c0_215 = arith.constant 0 : index
    %c1_216 = arith.constant 1 : index
    %c0_217 = arith.constant 0 : index
    %c0_218 = arith.constant 0 : index
    %170 = vector.load %arg6[%c0_215, %c1_216, %c0_217, %c0_218] : memref<3x3x8x16xbf16, #tpu.memory_space<vmem>>, vector<1x1x8x16xbf16>
    %171 = vector.shape_cast %170 : vector<1x1x8x16xbf16> to vector<8x16xbf16>
    %cst_219 = arith.constant dense<0.000000e+00> : vector<64x16xf32>
    %172 = tpu.matmul %169, %171, %cst_219 {dimension_numbers = #tpu.dot_dimension_numbers<[1], [0], [0], [1], [0, 0, 1, 1], [], []>} : vector<64x8xbf16>, vector<8x16xbf16>, vector<64x16xf32> -> vector<64x16xf32>
    %173 = arith.addf %166, %172 : vector<64x16xf32>
    %c0_220 = arith.constant 0 : index
    %c0_221 = arith.constant 0 : index
    %c2_222 = arith.constant 2 : index
    %c0_223 = arith.constant 0 : index
    %174 = vector.load %arg16[%c0_220, %c0_221, %c2_222, %c0_223] : memref<1x10x10x16xf32, #tpu.memory_space<vmem>>, vector<1x8x8x8xf32>
    %175 = vector.shape_cast %174 : vector<1x8x8x8xf32> to vector<64x8xf32>
    %176 = arith.truncf %175 : vector<64x8xf32> to vector<64x8xbf16>
    %c0_224 = arith.constant 0 : index
    %c2_225 = arith.constant 2 : index
    %c0_226 = arith.constant 0 : index
    %c0_227 = arith.constant 0 : index
    %177 = vector.load %arg6[%c0_224, %c2_225, %c0_226, %c0_227] : memref<3x3x8x16xbf16, #tpu.memory_space<vmem>>, vector<1x1x8x16xbf16>
    %178 = vector.shape_cast %177 : vector<1x1x8x16xbf16> to vector<8x16xbf16>
    %cst_228 = arith.constant dense<0.000000e+00> : vector<64x16xf32>
    %179 = tpu.matmul %176, %178, %cst_228 {dimension_numbers = #tpu.dot_dimension_numbers<[1], [0], [0], [1], [0, 0, 1, 1], [], []>} : vector<64x8xbf16>, vector<8x16xbf16>, vector<64x16xf32> -> vector<64x16xf32>
    %180 = arith.addf %173, %179 : vector<64x16xf32>
    %c0_229 = arith.constant 0 : index
    %c1_230 = arith.constant 1 : index
    %c0_231 = arith.constant 0 : index
    %c0_232 = arith.constant 0 : index
    %181 = vector.load %arg16[%c0_229, %c1_230, %c0_231, %c0_232] : memref<1x10x10x16xf32, #tpu.memory_space<vmem>>, vector<1x8x8x8xf32>
    %182 = vector.shape_cast %181 : vector<1x8x8x8xf32> to vector<64x8xf32>
    %183 = arith.truncf %182 : vector<64x8xf32> to vector<64x8xbf16>
    %c1_233 = arith.constant 1 : index
    %c0_234 = arith.constant 0 : index
    %c0_235 = arith.constant 0 : index
    %c0_236 = arith.constant 0 : index
    %184 = vector.load %arg6[%c1_233, %c0_234, %c0_235, %c0_236] : memref<3x3x8x16xbf16, #tpu.memory_space<vmem>>, vector<1x1x8x16xbf16>
    %185 = vector.shape_cast %184 : vector<1x1x8x16xbf16> to vector<8x16xbf16>
    %cst_237 = arith.constant dense<0.000000e+00> : vector<64x16xf32>
    %186 = tpu.matmul %183, %185, %cst_237 {dimension_numbers = #tpu.dot_dimension_numbers<[1], [0], [0], [1], [0, 0, 1, 1], [], []>} : vector<64x8xbf16>, vector<8x16xbf16>, vector<64x16xf32> -> vector<64x16xf32>
    %187 = arith.addf %180, %186 : vector<64x16xf32>
    %c0_238 = arith.constant 0 : index
    %c1_239 = arith.constant 1 : index
    %c1_240 = arith.constant 1 : index
    %c0_241 = arith.constant 0 : index
    %188 = vector.load %arg16[%c0_238, %c1_239, %c1_240, %c0_241] : memref<1x10x10x16xf32, #tpu.memory_space<vmem>>, vector<1x8x8x8xf32>
    %189 = vector.shape_cast %188 : vector<1x8x8x8xf32> to vector<64x8xf32>
    %190 = arith.truncf %189 : vector<64x8xf32> to vector<64x8xbf16>
    %c1_242 = arith.constant 1 : index
    %c1_243 = arith.constant 1 : index
    %c0_244 = arith.constant 0 : index
    %c0_245 = arith.constant 0 : index
    %191 = vector.load %arg6[%c1_242, %c1_243, %c0_244, %c0_245] : memref<3x3x8x16xbf16, #tpu.memory_space<vmem>>, vector<1x1x8x16xbf16>
    %192 = vector.shape_cast %191 : vector<1x1x8x16xbf16> to vector<8x16xbf16>
    %cst_246 = arith.constant dense<0.000000e+00> : vector<64x16xf32>
    %193 = tpu.matmul %190, %192, %cst_246 {dimension_numbers = #tpu.dot_dimension_numbers<[1], [0], [0], [1], [0, 0, 1, 1], [], []>} : vector<64x8xbf16>, vector<8x16xbf16>, vector<64x16xf32> -> vector<64x16xf32>
    %194 = arith.addf %187, %193 : vector<64x16xf32>
    %c0_247 = arith.constant 0 : index
    %c1_248 = arith.constant 1 : index
    %c2_249 = arith.constant 2 : index
    %c0_250 = arith.constant 0 : index
    %195 = vector.load %arg16[%c0_247, %c1_248, %c2_249, %c0_250] : memref<1x10x10x16xf32, #tpu.memory_space<vmem>>, vector<1x8x8x8xf32>
    %196 = vector.shape_cast %195 : vector<1x8x8x8xf32> to vector<64x8xf32>
    %197 = arith.truncf %196 : vector<64x8xf32> to vector<64x8xbf16>
    %c1_251 = arith.constant 1 : index
    %c2_252 = arith.constant 2 : index
    %c0_253 = arith.constant 0 : index
    %c0_254 = arith.constant 0 : index
    %198 = vector.load %arg6[%c1_251, %c2_252, %c0_253, %c0_254] : memref<3x3x8x16xbf16, #tpu.memory_space<vmem>>, vector<1x1x8x16xbf16>
    %199 = vector.shape_cast %198 : vector<1x1x8x16xbf16> to vector<8x16xbf16>
    %cst_255 = arith.constant dense<0.000000e+00> : vector<64x16xf32>
    %200 = tpu.matmul %197, %199, %cst_255 {dimension_numbers = #tpu.dot_dimension_numbers<[1], [0], [0], [1], [0, 0, 1, 1], [], []>} : vector<64x8xbf16>, vector<8x16xbf16>, vector<64x16xf32> -> vector<64x16xf32>
    %201 = arith.addf %194, %200 : vector<64x16xf32>
    %c0_256 = arith.constant 0 : index
    %c2_257 = arith.constant 2 : index
    %c0_258 = arith.constant 0 : index
    %c0_259 = arith.constant 0 : index
    %202 = vector.load %arg16[%c0_256, %c2_257, %c0_258, %c0_259] : memref<1x10x10x16xf32, #tpu.memory_space<vmem>>, vector<1x8x8x8xf32>
    %203 = vector.shape_cast %202 : vector<1x8x8x8xf32> to vector<64x8xf32>
    %204 = arith.truncf %203 : vector<64x8xf32> to vector<64x8xbf16>
    %c2_260 = arith.constant 2 : index
    %c0_261 = arith.constant 0 : index
    %c0_262 = arith.constant 0 : index
    %c0_263 = arith.constant 0 : index
    %205 = vector.load %arg6[%c2_260, %c0_261, %c0_262, %c0_263] : memref<3x3x8x16xbf16, #tpu.memory_space<vmem>>, vector<1x1x8x16xbf16>
    %206 = vector.shape_cast %205 : vector<1x1x8x16xbf16> to vector<8x16xbf16>
    %cst_264 = arith.constant dense<0.000000e+00> : vector<64x16xf32>
    %207 = tpu.matmul %204, %206, %cst_264 {dimension_numbers = #tpu.dot_dimension_numbers<[1], [0], [0], [1], [0, 0, 1, 1], [], []>} : vector<64x8xbf16>, vector<8x16xbf16>, vector<64x16xf32> -> vector<64x16xf32>
    %208 = arith.addf %201, %207 : vector<64x16xf32>
    %c0_265 = arith.constant 0 : index
    %c2_266 = arith.constant 2 : index
    %c1_267 = arith.constant 1 : index
    %c0_268 = arith.constant 0 : index
    %209 = vector.load %arg16[%c0_265, %c2_266, %c1_267, %c0_268] : memref<1x10x10x16xf32, #tpu.memory_space<vmem>>, vector<1x8x8x8xf32>
    %210 = vector.shape_cast %209 : vector<1x8x8x8xf32> to vector<64x8xf32>
    %211 = arith.truncf %210 : vector<64x8xf32> to vector<64x8xbf16>
    %c2_269 = arith.constant 2 : index
    %c1_270 = arith.constant 1 : index
    %c0_271 = arith.constant 0 : index
    %c0_272 = arith.constant 0 : index
    %212 = vector.load %arg6[%c2_269, %c1_270, %c0_271, %c0_272] : memref<3x3x8x16xbf16, #tpu.memory_space<vmem>>, vector<1x1x8x16xbf16>
    %213 = vector.shape_cast %212 : vector<1x1x8x16xbf16> to vector<8x16xbf16>
    %cst_273 = arith.constant dense<0.000000e+00> : vector<64x16xf32>
    %214 = tpu.matmul %211, %213, %cst_273 {dimension_numbers = #tpu.dot_dimension_numbers<[1], [0], [0], [1], [0, 0, 1, 1], [], []>} : vector<64x8xbf16>, vector<8x16xbf16>, vector<64x16xf32> -> vector<64x16xf32>
    %215 = arith.addf %208, %214 : vector<64x16xf32>
    %c0_274 = arith.constant 0 : index
    %c2_275 = arith.constant 2 : index
    %c2_276 = arith.constant 2 : index
    %c0_277 = arith.constant 0 : index
    %216 = vector.load %arg16[%c0_274, %c2_275, %c2_276, %c0_277] : memref<1x10x10x16xf32, #tpu.memory_space<vmem>>, vector<1x8x8x8xf32>
    %217 = vector.shape_cast %216 : vector<1x8x8x8xf32> to vector<64x8xf32>
    %218 = arith.truncf %217 : vector<64x8xf32> to vector<64x8xbf16>
    %c2_278 = arith.constant 2 : index
    %c2_279 = arith.constant 2 : index
    %c0_280 = arith.constant 0 : index
    %c0_281 = arith.constant 0 : index
    %219 = vector.load %arg6[%c2_278, %c2_279, %c0_280, %c0_281] : memref<3x3x8x16xbf16, #tpu.memory_space<vmem>>, vector<1x1x8x16xbf16>
    %220 = vector.shape_cast %219 : vector<1x1x8x16xbf16> to vector<8x16xbf16>
    %cst_282 = arith.constant dense<0.000000e+00> : vector<64x16xf32>
    %221 = tpu.matmul %218, %220, %cst_282 {dimension_numbers = #tpu.dot_dimension_numbers<[1], [0], [0], [1], [0, 0, 1, 1], [], []>} : vector<64x8xbf16>, vector<8x16xbf16>, vector<64x16xf32> -> vector<64x16xf32>
    %222 = arith.addf %215, %221 : vector<64x16xf32>
    %c0_283 = arith.constant 0 : index
    %c0_284 = arith.constant 0 : index
    %223 = vector.load %arg7[%c0_283, %c0_284] : memref<1x16xf32, #tpu.memory_space<vmem>>, vector<1x16xf32>
    %224 = vector.broadcast %223 : vector<1x16xf32> to vector<64x16xf32>
    %225 = arith.addf %222, %224 : vector<64x16xf32>
    %cst_285 = arith.constant 0.000000e+00 : f32
    %226 = vector.broadcast %cst_285 : f32 to vector<64x16xf32>
    %227 = arith.maximumf %225, %226 : vector<64x16xf32>
    %228 = vector.shape_cast %227 : vector<64x16xf32> to vector<1x8x8x16xf32>
    %c0_286 = arith.constant 0 : index
    %c1_287 = arith.constant 1 : index
    %c1_288 = arith.constant 1 : index
    %c0_289 = arith.constant 0 : index
    %229 = vector.load %arg16[%c0_286, %c1_287, %c1_288, %c0_289] : memref<1x10x10x16xf32, #tpu.memory_space<vmem>>, vector<1x8x8x16xf32>
    tpu.vector_store %arg16[%c0_286, %c1_287, %c1_288, %c0_289], %228 {strides = array<i32>} : memref<1x10x10x16xf32, #tpu.memory_space<vmem>>, vector<1x8x8x16xf32>,
    %cst_290 = arith.constant 0.000000e+00 : f32
    %230 = vector.broadcast %cst_290 : f32 to vector<64x16xf32>
    %c0_291 = arith.constant 0 : index
    %c0_292 = arith.constant 0 : index
    %c0_293 = arith.constant 0 : index
    %c0_294 = arith.constant 0 : index
    %231 = vector.load %arg16[%c0_291, %c0_292, %c0_293, %c0_294] : memref<1x10x10x16xf32, #tpu.memory_space<vmem>>, vector<1x8x8x16xf32>
    %232 = vector.shape_cast %231 : vector<1x8x8x16xf32> to vector<64x16xf32>
    %233 = arith.truncf %232 : vector<64x16xf32> to vector<64x16xbf16>
    %c0_295 = arith.constant 0 : index
    %c0_296 = arith.constant 0 : index
    %c0_297 = arith.constant 0 : index
    %c0_298 = arith.constant 0 : index
    %234 = vector.load %arg8[%c0_295, %c0_296, %c0_297, %c0_298] : memref<3x3x16x16xbf16, #tpu.memory_space<vmem>>, vector<1x1x16x16xbf16>
    %235 = vector.shape_cast %234 : vector<1x1x16x16xbf16> to vector<16x16xbf16>
    %cst_299 = arith.constant dense<0.000000e+00> : vector<64x16xf32>
    %236 = tpu.matmul %233, %235, %cst_299 {dimension_numbers = #tpu.dot_dimension_numbers<[1], [0], [0], [1], [0, 0, 1, 1], [], []>} : vector<64x16xbf16>, vector<16x16xbf16>, vector<64x16xf32> -> vector<64x16xf32>
    %237 = arith.addf %230, %236 : vector<64x16xf32>
    %c0_300 = arith.constant 0 : index
    %c0_301 = arith.constant 0 : index
    %c1_302 = arith.constant 1 : index
    %c0_303 = arith.constant 0 : index
    %238 = vector.load %arg16[%c0_300, %c0_301, %c1_302, %c0_303] : memref<1x10x10x16xf32, #tpu.memory_space<vmem>>, vector<1x8x8x16xf32>
    %239 = vector.shape_cast %238 : vector<1x8x8x16xf32> to vector<64x16xf32>
    %240 = arith.truncf %239 : vector<64x16xf32> to vector<64x16xbf16>
    %c0_304 = arith.constant 0 : index
    %c1_305 = arith.constant 1 : index
    %c0_306 = arith.constant 0 : index
    %c0_307 = arith.constant 0 : index
    %241 = vector.load %arg8[%c0_304, %c1_305, %c0_306, %c0_307] : memref<3x3x16x16xbf16, #tpu.memory_space<vmem>>, vector<1x1x16x16xbf16>
    %242 = vector.shape_cast %241 : vector<1x1x16x16xbf16> to vector<16x16xbf16>
    %cst_308 = arith.constant dense<0.000000e+00> : vector<64x16xf32>
    %243 = tpu.matmul %240, %242, %cst_308 {dimension_numbers = #tpu.dot_dimension_numbers<[1], [0], [0], [1], [0, 0, 1, 1], [], []>} : vector<64x16xbf16>, vector<16x16xbf16>, vector<64x16xf32> -> vector<64x16xf32>
    %244 = arith.addf %237, %243 : vector<64x16xf32>
    %c0_309 = arith.constant 0 : index
    %c0_310 = arith.constant 0 : index
    %c2_311 = arith.constant 2 : index
    %c0_312 = arith.constant 0 : index
    %245 = vector.load %arg16[%c0_309, %c0_310, %c2_311, %c0_312] : memref<1x10x10x16xf32, #tpu.memory_space<vmem>>, vector<1x8x8x16xf32>
    %246 = vector.shape_cast %245 : vector<1x8x8x16xf32> to vector<64x16xf32>
    %247 = arith.truncf %246 : vector<64x16xf32> to vector<64x16xbf16>
    %c0_313 = arith.constant 0 : index
    %c2_314 = arith.constant 2 : index
    %c0_315 = arith.constant 0 : index
    %c0_316 = arith.constant 0 : index
    %248 = vector.load %arg8[%c0_313, %c2_314, %c0_315, %c0_316] : memref<3x3x16x16xbf16, #tpu.memory_space<vmem>>, vector<1x1x16x16xbf16>
    %249 = vector.shape_cast %248 : vector<1x1x16x16xbf16> to vector<16x16xbf16>
    %cst_317 = arith.constant dense<0.000000e+00> : vector<64x16xf32>
    %250 = tpu.matmul %247, %249, %cst_317 {dimension_numbers = #tpu.dot_dimension_numbers<[1], [0], [0], [1], [0, 0, 1, 1], [], []>} : vector<64x16xbf16>, vector<16x16xbf16>, vector<64x16xf32> -> vector<64x16xf32>
    %251 = arith.addf %244, %250 : vector<64x16xf32>
    %c0_318 = arith.constant 0 : index
    %c1_319 = arith.constant 1 : index
    %c0_320 = arith.constant 0 : index
    %c0_321 = arith.constant 0 : index
    %252 = vector.load %arg16[%c0_318, %c1_319, %c0_320, %c0_321] : memref<1x10x10x16xf32, #tpu.memory_space<vmem>>, vector<1x8x8x16xf32>
    %253 = vector.shape_cast %252 : vector<1x8x8x16xf32> to vector<64x16xf32>
    %254 = arith.truncf %253 : vector<64x16xf32> to vector<64x16xbf16>
    %c1_322 = arith.constant 1 : index
    %c0_323 = arith.constant 0 : index
    %c0_324 = arith.constant 0 : index
    %c0_325 = arith.constant 0 : index
    %255 = vector.load %arg8[%c1_322, %c0_323, %c0_324, %c0_325] : memref<3x3x16x16xbf16, #tpu.memory_space<vmem>>, vector<1x1x16x16xbf16>
    %256 = vector.shape_cast %255 : vector<1x1x16x16xbf16> to vector<16x16xbf16>
    %cst_326 = arith.constant dense<0.000000e+00> : vector<64x16xf32>
    %257 = tpu.matmul %254, %256, %cst_326 {dimension_numbers = #tpu.dot_dimension_numbers<[1], [0], [0], [1], [0, 0, 1, 1], [], []>} : vector<64x16xbf16>, vector<16x16xbf16>, vector<64x16xf32> -> vector<64x16xf32>
    %258 = arith.addf %251, %257 : vector<64x16xf32>
    %c0_327 = arith.constant 0 : index
    %c1_328 = arith.constant 1 : index
    %c1_329 = arith.constant 1 : index
    %c0_330 = arith.constant 0 : index
    %259 = vector.load %arg16[%c0_327, %c1_328, %c1_329, %c0_330] : memref<1x10x10x16xf32, #tpu.memory_space<vmem>>, vector<1x8x8x16xf32>
    %260 = vector.shape_cast %259 : vector<1x8x8x16xf32> to vector<64x16xf32>
    %261 = arith.truncf %260 : vector<64x16xf32> to vector<64x16xbf16>
    %c1_331 = arith.constant 1 : index
    %c1_332 = arith.constant 1 : index
    %c0_333 = arith.constant 0 : index
    %c0_334 = arith.constant 0 : index
    %262 = vector.load %arg8[%c1_331, %c1_332, %c0_333, %c0_334] : memref<3x3x16x16xbf16, #tpu.memory_space<vmem>>, vector<1x1x16x16xbf16>
    %263 = vector.shape_cast %262 : vector<1x1x16x16xbf16> to vector<16x16xbf16>
    %cst_335 = arith.constant dense<0.000000e+00> : vector<64x16xf32>
    %264 = tpu.matmul %261, %263, %cst_335 {dimension_numbers = #tpu.dot_dimension_numbers<[1], [0], [0], [1], [0, 0, 1, 1], [], []>} : vector<64x16xbf16>, vector<16x16xbf16>, vector<64x16xf32> -> vector<64x16xf32>
    %265 = arith.addf %258, %264 : vector<64x16xf32>
    %c0_336 = arith.constant 0 : index
    %c1_337 = arith.constant 1 : index
    %c2_338 = arith.constant 2 : index
    %c0_339 = arith.constant 0 : index
    %266 = vector.load %arg16[%c0_336, %c1_337, %c2_338, %c0_339] : memref<1x10x10x16xf32, #tpu.memory_space<vmem>>, vector<1x8x8x16xf32>
    %267 = vector.shape_cast %266 : vector<1x8x8x16xf32> to vector<64x16xf32>
    %268 = arith.truncf %267 : vector<64x16xf32> to vector<64x16xbf16>
    %c1_340 = arith.constant 1 : index
    %c2_341 = arith.constant 2 : index
    %c0_342 = arith.constant 0 : index
    %c0_343 = arith.constant 0 : index
    %269 = vector.load %arg8[%c1_340, %c2_341, %c0_342, %c0_343] : memref<3x3x16x16xbf16, #tpu.memory_space<vmem>>, vector<1x1x16x16xbf16>
    %270 = vector.shape_cast %269 : vector<1x1x16x16xbf16> to vector<16x16xbf16>
    %cst_344 = arith.constant dense<0.000000e+00> : vector<64x16xf32>
    %271 = tpu.matmul %268, %270, %cst_344 {dimension_numbers = #tpu.dot_dimension_numbers<[1], [0], [0], [1], [0, 0, 1, 1], [], []>} : vector<64x16xbf16>, vector<16x16xbf16>, vector<64x16xf32> -> vector<64x16xf32>
    %272 = arith.addf %265, %271 : vector<64x16xf32>
    %c0_345 = arith.constant 0 : index
    %c2_346 = arith.constant 2 : index
    %c0_347 = arith.constant 0 : index
    %c0_348 = arith.constant 0 : index
    %273 = vector.load %arg16[%c0_345, %c2_346, %c0_347, %c0_348] : memref<1x10x10x16xf32, #tpu.memory_space<vmem>>, vector<1x8x8x16xf32>
    %274 = vector.shape_cast %273 : vector<1x8x8x16xf32> to vector<64x16xf32>
    %275 = arith.truncf %274 : vector<64x16xf32> to vector<64x16xbf16>
    %c2_349 = arith.constant 2 : index
    %c0_350 = arith.constant 0 : index
    %c0_351 = arith.constant 0 : index
    %c0_352 = arith.constant 0 : index
    %276 = vector.load %arg8[%c2_349, %c0_350, %c0_351, %c0_352] : memref<3x3x16x16xbf16, #tpu.memory_space<vmem>>, vector<1x1x16x16xbf16>
    %277 = vector.shape_cast %276 : vector<1x1x16x16xbf16> to vector<16x16xbf16>
    %cst_353 = arith.constant dense<0.000000e+00> : vector<64x16xf32>
    %278 = tpu.matmul %275, %277, %cst_353 {dimension_numbers = #tpu.dot_dimension_numbers<[1], [0], [0], [1], [0, 0, 1, 1], [], []>} : vector<64x16xbf16>, vector<16x16xbf16>, vector<64x16xf32> -> vector<64x16xf32>
    %279 = arith.addf %272, %278 : vector<64x16xf32>
    %c0_354 = arith.constant 0 : index
    %c2_355 = arith.constant 2 : index
    %c1_356 = arith.constant 1 : index
    %c0_357 = arith.constant 0 : index
    %280 = vector.load %arg16[%c0_354, %c2_355, %c1_356, %c0_357] : memref<1x10x10x16xf32, #tpu.memory_space<vmem>>, vector<1x8x8x16xf32>
    %281 = vector.shape_cast %280 : vector<1x8x8x16xf32> to vector<64x16xf32>
    %282 = arith.truncf %281 : vector<64x16xf32> to vector<64x16xbf16>
    %c2_358 = arith.constant 2 : index
    %c1_359 = arith.constant 1 : index
    %c0_360 = arith.constant 0 : index
    %c0_361 = arith.constant 0 : index
    %283 = vector.load %arg8[%c2_358, %c1_359, %c0_360, %c0_361] : memref<3x3x16x16xbf16, #tpu.memory_space<vmem>>, vector<1x1x16x16xbf16>
    %284 = vector.shape_cast %283 : vector<1x1x16x16xbf16> to vector<16x16xbf16>
    %cst_362 = arith.constant dense<0.000000e+00> : vector<64x16xf32>
    %285 = tpu.matmul %282, %284, %cst_362 {dimension_numbers = #tpu.dot_dimension_numbers<[1], [0], [0], [1], [0, 0, 1, 1], [], []>} : vector<64x16xbf16>, vector<16x16xbf16>, vector<64x16xf32> -> vector<64x16xf32>
    %286 = arith.addf %279, %285 : vector<64x16xf32>
    %c0_363 = arith.constant 0 : index
    %c2_364 = arith.constant 2 : index
    %c2_365 = arith.constant 2 : index
    %c0_366 = arith.constant 0 : index
    %287 = vector.load %arg16[%c0_363, %c2_364, %c2_365, %c0_366] : memref<1x10x10x16xf32, #tpu.memory_space<vmem>>, vector<1x8x8x16xf32>
    %288 = vector.shape_cast %287 : vector<1x8x8x16xf32> to vector<64x16xf32>
    %289 = arith.truncf %288 : vector<64x16xf32> to vector<64x16xbf16>
    %c2_367 = arith.constant 2 : index
    %c2_368 = arith.constant 2 : index
    %c0_369 = arith.constant 0 : index
    %c0_370 = arith.constant 0 : index
    %290 = vector.load %arg8[%c2_367, %c2_368, %c0_369, %c0_370] : memref<3x3x16x16xbf16, #tpu.memory_space<vmem>>, vector<1x1x16x16xbf16>
    %291 = vector.shape_cast %290 : vector<1x1x16x16xbf16> to vector<16x16xbf16>
    %cst_371 = arith.constant dense<0.000000e+00> : vector<64x16xf32>
    %292 = tpu.matmul %289, %291, %cst_371 {dimension_numbers = #tpu.dot_dimension_numbers<[1], [0], [0], [1], [0, 0, 1, 1], [], []>} : vector<64x16xbf16>, vector<16x16xbf16>, vector<64x16xf32> -> vector<64x16xf32>
    %293 = arith.addf %286, %292 : vector<64x16xf32>
    %c0_372 = arith.constant 0 : index
    %c0_373 = arith.constant 0 : index
    %294 = vector.load %arg9[%c0_372, %c0_373] : memref<1x16xf32, #tpu.memory_space<vmem>>, vector<1x16xf32>
    %295 = vector.broadcast %294 : vector<1x16xf32> to vector<64x16xf32>
    %296 = arith.addf %293, %295 : vector<64x16xf32>
    %cst_374 = arith.constant 0.000000e+00 : f32
    %297 = vector.broadcast %cst_374 : f32 to vector<64x16xf32>
    %298 = arith.maximumf %296, %297 : vector<64x16xf32>
    %299 = vector.shape_cast %298 : vector<64x16xf32> to vector<1x8x8x16xf32>
    %300 = vector.shape_cast %299 : vector<1x8x8x16xf32> to vector<4x2x8x16xf32>
    %301 = vector.extract_strided_slice %300 {offsets = [0, 0, 0, 0], sizes = [4, 1, 8, 16], strides = [1, 1, 1, 1]} : vector<4x2x8x16xf32> to vector<4x1x8x16xf32>
    %302 = vector.shape_cast %301 : vector<4x1x8x16xf32> to vector<4x8x16xf32>
    %303 = vector.extract_strided_slice %300 {offsets = [0, 1, 0, 0], sizes = [4, 1, 8, 16], strides = [1, 1, 1, 1]} : vector<4x2x8x16xf32> to vector<4x1x8x16xf32>
    %304 = vector.shape_cast %303 : vector<4x1x8x16xf32> to vector<4x8x16xf32>
    %305 = arith.maximumf %302, %304 : vector<4x8x16xf32>
    %c0_375 = arith.constant 0 : index
    %c0_376 = arith.constant 0 : index
    %c0_377 = arith.constant 0 : index
    %306 = vector.load %arg17[%c0_375, %c0_376, %c0_377] : memref<8x16x16xf32, #tpu.memory_space<vmem>>, vector<4x8x16xf32>
    tpu.vector_store %arg17[%c0_375, %c0_376, %c0_377], %305 {strides = array<i32>} : memref<8x16x16xf32, #tpu.memory_space<vmem>>, vector<4x8x16xf32>,
    %c0_378 = arith.constant 0 : index
    %c0_379 = arith.constant 0 : index
    %c0_380 = arith.constant 0 : index
    %307 = tpu.strided_load %arg17[%c0_378, %c0_379, %c0_380] {strides = array<i32: 1, 2, 1>} : memref<8x16x16xf32, #tpu.memory_space<vmem>>, vector<4x4x16xf32>
    %c0_381 = arith.constant 0 : index
    %c1_382 = arith.constant 1 : index
    %c0_383 = arith.constant 0 : index
    %308 = tpu.strided_load %arg17[%c0_381, %c1_382, %c0_383] {strides = array<i32: 1, 2, 1>} : memref<8x16x16xf32, #tpu.memory_space<vmem>>, vector<4x4x16xf32>
    %309 = arith.maximumf %307, %308 : vector<4x4x16xf32>
    %310 = vector.shape_cast %309 : vector<4x4x16xf32> to vector<1x4x4x16xf32>
    %c0_384 = arith.constant 0 : index
    %c0_385 = arith.constant 0 : index
    %c0_386 = arith.constant 0 : index
    %c0_387 = arith.constant 0 : index
    %311 = vector.load %arg18[%c0_384, %c0_385, %c0_386, %c0_387] : memref<1x4x4x16xf32, #tpu.memory_space<vmem>>, vector<1x4x4x16xf32>
    tpu.vector_store %arg18[%c0_384, %c0_385, %c0_386, %c0_387], %310 {strides = array<i32>} : memref<1x4x4x16xf32, #tpu.memory_space<vmem>>, vector<1x4x4x16xf32>,
    %c0_388 = arith.constant 0 : index
    %c0_389 = arith.constant 0 : index
    %c0_390 = arith.constant 0 : index
    %c0_391 = arith.constant 0 : index
    %312 = vector.load %arg18[%c0_388, %c0_389, %c0_390, %c0_391] : memref<1x4x4x16xf32, #tpu.memory_space<vmem>>, vector<1x1x1x16xf32>
    %313 = vector.shape_cast %312 : vector<1x1x1x16xf32> to vector<1x16xf32>
    %c0_392 = arith.constant 0 : index
    %c0_393 = arith.constant 0 : index
    %314 = vector.load %arg19[%c0_392, %c0_393] : memref<1x256xf32, #tpu.memory_space<vmem>>, vector<1x16xf32>
    tpu.vector_store %arg19[%c0_392, %c0_393], %313 {strides = array<i32>} : memref<1x256xf32, #tpu.memory_space<vmem>>, vector<1x16xf32>,
    %c0_394 = arith.constant 0 : index
    %c0_395 = arith.constant 0 : index
    %c1_396 = arith.constant 1 : index
    %c0_397 = arith.constant 0 : index
    %315 = vector.load %arg18[%c0_394, %c0_395, %c1_396, %c0_397] : memref<1x4x4x16xf32, #tpu.memory_space<vmem>>, vector<1x1x1x16xf32>
    %316 = vector.shape_cast %315 : vector<1x1x1x16xf32> to vector<1x16xf32>
    %c0_398 = arith.constant 0 : index
    %c16 = arith.constant 16 : index
    %317 = vector.load %arg19[%c0_398, %c16] : memref<1x256xf32, #tpu.memory_space<vmem>>, vector<1x16xf32>
    tpu.vector_store %arg19[%c0_398, %c16], %316 {strides = array<i32>} : memref<1x256xf32, #tpu.memory_space<vmem>>, vector<1x16xf32>,
    %c0_399 = arith.constant 0 : index
    %c0_400 = arith.constant 0 : index
    %c2_401 = arith.constant 2 : index
    %c0_402 = arith.constant 0 : index
    %318 = vector.load %arg18[%c0_399, %c0_400, %c2_401, %c0_402] : memref<1x4x4x16xf32, #tpu.memory_space<vmem>>, vector<1x1x1x16xf32>
    %319 = vector.shape_cast %318 : vector<1x1x1x16xf32> to vector<1x16xf32>
    %c0_403 = arith.constant 0 : index
    %c32 = arith.constant 32 : index
    %320 = vector.load %arg19[%c0_403, %c32] : memref<1x256xf32, #tpu.memory_space<vmem>>, vector<1x16xf32>
    tpu.vector_store %arg19[%c0_403, %c32], %319 {strides = array<i32>} : memref<1x256xf32, #tpu.memory_space<vmem>>, vector<1x16xf32>,
    %c0_404 = arith.constant 0 : index
    %c0_405 = arith.constant 0 : index
    %c3 = arith.constant 3 : index
    %c0_406 = arith.constant 0 : index
    %321 = vector.load %arg18[%c0_404, %c0_405, %c3, %c0_406] : memref<1x4x4x16xf32, #tpu.memory_space<vmem>>, vector<1x1x1x16xf32>
    %322 = vector.shape_cast %321 : vector<1x1x1x16xf32> to vector<1x16xf32>
    %c0_407 = arith.constant 0 : index
    %c48 = arith.constant 48 : index
    %323 = vector.load %arg19[%c0_407, %c48] : memref<1x256xf32, #tpu.memory_space<vmem>>, vector<1x16xf32>
    tpu.vector_store %arg19[%c0_407, %c48], %322 {strides = array<i32>} : memref<1x256xf32, #tpu.memory_space<vmem>>, vector<1x16xf32>,
    %c0_408 = arith.constant 0 : index
    %c1_409 = arith.constant 1 : index
    %c0_410 = arith.constant 0 : index
    %c0_411 = arith.constant 0 : index
    %324 = vector.load %arg18[%c0_408, %c1_409, %c0_410, %c0_411] : memref<1x4x4x16xf32, #tpu.memory_space<vmem>>, vector<1x1x1x16xf32>
    %325 = vector.shape_cast %324 : vector<1x1x1x16xf32> to vector<1x16xf32>
    %c0_412 = arith.constant 0 : index
    %c64 = arith.constant 64 : index
    %326 = vector.load %arg19[%c0_412, %c64] : memref<1x256xf32, #tpu.memory_space<vmem>>, vector<1x16xf32>
    tpu.vector_store %arg19[%c0_412, %c64], %325 {strides = array<i32>} : memref<1x256xf32, #tpu.memory_space<vmem>>, vector<1x16xf32>,
    %c0_413 = arith.constant 0 : index
    %c1_414 = arith.constant 1 : index
    %c1_415 = arith.constant 1 : index
    %c0_416 = arith.constant 0 : index
    %327 = vector.load %arg18[%c0_413, %c1_414, %c1_415, %c0_416] : memref<1x4x4x16xf32, #tpu.memory_space<vmem>>, vector<1x1x1x16xf32>
    %328 = vector.shape_cast %327 : vector<1x1x1x16xf32> to vector<1x16xf32>
    %c0_417 = arith.constant 0 : index
    %c80 = arith.constant 80 : index
    %329 = vector.load %arg19[%c0_417, %c80] : memref<1x256xf32, #tpu.memory_space<vmem>>, vector<1x16xf32>
    tpu.vector_store %arg19[%c0_417, %c80], %328 {strides = array<i32>} : memref<1x256xf32, #tpu.memory_space<vmem>>, vector<1x16xf32>,
    %c0_418 = arith.constant 0 : index
    %c1_419 = arith.constant 1 : index
    %c2_420 = arith.constant 2 : index
    %c0_421 = arith.constant 0 : index
    %330 = vector.load %arg18[%c0_418, %c1_419, %c2_420, %c0_421] : memref<1x4x4x16xf32, #tpu.memory_space<vmem>>, vector<1x1x1x16xf32>
    %331 = vector.shape_cast %330 : vector<1x1x1x16xf32> to vector<1x16xf32>
    %c0_422 = arith.constant 0 : index
    %c96 = arith.constant 96 : index
    %332 = vector.load %arg19[%c0_422, %c96] : memref<1x256xf32, #tpu.memory_space<vmem>>, vector<1x16xf32>
    tpu.vector_store %arg19[%c0_422, %c96], %331 {strides = array<i32>} : memref<1x256xf32, #tpu.memory_space<vmem>>, vector<1x16xf32>,
    %c0_423 = arith.constant 0 : index
    %c1_424 = arith.constant 1 : index
    %c3_425 = arith.constant 3 : index
    %c0_426 = arith.constant 0 : index
    %333 = vector.load %arg18[%c0_423, %c1_424, %c3_425, %c0_426] : memref<1x4x4x16xf32, #tpu.memory_space<vmem>>, vector<1x1x1x16xf32>
    %334 = vector.shape_cast %333 : vector<1x1x1x16xf32> to vector<1x16xf32>
    %c0_427 = arith.constant 0 : index
    %c112 = arith.constant 112 : index
    %335 = vector.load %arg19[%c0_427, %c112] : memref<1x256xf32, #tpu.memory_space<vmem>>, vector<1x16xf32>
    tpu.vector_store %arg19[%c0_427, %c112], %334 {strides = array<i32>} : memref<1x256xf32, #tpu.memory_space<vmem>>, vector<1x16xf32>,
    %c0_428 = arith.constant 0 : index
    %c2_429 = arith.constant 2 : index
    %c0_430 = arith.constant 0 : index
    %c0_431 = arith.constant 0 : index
    %336 = vector.load %arg18[%c0_428, %c2_429, %c0_430, %c0_431] : memref<1x4x4x16xf32, #tpu.memory_space<vmem>>, vector<1x1x1x16xf32>
    %337 = vector.shape_cast %336 : vector<1x1x1x16xf32> to vector<1x16xf32>
    %c0_432 = arith.constant 0 : index
    %c128 = arith.constant 128 : index
    %338 = vector.load %arg19[%c0_432, %c128] : memref<1x256xf32, #tpu.memory_space<vmem>>, vector<1x16xf32>
    tpu.vector_store %arg19[%c0_432, %c128], %337 {strides = array<i32>} : memref<1x256xf32, #tpu.memory_space<vmem>>, vector<1x16xf32>,
    %c0_433 = arith.constant 0 : index
    %c2_434 = arith.constant 2 : index
    %c1_435 = arith.constant 1 : index
    %c0_436 = arith.constant 0 : index
    %339 = vector.load %arg18[%c0_433, %c2_434, %c1_435, %c0_436] : memref<1x4x4x16xf32, #tpu.memory_space<vmem>>, vector<1x1x1x16xf32>
    %340 = vector.shape_cast %339 : vector<1x1x1x16xf32> to vector<1x16xf32>
    %c0_437 = arith.constant 0 : index
    %c144 = arith.constant 144 : index
    %341 = vector.load %arg19[%c0_437, %c144] : memref<1x256xf32, #tpu.memory_space<vmem>>, vector<1x16xf32>
    tpu.vector_store %arg19[%c0_437, %c144], %340 {strides = array<i32>} : memref<1x256xf32, #tpu.memory_space<vmem>>, vector<1x16xf32>,
    %c0_438 = arith.constant 0 : index
    %c2_439 = arith.constant 2 : index
    %c2_440 = arith.constant 2 : index
    %c0_441 = arith.constant 0 : index
    %342 = vector.load %arg18[%c0_438, %c2_439, %c2_440, %c0_441] : memref<1x4x4x16xf32, #tpu.memory_space<vmem>>, vector<1x1x1x16xf32>
    %343 = vector.shape_cast %342 : vector<1x1x1x16xf32> to vector<1x16xf32>
    %c0_442 = arith.constant 0 : index
    %c160 = arith.constant 160 : index
    %344 = vector.load %arg19[%c0_442, %c160] : memref<1x256xf32, #tpu.memory_space<vmem>>, vector<1x16xf32>
    tpu.vector_store %arg19[%c0_442, %c160], %343 {strides = array<i32>} : memref<1x256xf32, #tpu.memory_space<vmem>>, vector<1x16xf32>,
    %c0_443 = arith.constant 0 : index
    %c2_444 = arith.constant 2 : index
    %c3_445 = arith.constant 3 : index
    %c0_446 = arith.constant 0 : index
    %345 = vector.load %arg18[%c0_443, %c2_444, %c3_445, %c0_446] : memref<1x4x4x16xf32, #tpu.memory_space<vmem>>, vector<1x1x1x16xf32>
    %346 = vector.shape_cast %345 : vector<1x1x1x16xf32> to vector<1x16xf32>
    %c0_447 = arith.constant 0 : index
    %c176 = arith.constant 176 : index
    %347 = vector.load %arg19[%c0_447, %c176] : memref<1x256xf32, #tpu.memory_space<vmem>>, vector<1x16xf32>
    tpu.vector_store %arg19[%c0_447, %c176], %346 {strides = array<i32>} : memref<1x256xf32, #tpu.memory_space<vmem>>, vector<1x16xf32>,
    %c0_448 = arith.constant 0 : index
    %c3_449 = arith.constant 3 : index
    %c0_450 = arith.constant 0 : index
    %c0_451 = arith.constant 0 : index
    %348 = vector.load %arg18[%c0_448, %c3_449, %c0_450, %c0_451] : memref<1x4x4x16xf32, #tpu.memory_space<vmem>>, vector<1x1x1x16xf32>
    %349 = vector.shape_cast %348 : vector<1x1x1x16xf32> to vector<1x16xf32>
    %c0_452 = arith.constant 0 : index
    %c192 = arith.constant 192 : index
    %350 = vector.load %arg19[%c0_452, %c192] : memref<1x256xf32, #tpu.memory_space<vmem>>, vector<1x16xf32>
    tpu.vector_store %arg19[%c0_452, %c192], %349 {strides = array<i32>} : memref<1x256xf32, #tpu.memory_space<vmem>>, vector<1x16xf32>,
    %c0_453 = arith.constant 0 : index
    %c3_454 = arith.constant 3 : index
    %c1_455 = arith.constant 1 : index
    %c0_456 = arith.constant 0 : index
    %351 = vector.load %arg18[%c0_453, %c3_454, %c1_455, %c0_456] : memref<1x4x4x16xf32, #tpu.memory_space<vmem>>, vector<1x1x1x16xf32>
    %352 = vector.shape_cast %351 : vector<1x1x1x16xf32> to vector<1x16xf32>
    %c0_457 = arith.constant 0 : index
    %c208 = arith.constant 208 : index
    %353 = vector.load %arg19[%c0_457, %c208] : memref<1x256xf32, #tpu.memory_space<vmem>>, vector<1x16xf32>
    tpu.vector_store %arg19[%c0_457, %c208], %352 {strides = array<i32>} : memref<1x256xf32, #tpu.memory_space<vmem>>, vector<1x16xf32>,
    %c0_458 = arith.constant 0 : index
    %c3_459 = arith.constant 3 : index
    %c2_460 = arith.constant 2 : index
    %c0_461 = arith.constant 0 : index
    %354 = vector.load %arg18[%c0_458, %c3_459, %c2_460, %c0_461] : memref<1x4x4x16xf32, #tpu.memory_space<vmem>>, vector<1x1x1x16xf32>
    %355 = vector.shape_cast %354 : vector<1x1x1x16xf32> to vector<1x16xf32>
    %c0_462 = arith.constant 0 : index
    %c224 = arith.constant 224 : index
    %356 = vector.load %arg19[%c0_462, %c224] : memref<1x256xf32, #tpu.memory_space<vmem>>, vector<1x16xf32>
    tpu.vector_store %arg19[%c0_462, %c224], %355 {strides = array<i32>} : memref<1x256xf32, #tpu.memory_space<vmem>>, vector<1x16xf32>,
    %c0_463 = arith.constant 0 : index
    %c3_464 = arith.constant 3 : index
    %c3_465 = arith.constant 3 : index
    %c0_466 = arith.constant 0 : index
    %357 = vector.load %arg18[%c0_463, %c3_464, %c3_465, %c0_466] : memref<1x4x4x16xf32, #tpu.memory_space<vmem>>, vector<1x1x1x16xf32>
    %358 = vector.shape_cast %357 : vector<1x1x1x16xf32> to vector<1x16xf32>
    %c0_467 = arith.constant 0 : index
    %c240 = arith.constant 240 : index
    %359 = vector.load %arg19[%c0_467, %c240] : memref<1x256xf32, #tpu.memory_space<vmem>>, vector<1x16xf32>
    tpu.vector_store %arg19[%c0_467, %c240], %358 {strides = array<i32>} : memref<1x256xf32, #tpu.memory_space<vmem>>, vector<1x16xf32>,
    %c0_468 = arith.constant 0 : index
    %c0_469 = arith.constant 0 : index
    %360 = vector.load %arg19[%c0_468, %c0_469] : memref<1x256xf32, #tpu.memory_space<vmem>>, vector<1x256xf32>
    %361 = arith.truncf %360 : vector<1x256xf32> to vector<1x256xbf16>
    %c0_470 = arith.constant 0 : index
    %c0_471 = arith.constant 0 : index
    %362 = vector.load %arg10[%c0_470, %c0_471] : memref<256x32xbf16, #tpu.memory_space<vmem>>, vector<256x32xbf16>
    %cst_472 = arith.constant dense<0.000000e+00> : vector<1x32xf32>
    %363 = tpu.matmul %361, %362, %cst_472 {dimension_numbers = #tpu.dot_dimension_numbers<[1], [0], [0], [1], [0, 0, 1, 1], [], []>} : vector<1x256xbf16>, vector<256x32xbf16>, vector<1x32xf32> -> vector<1x32xf32>
    %c0_473 = arith.constant 0 : index
    %c0_474 = arith.constant 0 : index
    %364 = vector.load %arg11[%c0_473, %c0_474] : memref<1x32xf32, #tpu.memory_space<vmem>>, vector<1x32xf32>
    %365 = arith.addf %363, %364 : vector<1x32xf32>
    %cst_475 = arith.constant 0.000000e+00 : f32
    %366 = vector.broadcast %cst_475 : f32 to vector<1x32xf32>
    %367 = arith.maximumf %365, %366 : vector<1x32xf32>
    %368 = arith.truncf %367 : vector<1x32xf32> to vector<1x32xbf16>
    %c0_476 = arith.constant 0 : index
    %c0_477 = arith.constant 0 : index
    %369 = vector.load %arg12[%c0_476, %c0_477] : memref<32x128xbf16, #tpu.memory_space<vmem>>, vector<32x128xbf16>
    %cst_478 = arith.constant dense<0.000000e+00> : vector<1x128xf32>
    %370 = tpu.matmul %368, %369, %cst_478 {dimension_numbers = #tpu.dot_dimension_numbers<[1], [0], [0], [1], [0, 0, 1, 1], [], []>} : vector<1x32xbf16>, vector<32x128xbf16>, vector<1x128xf32> -> vector<1x128xf32>
    %c0_479 = arith.constant 0 : index
    %c0_480 = arith.constant 0 : index
    %371 = vector.load %arg13[%c0_479, %c0_480] : memref<1x128xf32, #tpu.memory_space<vmem>>, vector<1x128xf32>
    %372 = arith.addf %370, %371 : vector<1x128xf32>
    %c0_481 = arith.constant 0 : index
    %c0_482 = arith.constant 0 : index
    %c0_483 = arith.constant 0 : index
    %373 = vector.load %arg14[%c0_481, %c0_482, %c0_483] : memref<1x1x128xf32, #tpu.memory_space<vmem>>, vector<1x1x128xf32>
    %374 = vector.shape_cast %373 : vector<1x1x128xf32> to vector<1x128xf32>
    %375 = vector.shape_cast %372 : vector<1x128xf32> to vector<1x1x128xf32>
    tpu.vector_store %arg14[%c0_481, %c0_482, %c0_483], %375 {strides = array<i32>} : memref<1x1x128xf32, #tpu.memory_space<vmem>>, vector<1x1x128xf32>,
    return
  }
  func.func @transform_0(%arg0: i32) -> (i32, i32, i32, i32) {
    %c0_i32 = arith.constant 0 : i32
    %c0_i32_0 = arith.constant 0 : i32
    %c0_i32_1 = arith.constant 0 : i32
    %c0_i32_2 = arith.constant 0 : i32
    return %arg0, %c0_i32, %c0_i32_0, %c0_i32_1 : i32, i32, i32, i32
  }
  func.func @transform_1(%arg0: i32) -> (i32, i32, i32, i32) {
    %c0_i32 = arith.constant 0 : i32
    %c0_i32_0 = arith.constant 0 : i32
    %c0_i32_1 = arith.constant 0 : i32
    %c0_i32_2 = arith.constant 0 : i32
    %c0_i32_3 = arith.constant 0 : i32
    return %c0_i32, %c0_i32_0, %c0_i32_1, %c0_i32_2 : i32, i32, i32, i32
  }
  func.func @transform_2(%arg0: i32) -> (i32, i32) {
    %c0_i32 = arith.constant 0 : i32
    %c0_i32_0 = arith.constant 0 : i32
    %c0_i32_1 = arith.constant 0 : i32
    return %c0_i32, %c0_i32_0 : i32, i32
  }
  func.func @transform_3(%arg0: i32) -> (i32, i32, i32, i32) {
    %c0_i32 = arith.constant 0 : i32
    %c0_i32_0 = arith.constant 0 : i32
    %c0_i32_1 = arith.constant 0 : i32
    %c0_i32_2 = arith.constant 0 : i32
    %c0_i32_3 = arith.constant 0 : i32
    return %c0_i32, %c0_i32_0, %c0_i32_1, %c0_i32_2 : i32, i32, i32, i32
  }
  func.func @transform_4(%arg0: i32) -> (i32, i32) {
    %c0_i32 = arith.constant 0 : i32
    %c0_i32_0 = arith.constant 0 : i32
    %c0_i32_1 = arith.constant 0 : i32
    return %c0_i32, %c0_i32_0 : i32, i32
  }
  func.func @transform_5(%arg0: i32) -> (i32, i32, i32, i32) {
    %c0_i32 = arith.constant 0 : i32
    %c0_i32_0 = arith.constant 0 : i32
    %c0_i32_1 = arith.constant 0 : i32
    %c0_i32_2 = arith.constant 0 : i32
    %c0_i32_3 = arith.constant 0 : i32
    return %c0_i32, %c0_i32_0, %c0_i32_1, %c0_i32_2 : i32, i32, i32, i32
  }
  func.func @transform_6(%arg0: i32) -> (i32, i32) {
    %c0_i32 = arith.constant 0 : i32
    %c0_i32_0 = arith.constant 0 : i32
    %c0_i32_1 = arith.constant 0 : i32
    return %c0_i32, %c0_i32_0 : i32, i32
  }
  func.func @transform_7(%arg0: i32) -> (i32, i32, i32, i32) {
    %c0_i32 = arith.constant 0 : i32
    %c0_i32_0 = arith.constant 0 : i32
    %c0_i32_1 = arith.constant 0 : i32
    %c0_i32_2 = arith.constant 0 : i32
    %c0_i32_3 = arith.constant 0 : i32
    return %c0_i32, %c0_i32_0, %c0_i32_1, %c0_i32_2 : i32, i32, i32, i32
  }
  func.func @transform_8(%arg0: i32) -> (i32, i32) {
    %c0_i32 = arith.constant 0 : i32
    %c0_i32_0 = arith.constant 0 : i32
    %c0_i32_1 = arith.constant 0 : i32
    return %c0_i32, %c0_i32_0 : i32, i32
  }
  func.func @transform_9(%arg0: i32) -> (i32, i32) {
    %c0_i32 = arith.constant 0 : i32
    %c0_i32_0 = arith.constant 0 : i32
    %c0_i32_1 = arith.constant 0 : i32
    return %c0_i32, %c0_i32_0 : i32, i32
  }
  func.func @transform_10(%arg0: i32) -> (i32, i32) {
    %c0_i32 = arith.constant 0 : i32
    %c0_i32_0 = arith.constant 0 : i32
    %c0_i32_1 = arith.constant 0 : i32
    return %c0_i32, %c0_i32_0 : i32, i32
  }
  func.func @transform_11(%arg0: i32) -> (i32, i32) {
    %c0_i32 = arith.constant 0 : i32
    %c0_i32_0 = arith.constant 0 : i32
    %c0_i32_1 = arith.constant 0 : i32
    return %c0_i32, %c0_i32_0 : i32, i32
  }
  func.func @transform_12(%arg0: i32) -> (i32, i32) {
    %c0_i32 = arith.constant 0 : i32
    %c0_i32_0 = arith.constant 0 : i32
    %c0_i32_1 = arith.constant 0 : i32
    return %c0_i32, %c0_i32_0 : i32, i32
  }
  func.func @transform_13(%arg0: i32) -> (i32, i32, i32) {
    %c0_i32 = arith.constant 0 : i32
    %c0_i32_0 = arith.constant 0 : i32
    %c0_i32_1 = arith.constant 0 : i32
    return %arg0, %c0_i32, %c0_i32_0 : i32, i32, i32
  }
}

</mosaic_0001>

<bundles_post_ra>
// kernel: conv_classifier_forward.1
= control target key start
LH: loop header
LB: loop body
LE: loop exit
PB: predicated region body
PF: predicated region fallthrough
CT: control target
= control target key end

     0   :  { %s12976_s0 = inlined_call_operand.vmem [shape: f32[2,16,16,4], index: 0, kind: input, shape index: {}]   ;;  %s12977_s1 = inlined_call_operand.vmem [shape: bf16[3,3,4,8], index: 1, kind: input, shape index: {}]   ;;  %s12978_s2 = inlined_call_operand.vmem [shape: f32[1,8], index: 2, kind: input, shape index: {}]   ;;  %s12979_s3 = inlined_call_operand.vmem [shape: bf16[3,3,8,8], index: 3, kind: input, shape index: {}]   ;;  %s12980_s4 = inlined_call_operand.vmem [shape: f32[1,8], index: 4, kind: input, shape index: {}]   ;;  %s12981_s5 = inlined_call_operand.vmem [shape: bf16[3,3,8,16], index: 5, kind: input, shape index: {}]   ;;  %s12982_s6 = inlined_call_operand.vmem [shape: f32[1,16], index: 6, kind: input, shape index: {}]   ;;  %s12983_s7 = inlined_call_operand.vmem [shape: bf16[3,3,16,16], index: 7, kind: input, shape index: {}]   ;;  %s12984_s8 = inlined_call_operand.vmem [shape: f32[1,16], index: 8, kind: input, shape index: {}]   ;;  %s12985_s9 = inlined_call_operand.vmem [shape: bf16[256,32], index: 9, kind: input, shape index: {}]   ;;  %s12986_s10 = inlined_call_operand.vmem [shape: f32[1,32], index: 10, kind: input, shape index: {}]   ;;  %s12987_s11 = inlined_call_operand.vmem [shape: bf16[32,128], index: 11, kind: input, shape index: {}]   ;;  %s12988_s12 = inlined_call_operand.vmem [shape: f32[1,128], index: 12, kind: input, shape index: {}]   ;;  %s12989_s13 = inlined_call_operand.hbm [shape: f32[2,1,128], index: 13, kind: output, shape index: {}]  }
   0x1   :  { %12995 = sst [smem:[#allocation10_spill]] %s12976_s0 }
   0x2   :  { %12996 = sst [smem:[#allocation11_spill]] %s12977_s1 }
   0x3   :  { %18 = vsyncpa [#allocation8], 0 }
   0x4   :  { %20 = vsyncpa [#allocation8 + $0x1], 0  ;;  %s11115_s25 = smov 0   ;;  %s11117_s26 = smov 0  }
   0x5   :  { %s11119_s27 = smov 0   ;;  %s11121_s28 = smov 0  }
   0x6 LB: > { %s11136_s29 = sadd.s32 4294967295, %s11032_s28   ;;  %s8547_s30 = sadd.s32 4294967294, %s11032_s28   ;;  %s11032_s28 = sphi %s11121_s28, %s13037_s28   ;;  %s11028_s27 = sphi %s11119_s27, %s13036_s27   ;;  %s11024_s26 = sphi %s11117_s26, %s13035_s26   ;;  %s11020_s25 = sphi %s11115_s25, %s13034_s25  }
   0x7   : > { %s11140_s14 = sadd.s32 1, %s11032_s28   ;;  %s311_s15 = sadd.s32 1, %s11028_s27 }
   0x8   : > { %s308_s16 = ssub.s32 %s11032_s28, %s11140_s14  ;;  %p321_p0 = scmp.ne.s32.totalorder %s11028_s27, %s11024_s26 }
   0x9   : > { %p309_p1 = scmp.eq.s32.totalorder %s308_s16, 0  ;;  %p322_p2 = scmp.eq.s32.totalorder %s11136_s29, 1 }
   0xa   : > { %p327_p3 = scmp.ne.s32.totalorder %s11024_s26, %s11020_s25  ;;  %p328_p4 = scmp.eq.s32.totalorder %s8547_s30, 1 }
   0xb   : > { %s11151_s17 = scalar_select %p309_p1, %s11028_s27, %s311_s15  }
   0xc   : > { %p11153_p5 = por %p322_p2, %p321_p0  ;;  %p11157_p6 = por %p328_p4, %p327_p3 }
   0xd   : > { %p8550_p7 = scmp.ge.s32.totalorder %s11032_s28, 1  ;;  %p390_p8 = scmp.lt.s32.totalorder %s11032_s28, 3 }
   0xf   : > { %p391_p9 = pnand %p8550_p7, %p390_p8 }
  0x10   : > { %s12999_s1 = sld [smem:[#allocation11_spill]] (!%p391_p9)  ;;  %vm730_vm0 = vcmask (!%p391_p9), 1041408   ;;  %vm439_vm1 = vcmask (!%p391_p9), 64512   ;;  %vm442_vm2 = vcmask (!%p391_p9), 58368   ;;  %v11034_v2 = vmov (!%p391_p9), 0.0   ;;  %p433_p10 = scmp.lt.s32.totalorder (!%p391_p9), %s11136_s29, 1 }
  0x11   : > { %394 = sbr.rel (%p391_p9) target bundleno = 2913 (0xb61), region = 72  ;;  %440 = vst.msk [vmem:[#allocation2] sm:$0xff] (!%p391_p9), %vm439_vm1, %v11034_v2  ;;  %441 = vst.msk [vmem:[#allocation2 + $0x8] sm:$0xff] (!%p391_p9), %vm439_vm1, %v11034_v2  ;;  %vm550_vm3 = vcmask (!%p391_p9), 31744   ;;  %s13000_s0 = sld [smem:[#allocation10_spill]] (!%p391_p9)  ;;  %vm3416_vm4 = vcmask (!%p391_p9), 1043456  }
  0x12   : > { %443 = vst.msk [vmem:[#allocation2 + $0x10] sm:$0x3] (!%p391_p9), %vm442_vm2, %v11034_v2  ;;  %446 = vst.msk [vmem:[#allocation2 + $0x28] sm:$0x3] (!%p391_p9), %vm442_vm2, %v11034_v2  ;;  %vm495_vm5 = vcmask (!%p391_p9), 130048   ;;  %vm497_vm6 = vcmask (!%p391_p9), 123904  }
  0x13   : > { %444 = vst.msk [vmem:[#allocation2 + $0x18] sm:$0xff] (!%p391_p9), %vm439_vm1, %v11034_v2  ;;  %445 = vst.msk [vmem:[#allocation2 + $0x20] sm:$0xff] (!%p391_p9), %vm439_vm1, %v11034_v2  ;;  %vm7915_vm7 = vcmask (!%p391_p9), 125952   ;;  %s11036_s21 = smov (!%p391_p9), 64   ;;  %s12990_s22 = smov (!%p391_p9), 32  }
  0x14   : > { %447 = vst.msk [vmem:[#allocation2 + $0x30] sm:$0xff] (!%p391_p9), %vm439_vm1, %v11034_v2  ;;  %448 = vst.msk [vmem:[#allocation2 + $0x38] sm:$0xff] (!%p391_p9), %vm439_vm1, %v11034_v2  ;;  %s11039_s23 = smov (!%p391_p9), 16   ;;  %s11040_s15 = smov (!%p391_p9), 48  }
  0x15   : > { %449 = vst.msk [vmem:[#allocation2 + $0x40] sm:$0x3] (!%p391_p9), %vm442_vm2, %v11034_v2  ;;  %452 = vst.msk [vmem:[#allocation2 + $0x58] sm:$0x3] (!%p391_p9), %vm442_vm2, %v11034_v2  ;;  %s8999_s16 = sshll.u32 (!%p391_p9), %s11136_s29, 4 }
  0x16   : > { %v11166_v0 = vld [vmem:[%s12999_s1 + $0x2] sm:$0x3] (!%p391_p9)  ;;  %450 = vst.msk [vmem:[#allocation2 + $0x48] sm:$0xff] (!%p391_p9), %vm439_vm1, %v11034_v2  ;;  %451 = vst.msk [vmem:[#allocation2 + $0x50] sm:$0xff] (!%p391_p9), %vm439_vm1, %v11034_v2  ;;  %v631_v3 = vld [vmem:[%s12999_s1] sm:$0x3] (!%p391_p9) }
  0x17   : > { %10866 = vmatprep.subr.msk.bf16.mxu0 (!%p391_p9), %vm730_vm0, %v11166_v0  ;;  %v732_v1 = vsel (!%p391_p9), %vm730_vm0, %v11166_v0, 0  ;;  %453 = vst.msk [vmem:[#allocation2 + $0x60] sm:$0xff] (!%p391_p9), %vm439_vm1, %v11034_v2  ;;  %454 = vst.msk [vmem:[#allocation2 + $0x68] sm:$0xff] (!%p391_p9), %vm439_vm1, %v11034_v2  ;;  %10867 = vmatprep.subr.msk.bf16.mxu1 (!%p391_p9), %vm730_vm0, %v11166_v0  ;;  %v944_v33 = vsel (!%p391_p9), %vm730_vm0, %v631_v3, 0  ;;  %v11350_v38 = vld [vmem:[%s12999_s1 + $0x4] sm:$0x3] (!%p391_p9) }
  0x18   : > { %455 = vst.msk [vmem:[#allocation2 + $0x70] sm:$0x3] %vm442_vm2, %v11034_v2  ;;  %458 = vst.msk [vmem:[#allocation2 + $0x88] sm:$0x3] %vm442_vm2, %v11034_v2  ;;  %9425 = vmatpush3.bf16.msra.mxu0 %v732_v1  ;;  %10225 = vmatpush3.bf16.msra.mxu1 %v732_v1  ;;  %s434_s24 = scalar_select %p433_p10, %s11136_s29, 1  ;;  %v632_v7 = vld [vmem:[#allocation2 + $0x1] sm:$0xff] }
  0x19   : > { %456 = vst.msk [vmem:[#allocation2 + $0x78] sm:$0xff] %vm439_vm1, %v11034_v2  ;;  %457 = vst.msk [vmem:[#allocation2 + $0x80] sm:$0xff] %vm439_vm1, %v11034_v2  ;;  %10868 = vmatprep.subr.msk.bf16.mxu0 %vm730_vm0, %v631_v3  ;;  %v633_v8 = vld [vmem:[#allocation2 + $0x9] sm:$0xff] }
  0x1a   : > { %459 = vst.msk [vmem:[#allocation2 + $0x90] sm:$0xff] %vm439_vm1, %v11034_v2  ;;  %460 = vst.msk [vmem:[#allocation2 + $0x98] sm:$0xff] %vm439_vm1, %v11034_v2  ;;  %s9002_s30 = sshll.u32 %s434_s24, 8  ;;  %v664_v10 = vpack.c.bf16 %v633_v8, %v632_v7  ;;  %s13003_s24 = smov 32  }
  0x1b   : > { %461 = vst.msk [vmem:[#allocation2 + $0xa0] sm:$0x3] %vm442_vm2, %v11034_v2  ;;  %464 = vst.msk [vmem:[#allocation2 + $0xb8] sm:$0x3] %vm442_vm2, %v11034_v2  ;;  %s11291_s20 = scalar_lea.vmem %s13000_s0, %s9002_s30  ;;  %s11038_s0 = smov 80  }
  0x1c   : > { %462 = vst.msk [vmem:[#allocation2 + $0xa8] sm:$0xff] %vm439_vm1, %v11034_v2  ;;  %463 = vst.msk [vmem:[#allocation2 + $0xb0] sm:$0xff] %vm439_vm1, %v11034_v2  ;;  %v517_v4 = vld [vmem:[%s11291_s20] sm:$0xff]  ;;  %v518_v5 = vld [vmem:[%s11291_s20 + $0x8] sm:$0xff]  ;;  %9426 = vmatprep.mubr.msk.bf16.mxu0 %vm550_vm3, %v664_v10  ;;  %s12934_s30 = scalar_lea.hbm %s12989_s13, %s8999_s16 }
  0x1d   : > { %465 = vst.msk [vmem:[#allocation2 + $0xc0] sm:$0xff] %vm439_vm1, %v11034_v2  ;;  %466 = vst.msk [vmem:[#allocation2 + $0xc8] sm:$0xff] %vm439_vm1, %v11034_v2  ;;  %v519_v6 = vld [vmem:[%s11291_s20 + $0x10] sm:$0xff]  ;;  %v520_v9 = vld [vmem:[%s11291_s20 + $0x18] sm:$0xff] }
  0x1e   : > { %467 = vst.msk [vmem:[#allocation2 + $0xd0] sm:$0x3] %vm442_vm2, %v11034_v2  ;;  %470 = vst.msk [vmem:[#allocation2 + $0xe8] sm:$0x3] %vm442_vm2, %v11034_v2  ;;  %v521_v11 = vld [vmem:[%s11291_s20 + $0x20] sm:$0xff]  ;;  %v522_v12 = vld [vmem:[%s11291_s20 + $0x28] sm:$0xff] }
  0x1f   : > { %468 = vst.msk [vmem:[#allocation2 + $0xd8] sm:$0xff] %vm439_vm1, %v11034_v2  ;;  %469 = vst.msk [vmem:[#allocation2 + $0xe0] sm:$0xff] %vm439_vm1, %v11034_v2  ;;  %v523_v13 = vld [vmem:[%s11291_s20 + $0x30] sm:$0xff]  ;;  %v524_v14 = vld [vmem:[%s11291_s20 + $0x38] sm:$0xff] }
  0x20   : > { %471 = vst.msk [vmem:[#allocation2 + $0xf0] sm:$0xff] %vm439_vm1, %v11034_v2  ;;  %472 = vst.msk [vmem:[#allocation2 + $0xf8] sm:$0xff] %vm439_vm1, %v11034_v2  ;;  %v525_v15 = vld [vmem:[%s11291_s20 + $0x40] sm:$0xff]  ;;  %v526_v16 = vld [vmem:[%s11291_s20 + $0x48] sm:$0xff] }
  0x21   : > { %473 = vst.msk [vmem:[#allocation2 + $0x100] sm:$0x3] %vm442_vm2, %v11034_v2  ;;  %476 = vst.msk [vmem:[#allocation2 + $0x118] sm:$0x3] %vm442_vm2, %v11034_v2  ;;  %v527_v17 = vld [vmem:[%s11291_s20 + $0x50] sm:$0xff]  ;;  %v528_v18 = vld [vmem:[%s11291_s20 + $0x58] sm:$0xff] }
  0x22   : > { %474 = vst.msk [vmem:[#allocation2 + $0x108] sm:$0xff] %vm439_vm1, %v11034_v2  ;;  %475 = vst.msk [vmem:[#allocation2 + $0x110] sm:$0xff] %vm439_vm1, %v11034_v2  ;;  %v529_v19 = vld [vmem:[%s11291_s20 + $0x60] sm:$0xff]  ;;  %v530_v20 = vld [vmem:[%s11291_s20 + $0x68] sm:$0xff] }
  0x23   : > { %477 = vst.msk [vmem:[#allocation2 + $0x120] sm:$0xff] %vm439_vm1, %v11034_v2  ;;  %478 = vst.msk [vmem:[#allocation2 + $0x128] sm:$0xff] %vm439_vm1, %v11034_v2  ;;  %v531_v21 = vld [vmem:[%s11291_s20 + $0x70] sm:$0xff]  ;;  %v532_v22 = vld [vmem:[%s11291_s20 + $0x78] sm:$0xff] }
  0x24   : > { %479 = vst.msk [vmem:[#allocation2 + $0x130] sm:$0x3] %vm442_vm2, %v11034_v2  ;;  %482 = vst.msk [vmem:[#allocation2 + $0x148] sm:$0x3] %vm442_vm2, %v11034_v2  ;;  %v533_v23 = vld [vmem:[%s11291_s20 + $0x80] sm:$0xff]  ;;  %v534_v24 = vld [vmem:[%s11291_s20 + $0x88] sm:$0xff] }
  0x25   : > { %480 = vst.msk [vmem:[#allocation2 + $0x138] sm:$0xff] %vm439_vm1, %v11034_v2  ;;  %481 = vst.msk [vmem:[#allocation2 + $0x140] sm:$0xff] %vm439_vm1, %v11034_v2  ;;  %v535_v25 = vld [vmem:[%s11291_s20 + $0x90] sm:$0xff]  ;;  %v536_v26 = vld [vmem:[%s11291_s20 + $0x98] sm:$0xff] }
  0x26   : > { %483 = vst.msk [vmem:[#allocation2 + $0x150] sm:$0xff] %vm439_vm1, %v11034_v2  ;;  %484 = vst.msk [vmem:[#allocation2 + $0x158] sm:$0xff] %vm439_vm1, %v11034_v2  ;;  %v537_v27 = vld [vmem:[%s11291_s20 + $0xa0] sm:$0xff]  ;;  %v538_v28 = vld [vmem:[%s11291_s20 + $0xa8] sm:$0xff] }
  0x27   : > { %485 = vst.msk [vmem:[#allocation2 + $0x160] sm:$0x3] %vm442_vm2, %v11034_v2  ;;  %488 = vst.msk [vmem:[#allocation2 + $0x178] sm:$0x3] %vm442_vm2, %v11034_v2  ;;  %v539_v35 = vld [vmem:[%s11291_s20 + $0xb0] sm:$0xff]  ;;  %v540_v36 = vld [vmem:[%s11291_s20 + $0xb8] sm:$0xff] }
  0x28   : > { %486 = vst.msk [vmem:[#allocation2 + $0x168] sm:$0xff] %vm439_vm1, %v11034_v2  ;;  %487 = vst.msk [vmem:[#allocation2 + $0x170] sm:$0xff] %vm439_vm1, %v11034_v2  ;;  %v541_v45 = vld [vmem:[%s11291_s20 + $0xc0] sm:$0xff]  ;;  %v542_v46 = vld [vmem:[%s11291_s20 + $0xc8] sm:$0xff] }
  0x29   : > { %489 = vst.msk [vmem:[#allocation2 + $0x180] sm:$0xff] %vm439_vm1, %v11034_v2  ;;  %490 = vst.msk [vmem:[#allocation2 + $0x188] sm:$0xff] %vm439_vm1, %v11034_v2  ;;  %v543_v54 = vld [vmem:[%s11291_s20 + $0xd0] sm:$0xff]  ;;  %v544_v55 = vld [vmem:[%s11291_s20 + $0xd8] sm:$0xff] }
  0x2a   : > { %491 = vst.msk [vmem:[#allocation2 + $0x190] sm:$0x3] %vm442_vm2, %v11034_v2  ;;  %494 = vst.msk [vmem:[#allocation2 + $0x1a8] sm:$0x3] %vm442_vm2, %v11034_v2  ;;  %v545_v57 = vld [vmem:[%s11291_s20 + $0xe0] sm:$0xff]  ;;  %v546_v58 = vld [vmem:[%s11291_s20 + $0xe8] sm:$0xff] }
  0x2b   : > { %492 = vst.msk [vmem:[#allocation2 + $0x198] sm:$0xff] %vm439_vm1, %v11034_v2  ;;  %493 = vst.msk [vmem:[#allocation2 + $0x1a0] sm:$0xff] %vm439_vm1, %v11034_v2 }
  0x2c   : > { %551 = vst.msk [vmem:[#allocation2 + $0x19] sm:$0xff] %vm550_vm3, %v517_v4  ;;  %552 = vst.msk [vmem:[#allocation2 + $0x21] sm:$0xff] %vm550_vm3, %v518_v5 }
  0x2d   : > { %553 = vst.msk [vmem:[#allocation2 + $0x31] sm:$0xff] %vm550_vm3, %v519_v6  ;;  %554 = vst.msk [vmem:[#allocation2 + $0x39] sm:$0xff] %vm550_vm3, %v520_v9 }
  0x2e   : > { %555 = vst.msk [vmem:[#allocation2 + $0x49] sm:$0xff] %vm550_vm3, %v521_v11  ;;  %556 = vst.msk [vmem:[#allocation2 + $0x51] sm:$0xff] %vm550_vm3, %v522_v12  ;;  %v583_v12 = vld [vmem:[#allocation2] sm:$0xff] }
  0x2f   : > { %557 = vst.msk [vmem:[#allocation2 + $0x61] sm:$0xff] %vm550_vm3, %v523_v13  ;;  %558 = vst.msk [vmem:[#allocation2 + $0x69] sm:$0xff] %vm550_vm3, %v524_v14  ;;  %v584_v13 = vld [vmem:[#allocation2 + $0x8] sm:$0xff] }
  0x30   : > { %559 = vst.msk [vmem:[#allocation2 + $0x79] sm:$0xff] %vm550_vm3, %v525_v15  ;;  %560 = vst.msk [vmem:[#allocation2 + $0x81] sm:$0xff] %vm550_vm3, %v526_v16 }
  0x31   : > { %561 = vst.msk [vmem:[#allocation2 + $0x91] sm:$0xff] %vm550_vm3, %v527_v17  ;;  %562 = vst.msk [vmem:[#allocation2 + $0x99] sm:$0xff] %vm550_vm3, %v528_v18  ;;  %v615_v17 = vpack.c.bf16 %v584_v13, %v583_v12  ;;  %v548_v12 = vld [vmem:[%s11291_s20 + $0xf8] sm:$0xff] }
  0x32   : > { %563 = vst.msk [vmem:[#allocation2 + $0xa9] sm:$0xff] %vm550_vm3, %v529_v19  ;;  %564 = vst.msk [vmem:[#allocation2 + $0xb1] sm:$0xff] %vm550_vm3, %v530_v20 }
  0x33   : > { %565 = vst.msk [vmem:[#allocation2 + $0xc1] sm:$0xff] %vm550_vm3, %v531_v21  ;;  %566 = vst.msk [vmem:[#allocation2 + $0xc9] sm:$0xff] %vm550_vm3, %v532_v22  ;;  %v634_v29 = vld [vmem:[#allocation2 + $0x19] sm:$0xff]  ;;  %v635_v30 = vld [vmem:[#allocation2 + $0x21] sm:$0xff] }
  0x34   : > { %567 = vst.msk [vmem:[#allocation2 + $0xd9] sm:$0xff] %vm550_vm3, %v533_v23  ;;  %568 = vst.msk [vmem:[#allocation2 + $0xe1] sm:$0xff] %vm550_vm3, %v534_v24  ;;  %v636_v31 = vld [vmem:[#allocation2 + $0x31] sm:$0xff]  ;;  %v11338_v32 = vpack.c.bf16 %v635_v30, %v634_v29  ;;  %v637_v34 = vld [vmem:[#allocation2 + $0x39] sm:$0xff]  ;;  %v1206_v24 = vsel %vm730_vm0, %v11350_v38, 0 }
  0x35   : > { %569 = vst.msk [vmem:[#allocation2 + $0xf1] sm:$0xff] %vm550_vm3, %v535_v25  ;;  %570 = vst.msk [vmem:[#allocation2 + $0xf9] sm:$0xff] %vm550_vm3, %v536_v26  ;;  %v11343_v37 = vpack.c.bf16 %v637_v34, %v636_v31  ;;  %v638_v39 = vld [vmem:[#allocation2 + $0x49] sm:$0xff]  ;;  %v639_v40 = vld [vmem:[#allocation2 + $0x51] sm:$0xff] }
  0x36   : > { %571 = vst.msk [vmem:[#allocation2 + $0x109] sm:$0xff] %vm550_vm3, %v537_v27  ;;  %572 = vst.msk [vmem:[#allocation2 + $0x111] sm:$0xff] %vm550_vm3, %v538_v28  ;;  %9427 = vmatmul.mubr.msk.bf16.vlgmr.msra.gmra.mrb[0].mxu0 %vm550_vm3, %v11338_v32  ;;  %v640_v41 = vld [vmem:[#allocation2 + $0x61] sm:$0xff]  ;;  %v641_v42 = vld [vmem:[#allocation2 + $0x69] sm:$0xff]  ;;  %v11358_v43 = vpack.c.bf16 %v639_v40, %v638_v39 }
  0x37   : > { %573 = vst.msk [vmem:[#allocation2 + $0x121] sm:$0xff] %vm550_vm3, %v539_v35  ;;  %574 = vst.msk [vmem:[#allocation2 + $0x129] sm:$0xff] %vm550_vm3, %v540_v36  ;;  %9459 = vmatpush3.bf16.msra.mxu0 %v944_v33  ;;  %9430 = vmatprep.mubr.msk.bf16.mxu0 %vm550_vm3, %v11343_v37  ;;  %v11360_v44 = vpack.c.bf16 %v641_v42, %v640_v41  ;;  %v642_v47 = vld [vmem:[#allocation2 + $0x79] sm:$0xff]  ;;  %v643_v48 = vld [vmem:[#allocation2 + $0x81] sm:$0xff] }
  0x38   : > { %10869 = vmatprep.subr.msk.bf16.mxu0 %vm730_vm0, %v11350_v38  ;;  %575 = vst.msk [vmem:[#allocation2 + $0x139] sm:$0xff] %vm550_vm3, %v541_v45  ;;  %576 = vst.msk [vmem:[#allocation2 + $0x141] sm:$0xff] %vm550_vm3, %v542_v46  ;;  %v644_v49 = vld [vmem:[#allocation2 + $0x91] sm:$0xff]  ;;  %v645_v50 = vld [vmem:[#allocation2 + $0x99] sm:$0xff]  ;;  %v11370_v51 = vpack.c.bf16 %v643_v48, %v642_v47 }
  0x39   : > { %v11372_v52 = vpack.c.bf16 %v645_v50, %v644_v49  ;;  %v646_v53 = vld [vmem:[#allocation2 + $0xa9] sm:$0xff]  ;;  %v647_v56 = vld [vmem:[#allocation2 + $0xb1] sm:$0xff]  ;;  %577 = vst.msk [vmem:[#allocation2 + $0x151] sm:$0xff] %vm550_vm3, %v543_v54  ;;  %578 = vst.msk [vmem:[#allocation2 + $0x159] sm:$0xff] %vm550_vm3, %v544_v55 }
  0x3a   : > { %v648_v59 = vld [vmem:[#allocation2 + $0xc1] sm:$0xff]  ;;  %v649_v60 = vld [vmem:[#allocation2 + $0xc9] sm:$0xff]  ;;  %579 = vst.msk [vmem:[#allocation2 + $0x169] sm:$0xff] %vm550_vm3, %v545_v57  ;;  %580 = vst.msk [vmem:[#allocation2 + $0x171] sm:$0xff] %vm550_vm3, %v546_v58  ;;  %v11386_v61 = vpack.c.bf16 %v647_v56, %v646_v53 }
  0x3b   : > { %v11388_v62 = vpack.c.bf16 %v649_v60, %v648_v59  ;;  %v650_v63 = vld [vmem:[#allocation2 + $0xd9] sm:$0xff]  ;;  %v651_v0 = vld [vmem:[#allocation2 + $0xe1] sm:$0xff]  ;;  %v587_v20 = vld [vmem:[#allocation2 + $0x30] sm:$0xff]  ;;  %582 = vst.msk [vmem:[#allocation2 + $0x189] sm:$0xff] %vm550_vm3, %v548_v12 }
  0x3c   : > { %v652_v1 = vld [vmem:[#allocation2 + $0xf1] sm:$0xff]  ;;  %v653_v3 = vld [vmem:[#allocation2 + $0xf9] sm:$0xff]  ;;  %v11394_v4 = vpack.c.bf16 %v651_v0, %v650_v63  ;;  %v11424_v25 = vld [vmem:[%s12999_s1 + $0x6] sm:$0x3]  ;;  %501 = vst.msk [vmem:[#allocation3 + $0x20] sm:$0xff] %vm495_vm5, %v11034_v2 }
  0x3d   : > { %v11396_v5 = vpack.c.bf16 %v653_v3, %v652_v1  ;;  %v654_v6 = vld [vmem:[#allocation2 + $0x109] sm:$0xff]  ;;  %v655_v7 = vld [vmem:[#allocation2 + $0x111] sm:$0xff]  ;;  %v586_v19 = vld [vmem:[#allocation2 + $0x20] sm:$0xff]  ;;  %502 = vst.msk [vmem:[#allocation3 + $0x28] sm:$0x3] %vm497_vm6, %v11034_v2 }
  0x3e   : > { %9431 = vmatmul.mubr.msk.bf16.gmra.mrb[4].mxu0 %vm550_vm3, %v11358_v43  ;;  %v656_v8 = vld [vmem:[#allocation2 + $0x121] sm:$0xff]  ;;  %v657_v9 = vld [vmem:[#allocation2 + $0x129] sm:$0xff]  ;;  %v11402_v10 = vpack.c.bf16 %v655_v7, %v654_v6  ;;  %v585_v18 = vld [vmem:[#allocation2 + $0x18] sm:$0xff]  ;;  %496 = vst.msk [vmem:[#allocation3] sm:$0xff] %vm495_vm5, %v11034_v2 }
  0x3f   : > { %9434 = vmatprep.mubr.msk.bf16.mxu0 %vm550_vm3, %v11360_v44  ;;  %v11404_v11 = vpack.c.bf16 %v657_v9, %v656_v8  ;;  %v658_v14 = vld [vmem:[#allocation2 + $0x139] sm:$0xff]  ;;  %v659_v15 = vld [vmem:[#allocation2 + $0x141] sm:$0xff]  ;;  %v11415_v22 = vpack.c.bf16 %v586_v19, %v585_v18  ;;  %v590_v27 = vld [vmem:[#allocation2 + $0x50] sm:$0xff]  ;;  %498 = vst.msk [vmem:[#allocation3 + $0x8] sm:$0x3] %vm497_vm6, %v11034_v2 }
  0x40   : > { %v11410_v16 = vpack.c.bf16 %v659_v15, %v658_v14  ;;  %v588_v21 = vld [vmem:[#allocation2 + $0x38] sm:$0xff]  ;;  %v589_v26 = vld [vmem:[#allocation2 + $0x48] sm:$0xff]  ;;  %v591_v28 = vld [vmem:[#allocation2 + $0x60] sm:$0xff]  ;;  %499 = vst.msk [vmem:[#allocation3 + $0x10] sm:$0xff] %vm495_vm5, %v11034_v2 }
  0x41   : > { %v11417_v23 = vpack.c.bf16 %v588_v21, %v587_v20  ;;  %v592_v29 = vld [vmem:[#allocation2 + $0x68] sm:$0xff]  ;;  %v11432_v30 = vpack.c.bf16 %v590_v27, %v589_v26  ;;  %v593_v33 = vld [vmem:[#allocation2 + $0x78] sm:$0xff]  ;;  %v594_v34 = vld [vmem:[#allocation2 + $0x80] sm:$0xff]  ;;  %500 = vst.msk [vmem:[#allocation3 + $0x18] sm:$0x3] %vm497_vm6, %v11034_v2 }
  0x42   : > { %v11434_v31 = vpack.c.bf16 %v592_v29, %v591_v28  ;;  %v595_v35 = vld [vmem:[#allocation2 + $0x90] sm:$0xff]  ;;  %v596_v36 = vld [vmem:[#allocation2 + $0x98] sm:$0xff]  ;;  %v11440_v38 = vpack.c.bf16 %v594_v34, %v593_v33  ;;  %v597_v40 = vld [vmem:[#allocation2 + $0xa8] sm:$0xff]  ;;  %v1500_v29 = vsel %vm730_vm0, %v11424_v25, 0  ;;  %503 = vst.msk [vmem:[#allocation3 + $0x30] sm:$0xff] %vm495_vm5, %v11034_v2 }
  0x43   : > { %v11442_v39 = vpack.c.bf16 %v596_v36, %v595_v35  ;;  %v598_v41 = vld [vmem:[#allocation2 + $0xb0] sm:$0xff]  ;;  %v599_v42 = vld [vmem:[#allocation2 + $0xc0] sm:$0xff]  ;;  %v600_v45 = vld [vmem:[#allocation2 + $0xc8] sm:$0xff]  ;;  %504 = vst.msk [vmem:[#allocation3 + $0x38] sm:$0x3] %vm497_vm6, %v11034_v2 }
  0x44   : > { %v11448_v46 = vpack.c.bf16 %v598_v41, %v597_v40  ;;  %v11450_v47 = vpack.c.bf16 %v600_v45, %v599_v42  ;;  %v601_v48 = vld [vmem:[#allocation2 + $0xd8] sm:$0xff]  ;;  %v602_v49 = vld [vmem:[#allocation2 + $0xe0] sm:$0xff]  ;;  %v603_v50 = vld [vmem:[#allocation2 + $0xf0] sm:$0xff]  ;;  %505 = vst.msk [vmem:[#allocation3 + $0x40] sm:$0xff] %vm495_vm5, %v11034_v2 }
  0x45   : > { %v604_v53 = vld [vmem:[#allocation2 + $0xf8] sm:$0xff]  ;;  %v11456_v54 = vpack.c.bf16 %v602_v49, %v601_v48  ;;  %v605_v56 = vld [vmem:[#allocation2 + $0x108] sm:$0xff]  ;;  %v606_v57 = vld [vmem:[#allocation2 + $0x110] sm:$0xff]  ;;  %506 = vst.msk [vmem:[#allocation3 + $0x48] sm:$0x3] %vm497_vm6, %v11034_v2 }
  0x46   : > { %9435 = vmatmul.mubr.msk.bf16.gmra.mrb[8].mxu0 %vm550_vm3, %v11370_v51  ;;  %v11458_v55 = vpack.c.bf16 %v604_v53, %v603_v50  ;;  %v607_v58 = vld [vmem:[#allocation2 + $0x120] sm:$0xff]  ;;  %v608_v59 = vld [vmem:[#allocation2 + $0x128] sm:$0xff]  ;;  %v11464_v60 = vpack.c.bf16 %v606_v57, %v605_v56  ;;  %v609_v0 = vld [vmem:[#allocation2 + $0x138] sm:$0xff]  ;;  %507 = vst.msk [vmem:[#allocation3 + $0x50] sm:$0xff] %vm495_vm5, %v11034_v2 }
  0x47   : > { %9438 = vmatprep.mubr.msk.bf16.mxu0 %vm550_vm3, %v11372_v52  ;;  %v11466_v63 = vpack.c.bf16 %v608_v59, %v607_v58  ;;  %v610_v1 = vld [vmem:[#allocation2 + $0x140] sm:$0xff]  ;;  %v611_v3 = vld [vmem:[#allocation2 + $0x150] sm:$0xff]  ;;  %v612_v6 = vld [vmem:[#allocation2 + $0x158] sm:$0xff]  ;;  %508 = vst.msk [vmem:[#allocation3 + $0x58] sm:$0x3] %vm497_vm6, %v11034_v2 }
  0x48   : > { %v11472_v7 = vpack.c.bf16 %v610_v1, %v609_v0  ;;  %v11474_v8 = vpack.c.bf16 %v612_v6, %v611_v3  ;;  %v547_v9 = vld [vmem:[%s11291_s20 + $0xf0] sm:$0xff]  ;;  %v613_v13 = vld [vmem:[#allocation2 + $0x168] sm:$0xff]  ;;  %v1109_v20 = vld [vmem:[#allocation2 + $0x1a] sm:$0xff]  ;;  %509 = vst.msk [vmem:[#allocation3 + $0x60] sm:$0xff] %vm495_vm5, %v11034_v2 }
  0x49   : > { %581 = vst.msk [vmem:[#allocation2 + $0x181] sm:$0xff] %vm550_vm3, %v547_v9  ;;  %v614_v14 = vld [vmem:[#allocation2 + $0x170] sm:$0xff]  ;;  %v1107_v15 = vld [vmem:[#allocation2 + $0x2] sm:$0xff]  ;;  %v1112_v26 = vld [vmem:[#allocation2 + $0x3a] sm:$0xff] }
  0x4a   : > { %v11484_v18 = vpack.c.bf16 %v614_v14, %v613_v13  ;;  %v1110_v21 = vld [vmem:[#allocation2 + $0x22] sm:$0xff]  ;;  %v1113_v34 = vld [vmem:[#allocation2 + $0x4a] sm:$0xff]  ;;  %v1114_v35 = vld [vmem:[#allocation2 + $0x52] sm:$0xff]  ;;  %510 = vst.msk [vmem:[#allocation3 + $0x68] sm:$0x3] %vm497_vm6, %v11034_v2 }
  0x4b   : > { %v11489_v27 = vpack.c.bf16 %v1110_v21, %v1109_v20  ;;  %v11498_v33 = vld [vmem:[%s12999_s1 + $0x8] sm:$0x3]  ;;  %v1116_v40 = vld [vmem:[#allocation2 + $0x6a] sm:$0xff]  ;;  %v1117_v42 = vld [vmem:[#allocation2 + $0x7a] sm:$0xff]  ;;  %511 = vst.msk [vmem:[#allocation3 + $0x70] sm:$0xff] %vm495_vm5, %v11034_v2 }
  0x4c   : > { %v1115_v36 = vld [vmem:[#allocation2 + $0x62] sm:$0xff]  ;;  %v1119_v48 = vld [vmem:[#allocation2 + $0x92] sm:$0xff]  ;;  %v1120_v49 = vld [vmem:[#allocation2 + $0x9a] sm:$0xff]  ;;  %512 = vst.msk [vmem:[#allocation3 + $0x78] sm:$0x3] %vm497_vm6, %v11034_v2 }
  0x4d   : > { %v11508_v41 = vpack.c.bf16 %v1116_v40, %v1115_v36  ;;  %v1118_v45 = vld [vmem:[#allocation2 + $0x82] sm:$0xff]  ;;  %v11516_v53 = vpack.c.bf16 %v1120_v49, %v1119_v48  ;;  %v1121_v56 = vld [vmem:[#allocation2 + $0xaa] sm:$0xff]  ;;  %v1122_v57 = vld [vmem:[#allocation2 + $0xb2] sm:$0xff]  ;;  %513 = vst.msk [vmem:[#allocation3 + $0x80] sm:$0xff] %vm495_vm5, %v11034_v2 }
  0x4e   : > { %9439 = vmatmul.mubr.msk.bf16.gmra.mrb[12].mxu0 %vm550_vm3, %v11386_v61  ;;  %v11514_v50 = vpack.c.bf16 %v1118_v45, %v1117_v42  ;;  %v1123_v58 = vld [vmem:[#allocation2 + $0xc2] sm:$0xff]  ;;  %v1124_v59 = vld [vmem:[#allocation2 + $0xca] sm:$0xff]  ;;  %v11522_v0 = vpack.c.bf16 %v1122_v57, %v1121_v56  ;;  %v1125_v3 = vld [vmem:[#allocation2 + $0xda] sm:$0xff]  ;;  %514 = vst.msk [vmem:[#allocation3 + $0x88] sm:$0x3] %vm497_vm6, %v11034_v2 }
  0x4f   : > { %9442 = vmatprep.mubr.msk.bf16.mxu0 %vm550_vm3, %v11388_v62  ;;  %v11524_v1 = vpack.c.bf16 %v1124_v59, %v1123_v58  ;;  %v1126_v6 = vld [vmem:[#allocation2 + $0xe2] sm:$0xff]  ;;  %v1127_v9 = vld [vmem:[#allocation2 + $0xf2] sm:$0xff]  ;;  %v1128_v12 = vld [vmem:[#allocation2 + $0xfa] sm:$0xff]  ;;  %515 = vst.msk [vmem:[#allocation3 + $0x90] sm:$0xff] %vm495_vm5, %v11034_v2 }
  0x50   : > { %v11530_v13 = vpack.c.bf16 %v1126_v6, %v1125_v3  ;;  %v11532_v14 = vpack.c.bf16 %v1128_v12, %v1127_v9  ;;  %v1132_v20 = vld [vmem:[#allocation2 + $0x12a] sm:$0xff]  ;;  %v1135_v36 = vld [vmem:[#allocation2 + $0x152] sm:$0xff]  ;;  %v1136_v40 = vld [vmem:[#allocation2 + $0x15a] sm:$0xff]  ;;  %v1794_v6 = vsel %vm730_vm0, %v11498_v33, 0  ;;  %516 = vst.msk [vmem:[#allocation3 + $0x98] sm:$0x3] %vm497_vm6, %v11034_v2 }
  0x51   : > { %v11552_v48 = vpack.c.bf16 %v1136_v40, %v1135_v36  ;;  %v1723_v49 = vld [vmem:[#allocation2 + $0x169] sm:$0xff]  ;;  %v1724_v56 = vld [vmem:[#allocation2 + $0x171] sm:$0xff] }
  0x52   : > { %v1137_v57 = vld [vmem:[#allocation2 + $0x16a] sm:$0xff]  ;;  %v1138_v58 = vld [vmem:[#allocation2 + $0x172] sm:$0xff]  ;;  %v11558_v59 = vpack.c.bf16 %v1724_v56, %v1723_v49 }
  0x53   : > { %v11562_v3 = vpack.c.bf16 %v1138_v58, %v1137_v57  ;;  %v8637_v9 = vld [vmem:[%s12999_s1 + $0xa] sm:$0x3]  ;;  %v8688_v40 = vld [vmem:[%s12999_s1 + $0x10] sm:$0x3] }
  0x56   : > { %9443 = vmatmul.mubr.msk.bf16.gmra.mrb[16].mxu0 %vm550_vm3, %v11394_v4 }
  0x57   : > { %9446 = vmatprep.mubr.msk.bf16.mxu0 %vm550_vm3, %v11396_v5 }
  0x5e   : > { %9447 = vmatmul.mubr.msk.bf16.gmra.mrb[20].mxu0 %vm550_vm3, %v11402_v10 }
  0x5f   : > { %9450 = vmatprep.mubr.msk.bf16.mxu0 %vm550_vm3, %v11404_v11 }
  0x66   : > { %9451 = vmatmul.mubr.msk.bf16.gmra.mrb[24].mxu0 %vm550_vm3, %v11410_v16 }
  0x67   : > { %9460 = vmatprep.mubr.msk.bf16.mxu0 %vm550_vm3, %v615_v17  ;;  %v1108_v17 = vld [vmem:[#allocation2 + $0xa] sm:$0xff] }
  0x68   : > { %v1139_v19 = vpack.c.bf16 %v1108_v17, %v1107_v15  ;;  %v1129_v15 = vld [vmem:[#allocation2 + $0x10a] sm:$0xff]  ;;  %v1130_v17 = vld [vmem:[#allocation2 + $0x112] sm:$0xff] }
  0x69   : > { %v11538_v21 = vpack.c.bf16 %v1130_v17, %v1129_v15  ;;  %v2088_v15 = vsel %vm730_vm0, %v8637_v9, 0  ;;  %v8654_v17 = vld [vmem:[%s12999_s1 + $0xc] sm:$0x3] }
  0x6e   : > { %9461 = vmatmul.mubr.msk.bf16.vlgmr.msra.gmra.mrb[0].mxu0 %vm550_vm3, %v11415_v22 }
  0x6f   : > { %9493 = vmatpush3.bf16.msra.mxu0 %v1206_v24  ;;  %9464 = vmatprep.mubr.msk.bf16.mxu0 %vm550_vm3, %v11417_v23  ;;  %v1111_v24 = vld [vmem:[#allocation2 + $0x32] sm:$0xff] }
  0x70   : > { %10870 = vmatprep.subr.msk.bf16.mxu0 %vm730_vm0, %v11424_v25  ;;  %v11491_v28 = vpack.c.bf16 %v1112_v26, %v1111_v24  ;;  %v11506_v25 = vpack.c.bf16 %v1114_v35, %v1113_v34  ;;  %v1133_v26 = vld [vmem:[#allocation2 + $0x13a] sm:$0xff]  ;;  %v1721_v34 = vld [vmem:[#allocation2 + $0x151] sm:$0xff] }
  0x71   : > { %v1722_v35 = vld [vmem:[#allocation2 + $0x159] sm:$0xff] }
  0x72   : > { %v11546_v42 = vpack.c.bf16 %v1722_v35, %v1721_v34  ;;  %v2020_v34 = vld [vmem:[#allocation2 + $0x18a] sm:$0xff] }
  0x74   : > { %9454 = vmatprep.mubr.msk.bf16.mxu1 %vm550_vm3, %v11546_v42 }
  0x75   : > { %9455 = vmatmul.mubr.msk.bf16.vlgmr.msra.gmra.mrb[0].mxu1 %vm550_vm3, %v11558_v59 }
  0x76   : > { %9465 = vmatmul.mubr.msk.bf16.gmra.mrb[4].mxu0 %vm550_vm3, %v11432_v30 }
  0x77   : > { %9468 = vmatprep.mubr.msk.bf16.mxu0 %vm550_vm3, %v11434_v31 }
  0x7e   : > { %9469 = vmatmul.mubr.msk.bf16.gmra.mrb[8].mxu0 %vm550_vm3, %v11440_v38 }
  0x7f   : > { %9472 = vmatprep.mubr.msk.bf16.mxu0 %vm550_vm3, %v11442_v39 }
  0x86   : > { %9473 = vmatmul.mubr.msk.bf16.gmra.mrb[12].mxu0 %vm550_vm3, %v11448_v46 }
  0x87   : > { %9476 = vmatprep.mubr.msk.bf16.mxu0 %vm550_vm3, %v11450_v47 }
  0x8e   : > { %9477 = vmatmul.mubr.msk.bf16.gmra.mrb[16].mxu0 %vm550_vm3, %v11456_v54 }
  0x8f   : > { %9480 = vmatprep.mubr.msk.bf16.mxu0 %vm550_vm3, %v11458_v55 }
  0x96   : > { %9481 = vmatmul.mubr.msk.bf16.gmra.mrb[20].mxu0 %vm550_vm3, %v11464_v60 }
  0x97   : > { %9484 = vmatprep.mubr.msk.bf16.mxu0 %vm550_vm3, %v11466_v63 }
  0x9e   : > { %9485 = vmatmul.mubr.msk.bf16.gmra.mrb[24].mxu0 %vm550_vm3, %v11472_v7 }
  0x9f   : > { %9488 = vmatprep.mubr.msk.bf16.mxu0 %vm550_vm3, %v11474_v8 }
  0xa6   : > { %9489 = vmatmul.mubr.msk.bf16.gmra.mrb[28].mxu0 %vm550_vm3, %v11484_v18 }
  0xa7   : > { %9494 = vmatprep.mubr.msk.bf16.mxu0 %vm550_vm3, %v1139_v19  ;;  %v1131_v19 = vld [vmem:[#allocation2 + $0x122] sm:$0xff] }
  0xa8   : > { %v11540_v24 = vpack.c.bf16 %v1132_v20, %v1131_v19  ;;  %v1726_v19 = vld [vmem:[#allocation2 + $0x189] sm:$0xff] }
  0xae   : > { %9495 = vmatmul.mubr.msk.bf16.vlgmr.msra.gmra.mrb[0].mxu0 %vm550_vm3, %v11489_v27 }
  0xaf   : > { %9527 = vmatpush3.bf16.msra.mxu0 %v1500_v29  ;;  %9498 = vmatprep.mubr.msk.bf16.mxu0 %vm550_vm3, %v11491_v28  ;;  %v1134_v29 = vld [vmem:[#allocation2 + $0x142] sm:$0xff] }
  0xb0   : > { %10871 = vmatprep.subr.msk.bf16.mxu0 %vm730_vm0, %v11498_v33  ;;  %v11548_v45 = vpack.c.bf16 %v1134_v29, %v1133_v26  ;;  %v1432_v33 = vld [vmem:[#allocation2 + $0x188] sm:$0xff]  ;;  %v2383_v26 = vsel %vm730_vm0, %v8654_v17, 0 }
  0xb1   : > { %v8671_v29 = vld [vmem:[%s12999_s1 + $0xe] sm:$0x3] }
  0xb2   : > { %v2677_v36 = vsel %vm730_vm0, %v8671_v29, 0 }
  0xb6   : > { %9499 = vmatmul.mubr.msk.bf16.gmra.mrb[4].mxu0 %vm550_vm3, %v11506_v25 }
  0xb7   : > { %9502 = vmatprep.mubr.msk.bf16.mxu0 %vm550_vm3, %v11508_v41 }
  0xbe   : > { %9503 = vmatmul.mubr.msk.bf16.gmra.mrb[8].mxu0 %vm550_vm3, %v11514_v50 }
  0xbf   : > { %9506 = vmatprep.mubr.msk.bf16.mxu0 %vm550_vm3, %v11516_v53 }
  0xc6   : > { %9507 = vmatmul.mubr.msk.bf16.gmra.mrb[12].mxu0 %vm550_vm3, %v11522_v0 }
  0xc7   : > { %9510 = vmatprep.mubr.msk.bf16.mxu0 %vm550_vm3, %v11524_v1 }
  0xce   : > { %9511 = vmatmul.mubr.msk.bf16.gmra.mrb[16].mxu0 %vm550_vm3, %v11530_v13 }
  0xcf   : > { %9514 = vmatprep.mubr.msk.bf16.mxu0 %vm550_vm3, %v11532_v14 }
  0xd6   : > { %9515 = vmatmul.mubr.msk.bf16.gmra.mrb[20].mxu0 %vm550_vm3, %v11538_v21 }
  0xd7   : > { %9518 = vmatprep.mubr.msk.bf16.mxu0 %vm550_vm3, %v11540_v24 }
  0xde   : > { %9519 = vmatmul.mubr.msk.bf16.gmra.mrb[24].mxu0 %vm550_vm3, %v11548_v45 }
  0xdf   : > { %9522 = vmatprep.mubr.msk.bf16.mxu0 %vm550_vm3, %v11552_v48 }
  0xe6   : > { %9523 = vmatmul.mubr.msk.bf16.gmra.mrb[28].mxu0 %vm550_vm3, %v11562_v3 }
  0xe7   : > { %9528 = vmatprep.mubr.msk.bf16.mxu0 %vm550_vm3, %v11415_v22  ;;  %v1431_v22 = vld [vmem:[#allocation2 + $0x180] sm:$0xff] }
  0xe8   : > { %v11602_v12 = vpack.c.bf16 %v1432_v33, %v1431_v22 }
  0xee   : > { %9529 = vmatmul.mubr.msk.bf16.vlgmr.msra.gmra.mrb[0].mxu0 %vm550_vm3, %v11417_v23 }
  0xef   : > { %9561 = vmatpush3.bf16.msra.mxu0 %v1794_v6  ;;  %9532 = vmatprep.mubr.msk.bf16.mxu0 %vm550_vm3, %v11432_v30 }
  0xf0   : > { %10872 = vmatprep.subr.msk.bf16.mxu0 %vm730_vm0, %v8637_v9 }
  0xf6   : > { %9533 = vmatmul.mubr.msk.bf16.gmra.mrb[4].mxu0 %vm550_vm3, %v11434_v31 }
  0xf7   : > { %9536 = vmatprep.mubr.msk.bf16.mxu0 %vm550_vm3, %v11440_v38 }
  0xfe   : > { %9537 = vmatmul.mubr.msk.bf16.gmra.mrb[8].mxu0 %vm550_vm3, %v11442_v39 }
  0xff   : > { %9540 = vmatprep.mubr.msk.bf16.mxu0 %vm550_vm3, %v11448_v46 }
 0x106   : > { %9541 = vmatmul.mubr.msk.bf16.gmra.mrb[12].mxu0 %vm550_vm3, %v11450_v47 }
 0x107   : > { %9544 = vmatprep.mubr.msk.bf16.mxu0 %vm550_vm3, %v11456_v54 }
 0x10e   : > { %9545 = vmatmul.mubr.msk.bf16.gmra.mrb[16].mxu0 %vm550_vm3, %v11458_v55 }
 0x10f   : > { %9548 = vmatprep.mubr.msk.bf16.mxu0 %vm550_vm3, %v11464_v60 }
 0x116   : > { %9549 = vmatmul.mubr.msk.bf16.gmra.mrb[20].mxu0 %vm550_vm3, %v11466_v63 }
 0x117   : > { %9552 = vmatprep.mubr.msk.bf16.mxu0 %vm550_vm3, %v11472_v7 }
 0x11e   : > { %9553 = vmatmul.mubr.msk.bf16.gmra.mrb[24].mxu0 %vm550_vm3, %v11474_v8 }
 0x11f   : > { %9556 = vmatprep.mubr.msk.bf16.mxu0 %vm550_vm3, %v11484_v18 }
 0x126   : > { %9557 = vmatmul.mubr.msk.bf16.gmra.mrb[28].mxu0 %vm550_vm3, %v11602_v12 }
 0x127   : > { %9562 = vmatprep.mubr.msk.bf16.mxu0 %vm550_vm3, %v11338_v32  ;;  %v1725_v32 = vld [vmem:[#allocation2 + $0x181] sm:$0xff] }
 0x128   : > { %v11641_v20 = vpack.c.bf16 %v1726_v19, %v1725_v32 }
 0x12e   : > { %9563 = vmatmul.mubr.msk.bf16.vlgmr.msra.gmra.mrb[0].mxu0 %vm550_vm3, %v11343_v37 }
 0x12f   : > { %9595 = vmatpush3.bf16.msra.mxu0 %v2088_v15  ;;  %9566 = vmatprep.mubr.msk.bf16.mxu0 %vm550_vm3, %v11358_v43 }
 0x130   : > { %10873 = vmatprep.subr.msk.bf16.mxu0 %vm730_vm0, %v8654_v17 }
 0x136   : > { %9567 = vmatmul.mubr.msk.bf16.gmra.mrb[4].mxu0 %vm550_vm3, %v11360_v44 }
 0x137   : > { %9570 = vmatprep.mubr.msk.bf16.mxu0 %vm550_vm3, %v11370_v51 }
 0x13e   : > { %9571 = vmatmul.mubr.msk.bf16.gmra.mrb[8].mxu0 %vm550_vm3, %v11372_v52 }
 0x13f   : > { %9574 = vmatprep.mubr.msk.bf16.mxu0 %vm550_vm3, %v11386_v61 }
 0x146   : > { %9575 = vmatmul.mubr.msk.bf16.gmra.mrb[12].mxu0 %vm550_vm3, %v11388_v62 }
 0x147   : > { %9578 = vmatprep.mubr.msk.bf16.mxu0 %vm550_vm3, %v11394_v4 }
 0x14e   : > { %9579 = vmatmul.mubr.msk.bf16.gmra.mrb[16].mxu0 %vm550_vm3, %v11396_v5 }
 0x14f   : > { %9582 = vmatprep.mubr.msk.bf16.mxu0 %vm550_vm3, %v11402_v10 }
 0x156   : > { %9583 = vmatmul.mubr.msk.bf16.gmra.mrb[20].mxu0 %vm550_vm3, %v11404_v11 }
 0x157   : > { %9586 = vmatprep.mubr.msk.bf16.mxu0 %vm550_vm3, %v11410_v16 }
 0x15e   : > { %9587 = vmatmul.mubr.msk.bf16.gmra.mrb[24].mxu0 %vm550_vm3, %v11546_v42 }
 0x15f   : > { %9590 = vmatprep.mubr.msk.bf16.mxu0 %vm550_vm3, %v11558_v59 }
 0x166   : > { %9591 = vmatmul.mubr.msk.bf16.gmra.mrb[28].mxu0 %vm550_vm3, %v11641_v20 }
 0x167   : > { %9596 = vmatprep.mubr.msk.bf16.mxu0 %vm550_vm3, %v11489_v27  ;;  %v2019_v27 = vld [vmem:[#allocation2 + $0x182] sm:$0xff] }
 0x168   : > { %v2036_v35 = vpack.c.bf16 %v2020_v34, %v2019_v27 }
 0x16e   : > { %9597 = vmatmul.mubr.msk.bf16.vlgmr.msra.gmra.mrb[0].mxu0 %vm550_vm3, %v11491_v28 }
 0x16f   : > { %9629 = vmatpush3.bf16.msra.mxu0 %v2383_v26  ;;  %9600 = vmatprep.mubr.msk.bf16.mxu0 %vm550_vm3, %v11506_v25 }
 0x170   : > { %10874 = vmatprep.subr.msk.bf16.mxu0 %vm730_vm0, %v8671_v29 }
 0x176   : > { %9601 = vmatmul.mubr.msk.bf16.gmra.mrb[4].mxu0 %vm550_vm3, %v11508_v41 }
 0x177   : > { %9604 = vmatprep.mubr.msk.bf16.mxu0 %vm550_vm3, %v11514_v50 }
 0x17e   : > { %9605 = vmatmul.mubr.msk.bf16.gmra.mrb[8].mxu0 %vm550_vm3, %v11516_v53 }
 0x17f   : > { %9608 = vmatprep.mubr.msk.bf16.mxu0 %vm550_vm3, %v11522_v0 }
 0x186   : > { %9609 = vmatmul.mubr.msk.bf16.gmra.mrb[12].mxu0 %vm550_vm3, %v11524_v1 }
 0x187   : > { %9612 = vmatprep.mubr.msk.bf16.mxu0 %vm550_vm3, %v11530_v13 }
 0x18e   : > { %9613 = vmatmul.mubr.msk.bf16.gmra.mrb[16].mxu0 %vm550_vm3, %v11532_v14 }
 0x18f   : > { %9616 = vmatprep.mubr.msk.bf16.mxu0 %vm550_vm3, %v11538_v21 }
 0x196   : > { %9617 = vmatmul.mubr.msk.bf16.gmra.mrb[20].mxu0 %vm550_vm3, %v11540_v24 }
 0x197   : > { %9620 = vmatprep.mubr.msk.bf16.mxu0 %vm550_vm3, %v11548_v45 }
 0x19e   : > { %9621 = vmatmul.mubr.msk.bf16.gmra.mrb[24].mxu0 %vm550_vm3, %v11552_v48 }
 0x19f   : > { %9624 = vmatprep.mubr.msk.bf16.mxu0 %vm550_vm3, %v11562_v3 }
 0x1a6   : > { %9625 = vmatmul.mubr.msk.bf16.gmra.mrb[28].mxu0 %vm550_vm3, %v2036_v35 }
 0x1a7   : > { %9630 = vmatprep.mubr.msk.bf16.mxu0 %vm550_vm3, %v11417_v23  ;;  %v2314_v23 = vld [vmem:[#allocation2 + $0x198] sm:$0xff] }
 0x1ae   : > { %9631 = vmatmul.mubr.msk.bf16.vlgmr.msra.gmra.mrb[0].mxu0 %vm550_vm3, %v11432_v30  ;;  %v2315_v30 = vld [vmem:[#allocation2 + $0x1a0] sm:$0xff] }
 0x1af   : > { %9663 = vmatpush3.bf16.msra.mxu0 %v2677_v36  ;;  %9634 = vmatprep.mubr.msk.bf16.mxu0 %vm550_vm3, %v11434_v31  ;;  %v2331_v31 = vpack.c.bf16 %v2315_v30, %v2314_v23 }
 0x1b0   : > { %10875 = vmatprep.subr.msk.bf16.mxu0 %vm730_vm0, %v8688_v40 }
 0x1b6   : > { %9635 = vmatmul.mubr.msk.bf16.gmra.mrb[4].mxu0 %vm550_vm3, %v11440_v38  ;;  %v2971_v38 = vsel %vm730_vm0, %v8688_v40, 0 }
 0x1b7   : > { %9638 = vmatprep.mubr.msk.bf16.mxu0 %vm550_vm3, %v11442_v39  ;;  %v11789_v39 = vpop.f32.mrb[0].mxu1 }
 0x1be   : > { %9639 = vmatmul.mubr.msk.bf16.gmra.mrb[8].mxu0 %vm550_vm3, %v11448_v46  ;;  %v11791_v46 = vpop.f32.mrb[1].mxu1 }
 0x1bf   : > { %9642 = vmatprep.mubr.msk.bf16.mxu0 %vm550_vm3, %v11450_v47  ;;  %v11793_v47 = vpop.f32.mrb[2].mxu1 }
 0x1c6   : > { %9643 = vmatmul.mubr.msk.bf16.gmra.mrb[12].mxu0 %vm550_vm3, %v11456_v54  ;;  %v11795_v54 = vpop.f32.mrb[3].mxu1 }
 0x1c7   : > { %9646 = vmatprep.mubr.msk.bf16.mxu0 %vm550_vm3, %v11458_v55  ;;  %v11800_v55 = vld [vmem:[%s12978_s2] ss:$0 sm:$0xff] }
 0x1ce   : > { %9647 = vmatmul.mubr.msk.bf16.gmra.mrb[16].mxu0 %vm550_vm3, %v11464_v60 }
 0x1cf   : > { %9650 = vmatprep.mubr.msk.bf16.mxu0 %vm550_vm3, %v11466_v63 }
 0x1d6   : > { %9651 = vmatmul.mubr.msk.bf16.gmra.mrb[20].mxu0 %vm550_vm3, %v11472_v7 }
 0x1d7   : > { %9654 = vmatprep.mubr.msk.bf16.mxu0 %vm550_vm3, %v11474_v8 }
 0x1de   : > { %9655 = vmatmul.mubr.msk.bf16.gmra.mrb[24].mxu0 %vm550_vm3, %v11484_v18 }
 0x1df   : > { %9658 = vmatprep.mubr.msk.bf16.mxu0 %vm550_vm3, %v11602_v12 }
 0x1e6   : > { %9659 = vmatmul.mubr.msk.bf16.gmra.mrb[28].mxu0 %vm550_vm3, %v2331_v31 }
 0x1e7   : > { %9664 = vmatprep.mubr.msk.bf16.mxu0 %vm550_vm3, %v11343_v37  ;;  %v2608_v37 = vld [vmem:[#allocation2 + $0x199] sm:$0xff] }
 0x1ee   : > { %9665 = vmatmul.mubr.msk.bf16.vlgmr.msra.gmra.mrb[0].mxu0 %vm550_vm3, %v11358_v43  ;;  %v2609_v43 = vld [vmem:[#allocation2 + $0x1a1] sm:$0xff] }
 0x1ef   : > { %9697 = vmatpush3.bf16.msra.mxu0 %v2971_v38  ;;  %9668 = vmatprep.mubr.msk.bf16.mxu0 %vm550_vm3, %v11360_v44  ;;  %v2625_v44 = vpack.c.bf16 %v2609_v43, %v2608_v37 }
 0x1f6   : > { %9669 = vmatmul.mubr.msk.bf16.gmra.mrb[4].mxu0 %vm550_vm3, %v11370_v51  ;;  %v2902_v51 = vld [vmem:[#allocation2 + $0x19a] sm:$0xff] }
 0x1f7   : > { %9672 = vmatprep.mubr.msk.bf16.mxu0 %vm550_vm3, %v11372_v52  ;;  %v2903_v52 = vld [vmem:[#allocation2 + $0x1a2] sm:$0xff] }
 0x1fe   : > { %9673 = vmatmul.mubr.msk.bf16.gmra.mrb[8].mxu0 %vm550_vm3, %v11386_v61  ;;  %v2919_v61 = vpack.c.bf16 %v2903_v52, %v2902_v51 }
 0x1ff   : > { %9676 = vmatprep.mubr.msk.bf16.mxu0 %vm550_vm3, %v11388_v62  ;;  %v8706_v62 = vld [vmem:[%s12979_s3 + $0x4] sm:$0xf] }
 0x200   : > { %10876 = vmatprep.subr.msk.bf16.mxu1 %vm3416_vm4, %v8706_v62 }
 0x206   : > { %9677 = vmatmul.mubr.msk.bf16.gmra.mrb[12].mxu0 %vm550_vm3, %v11394_v4  ;;  %v3418_v4 = vsel %vm3416_vm4, %v8706_v62, 0 }
 0x207   : > { %9680 = vmatprep.mubr.msk.bf16.mxu0 %vm550_vm3, %v11396_v5  ;;  %v3318_v5 = vld [vmem:[#allocation2 + $0x1] sm:$0xff]  ;;  %9731 = vmatpush3.bf16.msra.mxu1 %v3418_v4 }
 0x20e   : > { %9681 = vmatmul.mubr.msk.bf16.gmra.mrb[16].mxu0 %vm550_vm3, %v11402_v10  ;;  %v3319_v10 = vld [vmem:[#allocation2 + $0x9] sm:$0xff] }
 0x20f   : > { %9684 = vmatprep.mubr.msk.bf16.mxu0 %vm550_vm3, %v11404_v11  ;;  %v3350_v11 = vpack.c.bf16 %v3319_v10, %v3318_v5 }
 0x211   : > { %9732 = vmatprep.mubr.msk.bf16.mxu1 %vm439_vm1, %v3350_v11 }
 0x216   : > { %9685 = vmatmul.mubr.msk.bf16.gmra.mrb[20].mxu0 %vm550_vm3, %v11410_v16  ;;  %v3317_v16 = vld [vmem:[%s12979_s3] sm:$0xf] }
 0x217   : > { %9688 = vmatprep.mubr.msk.bf16.mxu0 %vm550_vm3, %v11546_v42  ;;  %10877 = vmatprep.subr.msk.bf16.mxu1 %vm3416_vm4, %v3317_v16  ;;  %v3630_v15 = vsel %vm3416_vm4, %v3317_v16, 0 }
 0x21e   : > { %9689 = vmatmul.mubr.msk.bf16.gmra.mrb[24].mxu0 %vm550_vm3, %v11558_v59 }
 0x21f   : > { %9692 = vmatprep.mubr.msk.bf16.mxu0 %vm550_vm3, %v11641_v20  ;;  %v11827_v20 = vld [vmem:[%s12979_s3 + $0x8] sm:$0xf] }
 0x226   : > { %9693 = vmatmul.mubr.msk.bf16.gmra.mrb[28].mxu0 %vm550_vm3, %v2625_v44 }
 0x227   : > { %9698 = vmatprep.mubr.msk.bf16.mxu0 %vm550_vm3, %v11491_v28 }
 0x22e   : > { %9699 = vmatmul.mubr.msk.bf16.vlgmr.msra.gmra.mrb[0].mxu0 %vm550_vm3, %v11506_v25 }
 0x22f   : > { %9702 = vmatprep.mubr.msk.bf16.mxu0 %vm550_vm3, %v11508_v41 }
 0x236   : > { %9703 = vmatmul.mubr.msk.bf16.gmra.mrb[4].mxu0 %vm550_vm3, %v11514_v50 }
 0x237   : > { %9706 = vmatprep.mubr.msk.bf16.mxu0 %vm550_vm3, %v11516_v53 }
 0x23e   : > { %9707 = vmatmul.mubr.msk.bf16.gmra.mrb[8].mxu0 %vm550_vm3, %v11522_v0 }
 0x23f   : > { %9710 = vmatprep.mubr.msk.bf16.mxu0 %vm550_vm3, %v11524_v1 }
 0x246   : > { %9711 = vmatmul.mubr.msk.bf16.gmra.mrb[12].mxu0 %vm550_vm3, %v11530_v13 }
 0x247   : > { %9714 = vmatprep.mubr.msk.bf16.mxu0 %vm550_vm3, %v11532_v14 }
 0x24e   : > { %9715 = vmatmul.mubr.msk.bf16.gmra.mrb[16].mxu0 %vm550_vm3, %v11538_v21 }
 0x24f   : > { %9718 = vmatprep.mubr.msk.bf16.mxu0 %vm550_vm3, %v11540_v24 }
 0x256   : > { %9719 = vmatmul.mubr.msk.bf16.gmra.mrb[20].mxu0 %vm550_vm3, %v11548_v45 }
 0x257   : > { %9722 = vmatprep.mubr.msk.bf16.mxu0 %vm550_vm3, %v11552_v48 }
 0x25e   : > { %9723 = vmatmul.mubr.msk.bf16.gmra.mrb[24].mxu0 %vm550_vm3, %v11562_v3 }
 0x25f   : > { %9726 = vmatprep.mubr.msk.bf16.mxu0 %vm550_vm3, %v2036_v35 }
 0x266   : > { %9727 = vmatmul.mubr.msk.bf16.gmra.mrb[28].mxu0 %vm550_vm3, %v2919_v61 }
 0x301   : > { %v9700_v60 = vpop.f32.mrb[0].mxu0 }
 0x302   : > { %v3175_v63 = vadd.f32 %v9700_v60, %v11800_v55  ;;  %v3007_v7 = vpop.f32.mrb[1].mxu0 }
 0x303   : > { %v3173_v8 = vadd.f32 %v11800_v55, %v3007_v7  ;;  %v9701_v18 = vpop.f32.mrb[2].mxu0 }
 0x304   : > { %v3207_v28 = vmax.f32 %v3175_v63, 0.0  ;;  %v3176_v25 = vadd.f32 %v9701_v18, %v11800_v55  ;;  %v3010_v41 = vpop.f32.mrb[3].mxu0 }
 0x305   : > { %v3205_v50 = vmax.f32 %v3173_v8, 0.0  ;;  %v3174_v53 = vadd.f32 %v11800_v55, %v3010_v41 }
 0x306   : > { %3239 = vst.msk [vmem:[#allocation2 + $0x31] sm:$0xff] %vm439_vm1, %v3207_v28  ;;  %v3208_v0 = vmax.f32 %v3176_v25, 0.0 }
 0x307   : > { %3237 = vst.msk [vmem:[#allocation2 + $0x19] sm:$0xff] %vm439_vm1, %v3205_v50  ;;  %v3206_v1 = vmax.f32 %v3174_v53, 0.0 }
 0x308   : > { %3240 = vst.msk [vmem:[#allocation2 + $0x39] sm:$0xff] %vm439_vm1, %v3208_v0 }
 0x309   : > { %3238 = vst.msk [vmem:[#allocation2 + $0x21] sm:$0xff] %vm439_vm1, %v3206_v1  ;;  %v9704_v13 = vpop.f32.mrb[4].mxu0 }
 0x30a   : > { %v3179_v14 = vadd.f32 %v9704_v13, %v11800_v55  ;;  %v3023_v21 = vpop.f32.mrb[5].mxu0 }
 0x30b   : > { %v3177_v24 = vadd.f32 %v11800_v55, %v3023_v21  ;;  %v9705_v42 = vpop.f32.mrb[6].mxu0 }
 0x30c   : > { %v3211_v45 = vmax.f32 %v3179_v14, 0.0  ;;  %v3180_v48 = vadd.f32 %v9705_v42, %v11800_v55  ;;  %v3026_v49 = vpop.f32.mrb[7].mxu0 }
 0x30d   : > { %v3209_v56 = vmax.f32 %v3177_v24, 0.0  ;;  %v3178_v57 = vadd.f32 %v11800_v55, %v3026_v49  ;;  %v3322_v12 = vld [vmem:[#allocation2 + $0x31] sm:$0xff] }
 0x30e   : > { %3243 = vst.msk [vmem:[#allocation2 + $0x61] sm:$0xff] %vm439_vm1, %v3211_v45  ;;  %v3212_v58 = vmax.f32 %v3180_v48, 0.0  ;;  %v3320_v6 = vld [vmem:[#allocation2 + $0x19] sm:$0xff] }
 0x30f   : > { %3241 = vst.msk [vmem:[#allocation2 + $0x49] sm:$0xff] %vm439_vm1, %v3209_v56  ;;  %v3210_v59 = vmax.f32 %v3178_v57, 0.0  ;;  %v3323_v3 = vld [vmem:[#allocation2 + $0x39] sm:$0xff] }
 0x310   : > { %3244 = vst.msk [vmem:[#allocation2 + $0x69] sm:$0xff] %vm439_vm1, %v3212_v58  ;;  %v3321_v9 = vld [vmem:[#allocation2 + $0x21] sm:$0xff]  ;;  %v11822_v19 = vpack.c.bf16 %v3323_v3, %v3322_v12 }
 0x311   : > { %3242 = vst.msk [vmem:[#allocation2 + $0x51] sm:$0xff] %vm439_vm1, %v3210_v59  ;;  %v9708_v22 = vpop.f32.mrb[8].mxu0  ;;  %v11818_v33 = vpack.c.bf16 %v3321_v9, %v3320_v6 }
 0x312   : > { %v3183_v17 = vadd.f32 %v9708_v22, %v11800_v55  ;;  %v3039_v32 = vpop.f32.mrb[9].mxu0 }
 0x313   : > { %v3181_v26 = vadd.f32 %v11800_v55, %v3039_v32  ;;  %v9709_v29 = vpop.f32.mrb[10].mxu0  ;;  %9733 = vmatmul.mubr.msk.bf16.vlgmr.msra.gmra.mrb[4].mxu1 %vm439_vm1, %v11818_v33 }
 0x314   : > { %v3215_v27 = vmax.f32 %v3183_v17, 0.0  ;;  %v3184_v34 = vadd.f32 %v9709_v29, %v11800_v55  ;;  %v3042_v35 = vpop.f32.mrb[11].mxu0  ;;  %9736 = vmatprep.mubr.msk.bf16.mxu1 %vm439_vm1, %v11822_v19  ;;  %9765 = vmatpush3.bf16.msra.mxu1 %v3630_v15 }
 0x315   : > { %v3213_v36 = vmax.f32 %v3181_v26, 0.0  ;;  %v3182_v40 = vadd.f32 %v11800_v55, %v3042_v35  ;;  %10878 = vmatprep.subr.msk.bf16.mxu1 %vm3416_vm4, %v11827_v20  ;;  %v3326_v51 = vld [vmem:[#allocation2 + $0x61] sm:$0xff] }
 0x316   : > { %3247 = vst.msk [vmem:[#allocation2 + $0x91] sm:$0xff] %vm439_vm1, %v3215_v27  ;;  %v3216_v23 = vmax.f32 %v3184_v34, 0.0  ;;  %v3324_v38 = vld [vmem:[#allocation2 + $0x49] sm:$0xff] }
 0x317   : > { %3245 = vst.msk [vmem:[#allocation2 + $0x79] sm:$0xff] %vm439_vm1, %v3213_v36  ;;  %v3214_v30 = vmax.f32 %v3182_v40, 0.0  ;;  %v3327_v31 = vld [vmem:[#allocation2 + $0x69] sm:$0xff] }
 0x318   : > { %3248 = vst.msk [vmem:[#allocation2 + $0x99] sm:$0xff] %vm439_vm1, %v3216_v23  ;;  %v3325_v37 = vld [vmem:[#allocation2 + $0x51] sm:$0xff]  ;;  %v11845_v62 = vpack.c.bf16 %v3327_v31, %v3326_v51 }
 0x319   : > { %3246 = vst.msk [vmem:[#allocation2 + $0x81] sm:$0xff] %vm439_vm1, %v3214_v30  ;;  %v9712_v43 = vpop.f32.mrb[12].mxu0  ;;  %v11842_v44 = vpack.c.bf16 %v3325_v37, %v3324_v38 }
 0x31a   : > { %v3187_v52 = vadd.f32 %v9712_v43, %v11800_v55  ;;  %v3055_v61 = vpop.f32.mrb[13].mxu0 }
 0x31b   : > { %v3185_v4 = vadd.f32 %v11800_v55, %v3055_v61  ;;  %v9713_v5 = vpop.f32.mrb[14].mxu0  ;;  %9737 = vmatmul.mubr.msk.bf16.gmra.mrb[8].mxu1 %vm439_vm1, %v11842_v44 }
 0x31c   : > { %v3219_v10 = vmax.f32 %v3187_v52, 0.0  ;;  %v3188_v11 = vadd.f32 %v9713_v5, %v11800_v55  ;;  %v3058_v16 = vpop.f32.mrb[15].mxu0  ;;  %9740 = vmatprep.mubr.msk.bf16.mxu1 %vm439_vm1, %v11845_v62 }
 0x31d   : > { %v3217_v60 = vmax.f32 %v3185_v4, 0.0  ;;  %v3186_v63 = vadd.f32 %v11800_v55, %v3058_v16  ;;  %v3330_v53 = vld [vmem:[#allocation2 + $0x91] sm:$0xff] }
 0x31e   : > { %3251 = vst.msk [vmem:[#allocation2 + $0xc1] sm:$0xff] %vm439_vm1, %v3219_v10  ;;  %v3220_v7 = vmax.f32 %v3188_v11, 0.0  ;;  %v3328_v28 = vld [vmem:[#allocation2 + $0x79] sm:$0xff] }
 0x31f   : > { %3249 = vst.msk [vmem:[#allocation2 + $0xa9] sm:$0xff] %vm439_vm1, %v3217_v60  ;;  %v3218_v8 = vmax.f32 %v3186_v63, 0.0  ;;  %v3331_v18 = vld [vmem:[#allocation2 + $0x99] sm:$0xff] }
 0x320   : > { %3252 = vst.msk [vmem:[#allocation2 + $0xc9] sm:$0xff] %vm439_vm1, %v3220_v7  ;;  %v3329_v25 = vld [vmem:[#allocation2 + $0x81] sm:$0xff]  ;;  %v11861_v13 = vpack.c.bf16 %v3331_v18, %v3330_v53 }
 0x321   : > { %3250 = vst.msk [vmem:[#allocation2 + $0xb1] sm:$0xff] %vm439_vm1, %v3218_v8  ;;  %v9716_v41 = vpop.f32.mrb[16].mxu0  ;;  %v11858_v50 = vpack.c.bf16 %v3329_v25, %v3328_v28 }
 0x322   : > { %v3191_v0 = vadd.f32 %v9716_v41, %v11800_v55  ;;  %v3071_v1 = vpop.f32.mrb[17].mxu0 }
 0x323   : > { %v3189_v14 = vadd.f32 %v11800_v55, %v3071_v1  ;;  %v9717_v21 = vpop.f32.mrb[18].mxu0  ;;  %9741 = vmatmul.mubr.msk.bf16.gmra.mrb[12].mxu1 %vm439_vm1, %v11858_v50 }
 0x324   : > { %v3223_v24 = vmax.f32 %v3191_v0, 0.0  ;;  %v3192_v42 = vadd.f32 %v9717_v21, %v11800_v55  ;;  %v3074_v45 = vpop.f32.mrb[19].mxu0  ;;  %9744 = vmatprep.mubr.msk.bf16.mxu1 %vm439_vm1, %v11861_v13 }
 0x325   : > { %v3221_v48 = vmax.f32 %v3189_v14, 0.0  ;;  %v3190_v49 = vadd.f32 %v11800_v55, %v3074_v45  ;;  %v3334_v22 = vld [vmem:[#allocation2 + $0xc1] sm:$0xff] }
 0x326   : > { %3255 = vst.msk [vmem:[#allocation2 + $0xf1] sm:$0xff] %vm439_vm1, %v3223_v24  ;;  %v3224_v56 = vmax.f32 %v3192_v42, 0.0  ;;  %v3332_v59 = vld [vmem:[#allocation2 + $0xa9] sm:$0xff] }
 0x327   : > { %3253 = vst.msk [vmem:[#allocation2 + $0xd9] sm:$0xff] %vm439_vm1, %v3221_v48  ;;  %v3222_v57 = vmax.f32 %v3190_v49, 0.0  ;;  %v3335_v58 = vld [vmem:[#allocation2 + $0xc9] sm:$0xff] }
 0x328   : > { %3256 = vst.msk [vmem:[#allocation2 + $0xf9] sm:$0xff] %vm439_vm1, %v3224_v56  ;;  %v3333_v3 = vld [vmem:[#allocation2 + $0xb1] sm:$0xff]  ;;  %v11877_v17 = vpack.c.bf16 %v3335_v58, %v3334_v22 }
 0x329   : > { %3254 = vst.msk [vmem:[#allocation2 + $0xe1] sm:$0xff] %vm439_vm1, %v3222_v57  ;;  %v9720_v6 = vpop.f32.mrb[20].mxu0  ;;  %v11874_v9 = vpack.c.bf16 %v3333_v3, %v3332_v59 }
 0x32a   : > { %v3195_v12 = vadd.f32 %v9720_v6, %v11800_v55  ;;  %v3087_v15 = vpop.f32.mrb[21].mxu0 }
 0x32b   : > { %v3193_v32 = vadd.f32 %v11800_v55, %v3087_v15  ;;  %v9721_v26 = vpop.f32.mrb[22].mxu0  ;;  %9745 = vmatmul.mubr.msk.bf16.gmra.mrb[16].mxu1 %vm439_vm1, %v11874_v9 }
 0x32c   : > { %v3227_v29 = vmax.f32 %v3195_v12, 0.0  ;;  %v3196_v27 = vadd.f32 %v9721_v26, %v11800_v55  ;;  %v3090_v34 = vpop.f32.mrb[23].mxu0  ;;  %9748 = vmatprep.mubr.msk.bf16.mxu1 %vm439_vm1, %v11877_v17 }
 0x32d   : > { %v3225_v35 = vmax.f32 %v3193_v32, 0.0  ;;  %v3194_v36 = vadd.f32 %v11800_v55, %v3090_v34  ;;  %v3338_v51 = vld [vmem:[#allocation2 + $0xf1] sm:$0xff] }
 0x32e   : > { %3259 = vst.msk [vmem:[#allocation2 + $0x121] sm:$0xff] %vm439_vm1, %v3227_v29  ;;  %v3228_v40 = vmax.f32 %v3196_v27, 0.0  ;;  %v3336_v31 = vld [vmem:[#allocation2 + $0xd9] sm:$0xff]  ;;  %v3270_v29 = vld [vmem:[#allocation2 + $0x8] sm:$0xff] }
 0x32f   : > { %3257 = vst.msk [vmem:[#allocation2 + $0x109] sm:$0xff] %vm439_vm1, %v3225_v35  ;;  %v3226_v23 = vmax.f32 %v3194_v36, 0.0  ;;  %v3339_v30 = vld [vmem:[#allocation2 + $0xf9] sm:$0xff] }
 0x330   : > { %3260 = vst.msk [vmem:[#allocation2 + $0x129] sm:$0xff] %vm439_vm1, %v3228_v40  ;;  %v3337_v38 = vld [vmem:[#allocation2 + $0xe1] sm:$0xff]  ;;  %v11893_v4 = vpack.c.bf16 %v3339_v30, %v3338_v51  ;;  %v3271_v30 = vld [vmem:[#allocation2 + $0x18] sm:$0xff] }
 0x331   : > { %3258 = vst.msk [vmem:[#allocation2 + $0x111] sm:$0xff] %vm439_vm1, %v3226_v23  ;;  %v9724_v37 = vpop.f32.mrb[24].mxu0  ;;  %v11890_v43 = vpack.c.bf16 %v3337_v38, %v3336_v31  ;;  %v3272_v40 = vld [vmem:[#allocation2 + $0x20] sm:$0xff]  ;;  %v3274_v23 = vld [vmem:[#allocation2 + $0x38] sm:$0xff]  ;;  %v3892_v38 = vsel %vm3416_vm4, %v11827_v20, 0  ;;  %v3278_v20 = vld [vmem:[#allocation2 + $0x68] sm:$0xff] }
 0x332   : > { %v3199_v52 = vadd.f32 %v9724_v37, %v11800_v55  ;;  %v3103_v61 = vpop.f32.mrb[25].mxu0  ;;  %v11939_v31 = vpack.c.bf16 %v3272_v40, %v3271_v30  ;;  %v3273_v37 = vld [vmem:[#allocation2 + $0x30] sm:$0xff]  ;;  %v3795_v30 = vld [vmem:[#allocation2 + $0x1a] sm:$0xff] }
 0x333   : > { %v3197_v5 = vadd.f32 %v11800_v55, %v3103_v61  ;;  %v9725_v10 = vpop.f32.mrb[26].mxu0  ;;  %9749 = vmatmul.mubr.msk.bf16.gmra.mrb[20].mxu1 %vm439_vm1, %v11890_v43  ;;  %v11943_v51 = vpack.c.bf16 %v3274_v23, %v3273_v37  ;;  %v3276_v61 = vld [vmem:[#allocation2 + $0x50] sm:$0xff] }
 0x334   : > { %v3231_v11 = vmax.f32 %v3199_v52, 0.0  ;;  %v3200_v16 = vadd.f32 %v9725_v10, %v11800_v55  ;;  %v3106_v60 = vpop.f32.mrb[27].mxu0  ;;  %9752 = vmatprep.mubr.msk.bf16.mxu1 %vm439_vm1, %v11893_v4  ;;  %v11948_v52 = vld [vmem:[%s12979_s3 + $0xc] sm:$0xf]  ;;  %v3797_v37 = vld [vmem:[#allocation2 + $0x32] sm:$0xff] }
 0x335   : > { %v3229_v63 = vmax.f32 %v3197_v5, 0.0  ;;  %v3198_v7 = vadd.f32 %v11800_v55, %v3106_v60  ;;  %v3342_v1 = vld [vmem:[#allocation2 + $0x121] sm:$0xff] }
 0x336   : > { %3263 = vst.msk [vmem:[#allocation2 + $0x151] sm:$0xff] %vm439_vm1, %v3231_v11  ;;  %v3232_v8 = vmax.f32 %v3200_v16, 0.0  ;;  %v3340_v25 = vld [vmem:[#allocation2 + $0x109] sm:$0xff]  ;;  %v3277_v11 = vld [vmem:[#allocation2 + $0x60] sm:$0xff] }
 0x337   : > { %3261 = vst.msk [vmem:[#allocation2 + $0x139] sm:$0xff] %vm439_vm1, %v3229_v63  ;;  %v3230_v18 = vmax.f32 %v3198_v7, 0.0  ;;  %v3343_v28 = vld [vmem:[#allocation2 + $0x129] sm:$0xff]  ;;  %v11958_v16 = vpack.c.bf16 %v3278_v20, %v3277_v11  ;;  %v3280_v60 = vld [vmem:[#allocation2 + $0x80] sm:$0xff]  ;;  %v3282_v63 = vld [vmem:[#allocation2 + $0x98] sm:$0xff] }
 0x338   : > { %3264 = vst.msk [vmem:[#allocation2 + $0x159] sm:$0xff] %vm439_vm1, %v3232_v8  ;;  %v3341_v41 = vld [vmem:[#allocation2 + $0x111] sm:$0xff]  ;;  %v11909_v24 = vpack.c.bf16 %v3343_v28, %v3342_v1  ;;  %v3275_v5 = vld [vmem:[#allocation2 + $0x48] sm:$0xff] }
 0x339   : > { %3262 = vst.msk [vmem:[#allocation2 + $0x141] sm:$0xff] %vm439_vm1, %v3230_v18  ;;  %v9728_v53 = vpop.f32.mrb[28].mxu0  ;;  %v11906_v0 = vpack.c.bf16 %v3341_v41, %v3340_v25  ;;  %v11956_v10 = vpack.c.bf16 %v3276_v61, %v3275_v5  ;;  %v3279_v7 = vld [vmem:[#allocation2 + $0x78] sm:$0xff]  ;;  %v3281_v18 = vld [vmem:[#allocation2 + $0x90] sm:$0xff]  ;;  %v3286_v41 = vld [vmem:[#allocation2 + $0xc8] sm:$0xff]  ;;  %v4186_v5 = vsel %vm3416_vm4, %v11948_v52, 0 }
 0x33a   : > { %v10226_v14 = vadd.f32 %v9728_v53, %v11789_v39  ;;  %v3119_v21 = vpop.f32.mrb[29].mxu0  ;;  %v11964_v8 = vpack.c.bf16 %v3280_v60, %v3279_v7  ;;  %v11966_v28 = vpack.c.bf16 %v3282_v63, %v3281_v18  ;;  %v3284_v25 = vld [vmem:[#allocation2 + $0xb0] sm:$0xff]  ;;  %v3283_v53 = vld [vmem:[#allocation2 + $0xa8] sm:$0xff]  ;;  %v3798_v61 = vld [vmem:[#allocation2 + $0x3a] sm:$0xff] }
 0x33b   : > { %v10227_v42 = vadd.f32 %v3119_v21, %v11791_v46  ;;  %v9729_v45 = vpop.f32.mrb[30].mxu0  ;;  %9753 = vmatmul.mubr.msk.bf16.gmra.mrb[24].mxu1 %vm439_vm1, %v11906_v0  ;;  %v11972_v1 = vpack.c.bf16 %v3284_v25, %v3283_v53  ;;  %v12013_v11 = vpack.c.bf16 %v3798_v61, %v3797_v37  ;;  %v8773_v60 = vld [vmem:[%s12979_s3 + $0x10] sm:$0xf]  ;;  %v3801_v18 = vld [vmem:[#allocation2 + $0x62] sm:$0xff]  ;;  %v3803_v53 = vld [vmem:[#allocation2 + $0x7a] sm:$0xff] }
 0x33c   : > { %v3203_v48 = vadd.f32 %v10226_v14, %v11800_v55  ;;  %v10228_v49 = vadd.f32 %v9729_v45, %v11793_v47  ;;  %v3122_v56 = vpop.f32.mrb[31].mxu0  ;;  %9756 = vmatprep.mubr.msk.bf16.mxu1 %vm439_vm1, %v11909_v24  ;;  %v3285_v14 = vld [vmem:[#allocation2 + $0xc0] sm:$0xff]  ;;  %v3290_v45 = vld [vmem:[#allocation2 + $0xf8] sm:$0xff]  ;;  %v3799_v63 = vld [vmem:[#allocation2 + $0x4a] sm:$0xff] }
 0x33d   : > { %v3201_v57 = vadd.f32 %v10227_v42, %v11800_v55  ;;  %v10229_v39 = vadd.f32 %v3122_v56, %v11795_v54  ;;  %v3346_v26 = vld [vmem:[#allocation2 + $0x151] sm:$0xff]  ;;  %v11974_v21 = vpack.c.bf16 %v3286_v41, %v3285_v14  ;;  %v3288_v42 = vld [vmem:[#allocation2 + $0xe0] sm:$0xff] }
 0x33e   : > { %v3235_v58 = vmax.f32 %v3203_v48, 0.0  ;;  %v3204_v59 = vadd.f32 %v10228_v49, %v11800_v55  ;;  %v3344_v12 = vld [vmem:[#allocation2 + $0x139] sm:$0xff]  ;;  %v3289_v56 = vld [vmem:[#allocation2 + $0xf0] sm:$0xff]  ;;  %v3804_v14 = vld [vmem:[#allocation2 + $0x82] sm:$0xff] }
 0x33f   : > { %v3233_v46 = vmax.f32 %v3201_v57, 0.0  ;;  %v3202_v3 = vadd.f32 %v10229_v39, %v11800_v55  ;;  %v3347_v6 = vld [vmem:[#allocation2 + $0x159] sm:$0xff]  ;;  %v11982_v57 = vpack.c.bf16 %v3290_v45, %v3289_v56  ;;  %v3292_v39 = vld [vmem:[#allocation2 + $0x110] sm:$0xff] }
 0x340   : > { %3267 = vst.msk [vmem:[#allocation2 + $0x181] sm:$0xff] %vm439_vm1, %v3235_v58  ;;  %v3236_v22 = vmax.f32 %v3204_v59, 0.0  ;;  %v3345_v47 = vld [vmem:[#allocation2 + $0x141] sm:$0xff]  ;;  %v11927_v54 = vpack.c.bf16 %v3347_v6, %v3346_v26  ;;  %v3287_v48 = vld [vmem:[#allocation2 + $0xd8] sm:$0xff]  ;;  %v3297_v26 = vld [vmem:[#allocation2 + $0x150] sm:$0xff] }
 0x341   : > { %3265 = vst.msk [vmem:[#allocation2 + $0x169] sm:$0xff] %vm439_vm1, %v3233_v46  ;;  %v3234_v15 = vmax.f32 %v3202_v3, 0.0  ;;  %v11924_v32 = vpack.c.bf16 %v3345_v47, %v3344_v12  ;;  %v3269_v55 = vld [vmem:[#allocation2] sm:$0xff]  ;;  %v11980_v49 = vpack.c.bf16 %v3288_v42, %v3287_v48  ;;  %v3294_v58 = vld [vmem:[#allocation2 + $0x128] sm:$0xff]  ;;  %v3298_v12 = vld [vmem:[#allocation2 + $0x158] sm:$0xff]  ;;  %v12031_v48 = vpack.c.bf16 %v3804_v14, %v3803_v53 }
 0x342   : > { %3268 = vst.msk [vmem:[#allocation2 + $0x189] sm:$0xff] %vm439_vm1, %v3236_v22  ;;  %v3301_v35 = vpack.c.bf16 %v3270_v29, %v3269_v55  ;;  %v3291_v59 = vld [vmem:[#allocation2 + $0x108] sm:$0xff]  ;;  %v3293_v3 = vld [vmem:[#allocation2 + $0x120] sm:$0xff]  ;;  %v3295_v47 = vld [vmem:[#allocation2 + $0x138] sm:$0xff]  ;;  %v11998_v55 = vpack.c.bf16 %v3298_v12, %v3297_v26 }
 0x343   : > { %3266 = vst.msk [vmem:[#allocation2 + $0x171] sm:$0xff] %vm439_vm1, %v3234_v15  ;;  %9757 = vmatmul.mubr.msk.bf16.gmra.mrb[28].mxu1 %vm439_vm1, %v11924_v32  ;;  %v11988_v46 = vpack.c.bf16 %v3292_v39, %v3291_v59  ;;  %v11990_v6 = vpack.c.bf16 %v3294_v58, %v3293_v3  ;;  %v3296_v22 = vld [vmem:[#allocation2 + $0x140] sm:$0xff]  ;;  %v3800_v7 = vld [vmem:[#allocation2 + $0x52] sm:$0xff]  ;;  %v3802_v25 = vld [vmem:[#allocation2 + $0x6a] sm:$0xff] }
 0x344   : > { %9760 = vmatprep.mubr.msk.bf16.mxu1 %vm439_vm1, %v11927_v54  ;;  %v11996_v15 = vpack.c.bf16 %v3296_v22, %v3295_v47  ;;  %v3793_v29 = vld [vmem:[#allocation2 + $0x2] sm:$0xff]  ;;  %v12025_v41 = vpack.c.bf16 %v3802_v25, %v3801_v18  ;;  %v3805_v42 = vld [vmem:[#allocation2 + $0x92] sm:$0xff]  ;;  %v3806_v45 = vld [vmem:[#allocation2 + $0x9a] sm:$0xff] }
 0x345   : > { %v12033_v56 = vpack.c.bf16 %v3806_v45, %v3805_v42  ;;  %v3807_v39 = vld [vmem:[#allocation2 + $0xaa] sm:$0xff]  ;;  %v3808_v58 = vld [vmem:[#allocation2 + $0xb2] sm:$0xff]  ;;  %v3809_v59 = vld [vmem:[#allocation2 + $0xc2] sm:$0xff] }
 0x346   : > { %v3810_v3 = vld [vmem:[#allocation2 + $0xca] sm:$0xff]  ;;  %v12039_v22 = vpack.c.bf16 %v3808_v58, %v3807_v39  ;;  %v3811_v47 = vld [vmem:[#allocation2 + $0xda] sm:$0xff]  ;;  %v3812_v26 = vld [vmem:[#allocation2 + $0xe2] sm:$0xff]  ;;  %v4480_v58 = vsel %vm3416_vm4, %v8773_v60, 0 }
 0x347   : > { %v12041_v12 = vpack.c.bf16 %v3810_v3, %v3809_v59  ;;  %v3818_v37 = vld [vmem:[#allocation2 + $0x12a] sm:$0xff]  ;;  %v3821_v18 = vld [vmem:[#allocation2 + $0x152] sm:$0xff]  ;;  %v3822_v25 = vld [vmem:[#allocation2 + $0x15a] sm:$0xff] }
 0x348   : > { %v3348_v27 = vld [vmem:[#allocation2 + $0x169] sm:$0xff]  ;;  %v12065_v14 = vpack.c.bf16 %v3822_v25, %v3821_v18  ;;  %v8790_v59 = vld [vmem:[%s12979_s3 + $0x14] sm:$0xf] }
 0x34a   : > { %v3349_v34 = vld [vmem:[#allocation2 + $0x171] sm:$0xff] }
 0x34b   : > { %v11934_v36 = vpack.c.bf16 %v3349_v34, %v3348_v27  ;;  %v3794_v27 = vld [vmem:[#allocation2 + $0xa] sm:$0xff]  ;;  %v3824_v45 = vld [vmem:[#allocation2 + $0x172] sm:$0xff] }
 0x34c   : > { %v3300_v34 = vld [vmem:[#allocation2 + $0x170] sm:$0xff]  ;;  %v3825_v40 = vpack.c.bf16 %v3794_v27, %v3793_v29  ;;  %v3814_v27 = vld [vmem:[#allocation2 + $0xfa] sm:$0xff] }
 0x34d   : > { %9761 = vmatmul.mubr.msk.bf16.gmra.mrb[32].mxu1 %vm439_vm1, %v11934_v36  ;;  %v3813_v29 = vld [vmem:[#allocation2 + $0xf2] sm:$0xff]  ;;  %v3823_v42 = vld [vmem:[#allocation2 + $0x16a] sm:$0xff] }
 0x34e   : > { %9766 = vmatprep.mubr.msk.bf16.mxu1 %vm439_vm1, %v3301_v35  ;;  %v3299_v35 = vld [vmem:[#allocation2 + $0x168] sm:$0xff]  ;;  %v12071_v39 = vpack.c.bf16 %v3824_v45, %v3823_v42 }
 0x34f   : > { %v12004_v23 = vpack.c.bf16 %v3300_v34, %v3299_v35  ;;  %v12047_v34 = vpack.c.bf16 %v3812_v26, %v3811_v47  ;;  %v12049_v35 = vpack.c.bf16 %v3814_v27, %v3813_v29  ;;  %v4774_v47 = vsel %vm3416_vm4, %v8790_v59, 0  ;;  %v8807_v26 = vld [vmem:[%s12979_s3 + $0x18] sm:$0xf] }
 0x355   : > { %9767 = vmatmul.mubr.msk.bf16.vlgmr.msra.gmra.mrb[4].mxu1 %vm439_vm1, %v11939_v31 }
 0x356   : > { %9799 = vmatpush3.bf16.msra.mxu1 %v3892_v38  ;;  %9770 = vmatprep.mubr.msk.bf16.mxu1 %vm439_vm1, %v11943_v51  ;;  %v3796_v38 = vld [vmem:[#allocation2 + $0x22] sm:$0xff] }
 0x357   : > { %10879 = vmatprep.subr.msk.bf16.mxu1 %vm3416_vm4, %v11948_v52  ;;  %v12009_v20 = vpack.c.bf16 %v3796_v38, %v3795_v30  ;;  %v12023_v52 = vpack.c.bf16 %v3800_v7, %v3799_v63  ;;  %v3816_v30 = vld [vmem:[#allocation2 + $0x112] sm:$0xff]  ;;  %v3817_v38 = vld [vmem:[#allocation2 + $0x122] sm:$0xff]  ;;  %v3819_v63 = vld [vmem:[#allocation2 + $0x13a] sm:$0xff] }
 0x358   : > { %v3820_v7 = vld [vmem:[#allocation2 + $0x142] sm:$0xff] }
 0x359   : > { %v12063_v53 = vpack.c.bf16 %v3820_v7, %v3819_v63  ;;  %v5271_v63 = vld [vmem:[#allocation2 + $0x91] sm:$0xff] }
 0x35d   : > { %9771 = vmatmul.mubr.msk.bf16.gmra.mrb[8].mxu1 %vm439_vm1, %v11956_v10 }
 0x35e   : > { %9774 = vmatprep.mubr.msk.bf16.mxu1 %vm439_vm1, %v11958_v16 }
 0x365   : > { %9775 = vmatmul.mubr.msk.bf16.gmra.mrb[12].mxu1 %vm439_vm1, %v11964_v8 }
 0x366   : > { %9778 = vmatprep.mubr.msk.bf16.mxu1 %vm439_vm1, %v11966_v28 }
 0x36d   : > { %9779 = vmatmul.mubr.msk.bf16.gmra.mrb[16].mxu1 %vm439_vm1, %v11972_v1 }
 0x36e   : > { %9782 = vmatprep.mubr.msk.bf16.mxu1 %vm439_vm1, %v11974_v21 }
 0x375   : > { %9783 = vmatmul.mubr.msk.bf16.gmra.mrb[20].mxu1 %vm439_vm1, %v11980_v49 }
 0x376   : > { %9786 = vmatprep.mubr.msk.bf16.mxu1 %vm439_vm1, %v11982_v57 }
 0x37d   : > { %9787 = vmatmul.mubr.msk.bf16.gmra.mrb[24].mxu1 %vm439_vm1, %v11988_v46 }
 0x37e   : > { %9790 = vmatprep.mubr.msk.bf16.mxu1 %vm439_vm1, %v11990_v6 }
 0x385   : > { %9791 = vmatmul.mubr.msk.bf16.gmra.mrb[28].mxu1 %vm439_vm1, %v11996_v15 }
 0x386   : > { %9794 = vmatprep.mubr.msk.bf16.mxu1 %vm439_vm1, %v11998_v55 }
 0x38d   : > { %9795 = vmatmul.mubr.msk.bf16.gmra.mrb[32].mxu1 %vm439_vm1, %v12004_v23 }
 0x38e   : > { %9800 = vmatprep.mubr.msk.bf16.mxu1 %vm439_vm1, %v3825_v40  ;;  %v3815_v40 = vld [vmem:[#allocation2 + $0x10a] sm:$0xff] }
 0x38f   : > { %v12055_v61 = vpack.c.bf16 %v3816_v30, %v3815_v40  ;;  %v8841_v40 = vld [vmem:[%s12979_s3 + $0x20] sm:$0xf] }
 0x390   : > { %v5272_v30 = vld [vmem:[#allocation2 + $0x99] sm:$0xff] }
 0x391   : > { %v5299_v7 = vpack.c.bf16 %v5272_v30, %v5271_v63 }
 0x395   : > { %9801 = vmatmul.mubr.msk.bf16.vlgmr.msra.gmra.mrb[4].mxu1 %vm439_vm1, %v12009_v20 }
 0x396   : > { %9833 = vmatpush3.bf16.msra.mxu1 %v4186_v5  ;;  %9804 = vmatprep.mubr.msk.bf16.mxu1 %vm439_vm1, %v12013_v11  ;;  %v12057_v5 = vpack.c.bf16 %v3818_v37, %v3817_v38  ;;  %v5269_v38 = vld [vmem:[#allocation2 + $0x79] sm:$0xff] }
 0x397   : > { %10880 = vmatprep.subr.msk.bf16.mxu1 %vm3416_vm4, %v8773_v60  ;;  %v4117_v60 = vld [vmem:[#allocation2 + $0x180] sm:$0xff] }
 0x39d   : > { %9805 = vmatmul.mubr.msk.bf16.gmra.mrb[8].mxu1 %vm439_vm1, %v12023_v52 }
 0x39e   : > { %9808 = vmatprep.mubr.msk.bf16.mxu1 %vm439_vm1, %v12025_v41 }
 0x3a5   : > { %9809 = vmatmul.mubr.msk.bf16.gmra.mrb[12].mxu1 %vm439_vm1, %v12031_v48 }
 0x3a6   : > { %9812 = vmatprep.mubr.msk.bf16.mxu1 %vm439_vm1, %v12033_v56 }
 0x3ad   : > { %9813 = vmatmul.mubr.msk.bf16.gmra.mrb[16].mxu1 %vm439_vm1, %v12039_v22 }
 0x3ae   : > { %9816 = vmatprep.mubr.msk.bf16.mxu1 %vm439_vm1, %v12041_v12 }
 0x3b5   : > { %9817 = vmatmul.mubr.msk.bf16.gmra.mrb[20].mxu1 %vm439_vm1, %v12047_v34 }
 0x3b6   : > { %9820 = vmatprep.mubr.msk.bf16.mxu1 %vm439_vm1, %v12049_v35 }
 0x3bd   : > { %9821 = vmatmul.mubr.msk.bf16.gmra.mrb[24].mxu1 %vm439_vm1, %v12055_v61 }
 0x3be   : > { %9824 = vmatprep.mubr.msk.bf16.mxu1 %vm439_vm1, %v12057_v5 }
 0x3c5   : > { %9825 = vmatmul.mubr.msk.bf16.gmra.mrb[28].mxu1 %vm439_vm1, %v12063_v53 }
 0x3c6   : > { %9828 = vmatprep.mubr.msk.bf16.mxu1 %vm439_vm1, %v12065_v14 }
 0x3cd   : > { %9829 = vmatmul.mubr.msk.bf16.gmra.mrb[32].mxu1 %vm439_vm1, %v12071_v39 }
 0x3ce   : > { %9834 = vmatprep.mubr.msk.bf16.mxu1 %vm439_vm1, %v11939_v31  ;;  %v4118_v31 = vld [vmem:[#allocation2 + $0x188] sm:$0xff] }
 0x3cf   : > { %v12110_v3 = vpack.c.bf16 %v4118_v31, %v4117_v60 }
 0x3d5   : > { %9835 = vmatmul.mubr.msk.bf16.vlgmr.msra.gmra.mrb[4].mxu1 %vm439_vm1, %v11943_v51 }
 0x3d6   : > { %9867 = vmatpush3.bf16.msra.mxu1 %v4480_v58  ;;  %9838 = vmatprep.mubr.msk.bf16.mxu1 %vm439_vm1, %v11956_v10 }
 0x3d7   : > { %10881 = vmatprep.subr.msk.bf16.mxu1 %vm3416_vm4, %v8790_v59 }
 0x3dd   : > { %9839 = vmatmul.mubr.msk.bf16.gmra.mrb[8].mxu1 %vm439_vm1, %v11958_v16 }
 0x3de   : > { %9842 = vmatprep.mubr.msk.bf16.mxu1 %vm439_vm1, %v11964_v8 }
 0x3e5   : > { %9843 = vmatmul.mubr.msk.bf16.gmra.mrb[12].mxu1 %vm439_vm1, %v11966_v28 }
 0x3e6   : > { %9846 = vmatprep.mubr.msk.bf16.mxu1 %vm439_vm1, %v11972_v1 }
 0x3ed   : > { %9847 = vmatmul.mubr.msk.bf16.gmra.mrb[16].mxu1 %vm439_vm1, %v11974_v21 }
 0x3ee   : > { %9850 = vmatprep.mubr.msk.bf16.mxu1 %vm439_vm1, %v11980_v49 }
 0x3f5   : > { %9851 = vmatmul.mubr.msk.bf16.gmra.mrb[20].mxu1 %vm439_vm1, %v11982_v57 }
 0x3f6   : > { %9854 = vmatprep.mubr.msk.bf16.mxu1 %vm439_vm1, %v11988_v46 }
 0x3fd   : > { %9855 = vmatmul.mubr.msk.bf16.gmra.mrb[24].mxu1 %vm439_vm1, %v11990_v6 }
 0x3fe   : > { %9858 = vmatprep.mubr.msk.bf16.mxu1 %vm439_vm1, %v11996_v15 }
 0x405   : > { %9859 = vmatmul.mubr.msk.bf16.gmra.mrb[28].mxu1 %vm439_vm1, %v11998_v55 }
 0x406   : > { %9862 = vmatprep.mubr.msk.bf16.mxu1 %vm439_vm1, %v12004_v23 }
 0x40d   : > { %9863 = vmatmul.mubr.msk.bf16.gmra.mrb[32].mxu1 %vm439_vm1, %v12110_v3 }
 0x40e   : > { %9868 = vmatprep.mubr.msk.bf16.mxu1 %vm439_vm1, %v11818_v33  ;;  %v4412_v33 = vld [vmem:[#allocation2 + $0x189] sm:$0xff] }
 0x415   : > { %9869 = vmatmul.mubr.msk.bf16.vlgmr.msra.gmra.mrb[4].mxu1 %vm439_vm1, %v11822_v19  ;;  %v4411_v19 = vld [vmem:[#allocation2 + $0x181] sm:$0xff] }
 0x416   : > { %9901 = vmatpush3.bf16.msra.mxu1 %v4774_v47  ;;  %9872 = vmatprep.mubr.msk.bf16.mxu1 %vm439_vm1, %v11842_v44  ;;  %v12149_v44 = vpack.c.bf16 %v4412_v33, %v4411_v19 }
 0x417   : > { %10882 = vmatprep.subr.msk.bf16.mxu1 %vm3416_vm4, %v8807_v26 }
 0x41d   : > { %9873 = vmatmul.mubr.msk.bf16.gmra.mrb[8].mxu1 %vm439_vm1, %v11845_v62  ;;  %v5068_v62 = vsel %vm3416_vm4, %v8807_v26, 0 }
 0x41e   : > { %9876 = vmatprep.mubr.msk.bf16.mxu1 %vm439_vm1, %v11858_v50  ;;  %v8824_v50 = vld [vmem:[%s12979_s3 + $0x1c] sm:$0xf] }
 0x41f   : > { %v5362_v27 = vsel %vm3416_vm4, %v8824_v50, 0 }
 0x425   : > { %9877 = vmatmul.mubr.msk.bf16.gmra.mrb[12].mxu1 %vm439_vm1, %v11861_v13  ;;  %v4705_v13 = vld [vmem:[#allocation2 + $0x182] sm:$0xff] }
 0x426   : > { %9880 = vmatprep.mubr.msk.bf16.mxu1 %vm439_vm1, %v11874_v9 }
 0x42d   : > { %9881 = vmatmul.mubr.msk.bf16.gmra.mrb[16].mxu1 %vm439_vm1, %v11877_v17 }
 0x42e   : > { %9884 = vmatprep.mubr.msk.bf16.mxu1 %vm439_vm1, %v11890_v43 }
 0x435   : > { %9885 = vmatmul.mubr.msk.bf16.gmra.mrb[20].mxu1 %vm439_vm1, %v11893_v4 }
 0x436   : > { %9888 = vmatprep.mubr.msk.bf16.mxu1 %vm439_vm1, %v11906_v0 }
 0x43d   : > { %9889 = vmatmul.mubr.msk.bf16.gmra.mrb[24].mxu1 %vm439_vm1, %v11909_v24 }
 0x43e   : > { %9892 = vmatprep.mubr.msk.bf16.mxu1 %vm439_vm1, %v11924_v32 }
 0x445   : > { %9893 = vmatmul.mubr.msk.bf16.gmra.mrb[28].mxu1 %vm439_vm1, %v11927_v54 }
 0x446   : > { %9896 = vmatprep.mubr.msk.bf16.mxu1 %vm439_vm1, %v11934_v36 }
 0x44d   : > { %9897 = vmatmul.mubr.msk.bf16.gmra.mrb[32].mxu1 %vm439_vm1, %v12149_v44 }
 0x44e   : > { %9902 = vmatprep.mubr.msk.bf16.mxu1 %vm439_vm1, %v12009_v20  ;;  %v4706_v20 = vld [vmem:[#allocation2 + $0x18a] sm:$0xff] }
 0x44f   : > { %v12188_v29 = vpack.c.bf16 %v4706_v20, %v4705_v13 }
 0x455   : > { %9903 = vmatmul.mubr.msk.bf16.vlgmr.msra.gmra.mrb[4].mxu1 %vm439_vm1, %v12013_v11 }
 0x456   : > { %9935 = vmatpush3.bf16.msra.mxu1 %v5068_v62  ;;  %9906 = vmatprep.mubr.msk.bf16.mxu1 %vm439_vm1, %v12023_v52 }
 0x457   : > { %10883 = vmatprep.subr.msk.bf16.mxu1 %vm3416_vm4, %v8824_v50 }
 0x45d   : > { %9907 = vmatmul.mubr.msk.bf16.gmra.mrb[8].mxu1 %vm439_vm1, %v12025_v41 }
 0x45e   : > { %9910 = vmatprep.mubr.msk.bf16.mxu1 %vm439_vm1, %v12031_v48 }
 0x465   : > { %9911 = vmatmul.mubr.msk.bf16.gmra.mrb[12].mxu1 %vm439_vm1, %v12033_v56 }
 0x466   : > { %9914 = vmatprep.mubr.msk.bf16.mxu1 %vm439_vm1, %v12039_v22 }
 0x46d   : > { %9915 = vmatmul.mubr.msk.bf16.gmra.mrb[16].mxu1 %vm439_vm1, %v12041_v12 }
 0x46e   : > { %9918 = vmatprep.mubr.msk.bf16.mxu1 %vm439_vm1, %v12047_v34 }
 0x475   : > { %9919 = vmatmul.mubr.msk.bf16.gmra.mrb[20].mxu1 %vm439_vm1, %v12049_v35 }
 0x476   : > { %9922 = vmatprep.mubr.msk.bf16.mxu1 %vm439_vm1, %v12055_v61 }
 0x47d   : > { %9923 = vmatmul.mubr.msk.bf16.gmra.mrb[24].mxu1 %vm439_vm1, %v12057_v5 }
 0x47e   : > { %9926 = vmatprep.mubr.msk.bf16.mxu1 %vm439_vm1, %v12063_v53 }
 0x485   : > { %9927 = vmatmul.mubr.msk.bf16.gmra.mrb[28].mxu1 %vm439_vm1, %v12065_v14 }
 0x486   : > { %9930 = vmatprep.mubr.msk.bf16.mxu1 %vm439_vm1, %v12071_v39 }
 0x48d   : > { %9931 = vmatmul.mubr.msk.bf16.gmra.mrb[32].mxu1 %vm439_vm1, %v12188_v29 }
 0x48e   : > { %9936 = vmatprep.mubr.msk.bf16.mxu1 %vm439_vm1, %v11943_v51  ;;  %v4999_v51 = vld [vmem:[#allocation2 + $0x198] sm:$0xff] }
 0x495   : > { %9937 = vmatmul.mubr.msk.bf16.vlgmr.msra.gmra.mrb[4].mxu1 %vm439_vm1, %v11956_v10  ;;  %v5000_v10 = vld [vmem:[#allocation2 + $0x1a0] sm:$0xff] }
 0x496   : > { %9969 = vmatpush3.bf16.msra.mxu1 %v5362_v27  ;;  %9940 = vmatprep.mubr.msk.bf16.mxu1 %vm439_vm1, %v11958_v16  ;;  %v5016_v16 = vpack.c.bf16 %v5000_v10, %v4999_v51 }
 0x497   : > { %10884 = vmatprep.subr.msk.bf16.mxu1 %vm3416_vm4, %v8841_v40 }
 0x49d   : > { %9941 = vmatmul.mubr.msk.bf16.gmra.mrb[8].mxu1 %vm439_vm1, %v11964_v8  ;;  %v5264_v8 = vld [vmem:[#allocation2 + $0x39] sm:$0xff] }
 0x49e   : > { %9944 = vmatprep.mubr.msk.bf16.mxu1 %vm439_vm1, %v11966_v28  ;;  %v5263_v28 = vld [vmem:[#allocation2 + $0x31] sm:$0xff] }
 0x4a5   : > { %9945 = vmatmul.mubr.msk.bf16.gmra.mrb[12].mxu1 %vm439_vm1, %v11972_v1  ;;  %v5295_v1 = vpack.c.bf16 %v5264_v8, %v5263_v28 }
 0x4a6   : > { %9948 = vmatprep.mubr.msk.bf16.mxu1 %vm439_vm1, %v11974_v21  ;;  %v5266_v21 = vld [vmem:[#allocation2 + $0x51] sm:$0xff] }
 0x4ad   : > { %9949 = vmatmul.mubr.msk.bf16.gmra.mrb[16].mxu1 %vm439_vm1, %v11980_v49  ;;  %v5268_v49 = vld [vmem:[#allocation2 + $0x69] sm:$0xff] }
 0x4ae   : > { %9952 = vmatprep.mubr.msk.bf16.mxu1 %vm439_vm1, %v11982_v57  ;;  %v5265_v57 = vld [vmem:[#allocation2 + $0x49] sm:$0xff] }
 0x4b5   : > { %9953 = vmatmul.mubr.msk.bf16.gmra.mrb[20].mxu1 %vm439_vm1, %v11988_v46  ;;  %v5296_v46 = vpack.c.bf16 %v5266_v21, %v5265_v57 }
 0x4b6   : > { %9956 = vmatprep.mubr.msk.bf16.mxu1 %vm439_vm1, %v11990_v6  ;;  %v5656_v6 = vsel %vm3416_vm4, %v8841_v40, 0 }
 0x4bd   : > { %9957 = vmatmul.mubr.msk.bf16.gmra.mrb[24].mxu1 %vm439_vm1, %v11996_v15  ;;  %v5267_v15 = vld [vmem:[#allocation2 + $0x61] sm:$0xff] }
 0x4be   : > { %9960 = vmatprep.mubr.msk.bf16.mxu1 %vm439_vm1, %v11998_v55  ;;  %v5297_v55 = vpack.c.bf16 %v5268_v49, %v5267_v15 }
 0x4c5   : > { %9961 = vmatmul.mubr.msk.bf16.gmra.mrb[28].mxu1 %vm439_vm1, %v12004_v23  ;;  %v5270_v23 = vld [vmem:[#allocation2 + $0x81] sm:$0xff] }
 0x4c6   : > { %9964 = vmatprep.mubr.msk.bf16.mxu1 %vm439_vm1, %v12110_v3  ;;  %v5298_v37 = vpack.c.bf16 %v5270_v23, %v5269_v38 }
 0x4cd   : > { %9965 = vmatmul.mubr.msk.bf16.gmra.mrb[32].mxu1 %vm439_vm1, %v5016_v16 }
 0x4ce   : > { %9970 = vmatprep.mubr.msk.bf16.mxu1 %vm439_vm1, %v5295_v1 }
 0x4d5   : > { %9971 = vmatmul.mubr.msk.bf16.vlgmr.msra.gmra.mrb[4].mxu1 %vm439_vm1, %v5296_v46 }
 0x4d6   : > { %10003 = vmatpush3.bf16.msra.mxu1 %v5656_v6  ;;  %9974 = vmatprep.mubr.msk.bf16.mxu1 %vm439_vm1, %v5297_v55 }
 0x4dd   : > { %9975 = vmatmul.mubr.msk.bf16.gmra.mrb[8].mxu1 %vm439_vm1, %v5298_v37  ;;  %v12362_v37 = vld [vmem:[#allocation3 + $0x1] sm:$0xff] }
 0x4de   : > { %9978 = vmatprep.mubr.msk.bf16.mxu1 %vm439_vm1, %v5299_v7 }
 0x4e5   : > { %9979 = vmatmul.mubr.msk.bf16.gmra.mrb[12].mxu1 %vm439_vm1, %v11874_v9  ;;  %v5293_v9 = vld [vmem:[#allocation2 + $0x199] sm:$0xff] }
 0x4e6   : > { %9982 = vmatprep.mubr.msk.bf16.mxu1 %vm439_vm1, %v11877_v17  ;;  %v5294_v17 = vld [vmem:[#allocation2 + $0x1a1] sm:$0xff] }
 0x4ed   : > { %9983 = vmatmul.mubr.msk.bf16.gmra.mrb[16].mxu1 %vm439_vm1, %v11890_v43  ;;  %v5310_v43 = vpack.c.bf16 %v5294_v17, %v5293_v9 }
 0x4ee   : > { %9986 = vmatprep.mubr.msk.bf16.mxu1 %vm439_vm1, %v11893_v4  ;;  %v5587_v4 = vld [vmem:[#allocation2 + $0x19a] sm:$0xff] }
 0x4f5   : > { %9987 = vmatmul.mubr.msk.bf16.gmra.mrb[20].mxu1 %vm439_vm1, %v11906_v0  ;;  %v5588_v0 = vld [vmem:[#allocation2 + $0x1a2] sm:$0xff] }
 0x4f6   : > { %9990 = vmatprep.mubr.msk.bf16.mxu1 %vm439_vm1, %v11909_v24  ;;  %v5604_v24 = vpack.c.bf16 %v5588_v0, %v5587_v4 }
 0x4fd   : > { %9991 = vmatmul.mubr.msk.bf16.gmra.mrb[24].mxu1 %vm439_vm1, %v11924_v32  ;;  %v8859_v32 = vld [vmem:[%s12981_s5 + $0x4] sm:$0xf] }
 0x4fe   : > { %9994 = vmatprep.mubr.msk.bf16.mxu1 %vm439_vm1, %v11927_v54  ;;  %10885 = vmatprep.subr.msk.bf16.mxu0 %vm3416_vm4, %v8859_v32  ;;  %v6042_v54 = vsel %vm3416_vm4, %v8859_v32, 0 }
 0x4ff   : > { %10037 = vmatpush3.bf16.msra.mxu0 %v6042_v54 }
 0x505   : > { %9995 = vmatmul.mubr.msk.bf16.gmra.mrb[28].mxu1 %vm439_vm1, %v11934_v36  ;;  %v12334_v36 = vld [vmem:[%s12981_s5] sm:$0xf] }
 0x506   : > { %9998 = vmatprep.mubr.msk.bf16.mxu1 %vm439_vm1, %v12149_v44  ;;  %10886 = vmatprep.subr.msk.bf16.mxu0 %vm3416_vm4, %v12334_v36 }
 0x50d   : > { %9999 = vmatmul.mubr.msk.bf16.gmra.mrb[32].mxu1 %vm439_vm1, %v5310_v43 }
 0x50e   : > { %10004 = vmatprep.mubr.msk.bf16.mxu1 %vm439_vm1, %v12013_v11  ;;  %v12341_v11 = vld [vmem:[%s12980_s4] ss:$0 sm:$0xff] }
 0x515   : > { %10005 = vmatmul.mubr.msk.bf16.vlgmr.msra.gmra.mrb[4].mxu1 %vm439_vm1, %v12023_v52 }
 0x516   : > { %10008 = vmatprep.mubr.msk.bf16.mxu1 %vm439_vm1, %v12025_v41 }
 0x51d   : > { %10009 = vmatmul.mubr.msk.bf16.gmra.mrb[8].mxu1 %vm439_vm1, %v12031_v48 }
 0x51e   : > { %10012 = vmatprep.mubr.msk.bf16.mxu1 %vm439_vm1, %v12033_v56 }
 0x525   : > { %10013 = vmatmul.mubr.msk.bf16.gmra.mrb[12].mxu1 %vm439_vm1, %v12039_v22 }
 0x526   : > { %10016 = vmatprep.mubr.msk.bf16.mxu1 %vm439_vm1, %v12041_v12 }
 0x52d   : > { %10017 = vmatmul.mubr.msk.bf16.gmra.mrb[16].mxu1 %vm439_vm1, %v12047_v34 }
 0x52e   : > { %10020 = vmatprep.mubr.msk.bf16.mxu1 %vm439_vm1, %v12049_v35 }
 0x535   : > { %10021 = vmatmul.mubr.msk.bf16.gmra.mrb[20].mxu1 %vm439_vm1, %v12055_v61 }
 0x536   : > { %10024 = vmatprep.mubr.msk.bf16.mxu1 %vm439_vm1, %v12057_v5 }
 0x53d   : > { %10025 = vmatmul.mubr.msk.bf16.gmra.mrb[24].mxu1 %vm439_vm1, %v12063_v53 }
 0x53e   : > { %10028 = vmatprep.mubr.msk.bf16.mxu1 %vm439_vm1, %v12065_v14 }
 0x545   : > { %10029 = vmatmul.mubr.msk.bf16.gmra.mrb[28].mxu1 %vm439_vm1, %v12071_v39 }
 0x546   : > { %10032 = vmatprep.mubr.msk.bf16.mxu1 %vm439_vm1, %v12188_v29 }
 0x54d   : > { %10033 = vmatmul.mubr.msk.bf16.gmra.mrb[32].mxu1 %vm439_vm1, %v5604_v24 }
 0x5e8   : > { %v10006_v52 = vpop.f32.mrb[4].mxu1 }
 0x5e9   : > { %v5860_v41 = vadd.f32 %v10006_v52, %v12341_v11  ;;  %v5692_v48 = vpop.f32.mrb[5].mxu1 }
 0x5ea   : > { %v5858_v56 = vadd.f32 %v12341_v11, %v5692_v48  ;;  %v10007_v22 = vpop.f32.mrb[6].mxu1 }
 0x5eb   : > { %v5892_v12 = vmax.f32 %v5860_v41, 0.0  ;;  %v5861_v34 = vadd.f32 %v10007_v22, %v12341_v11  ;;  %v5695_v35 = vpop.f32.mrb[7].mxu1 }
 0x5ec   : > { %v5890_v61 = vmax.f32 %v5858_v56, 0.0  ;;  %v5859_v5 = vadd.f32 %v12341_v11, %v5695_v35 }
 0x5ed   : > { %v5893_v18 = vmax.f32 %v5861_v34, 0.0 }
 0x5ee   : > { %v5922_v25 = vmax.f32 %v5890_v61, %v5892_v12  ;;  %v5891_v53 = vmax.f32 %v5859_v5, 0.0 }
 0x5f0   : > { %5938 = vst.msk [vmem:[#allocation4] sm:$0xff] %vm439_vm1, %v5922_v25  ;;  %v5923_v14 = vmax.f32 %v5891_v53, %v5893_v18  ;;  %v10010_v42 = vpop.f32.mrb[8].mxu1 }
 0x5f1   : > { %v5864_v45 = vadd.f32 %v10010_v42, %v12341_v11  ;;  %v5708_v39 = vpop.f32.mrb[9].mxu1 }
 0x5f2   : > { %5939 = vst.msk [vmem:[#allocation4 + $0x8] sm:$0xff] %vm439_vm1, %v5923_v14  ;;  %v5862_v58 = vadd.f32 %v12341_v11, %v5708_v39  ;;  %v10011_v59 = vpop.f32.mrb[10].mxu1 }
 0x5f3   : > { %v5896_v31 = vmax.f32 %v5864_v45, 0.0  ;;  %v5865_v60 = vadd.f32 %v10011_v59, %v12341_v11  ;;  %v5711_v3 = vpop.f32.mrb[11].mxu1 }
 0x5f4   : > { %v5894_v47 = vmax.f32 %v5862_v58, 0.0  ;;  %v5863_v26 = vadd.f32 %v12341_v11, %v5711_v3 }
 0x5f5   : > { %v5897_v33 = vmax.f32 %v5865_v60, 0.0 }
 0x5f6   : > { %v5924_v19 = vmax.f32 %v5894_v47, %v5896_v31  ;;  %v5895_v44 = vmax.f32 %v5863_v26, 0.0 }
 0x5f8   : > { %5940 = vst.msk [vmem:[#allocation4 + $0x10] sm:$0xff] %vm439_vm1, %v5924_v19  ;;  %v5925_v62 = vmax.f32 %v5895_v44, %v5897_v33  ;;  %v10014_v50 = vpop.f32.mrb[12].mxu1 }
 0x5f9   : > { %v5954_v13 = vld [vmem:[#allocation4] ss:$2 sm:$0xff]  ;;  %v5970_v20 = vld [vmem:[#allocation4 + $0x1] ss:$2 sm:$0xff]  ;;  %v5868_v29 = vadd.f32 %v10014_v50, %v12341_v11  ;;  %v5724_v27 = vpop.f32.mrb[13].mxu1 }
 0x5fa   : > { %v5985_v40 = vmax.f32 %v5954_v13, %v5970_v20  ;;  %5941 = vst.msk [vmem:[#allocation4 + $0x18] sm:$0xff] %vm439_vm1, %v5925_v62  ;;  %v5866_v51 = vadd.f32 %v12341_v11, %v5724_v27  ;;  %v10015_v10 = vpop.f32.mrb[14].mxu1 }
 0x5fb   : > { %v5900_v16 = vmax.f32 %v5868_v29, 0.0  ;;  %v5869_v8 = vadd.f32 %v10015_v10, %v12341_v11  ;;  %v5727_v28 = vpop.f32.mrb[15].mxu1 }
 0x5fc   : > { %5994 = vst.msk [vmem:[#allocation3 + $0x11] sm:$0xff] %vm439_vm1, %v5985_v40  ;;  %v5898_v1 = vmax.f32 %v5866_v51, 0.0  ;;  %v5867_v21 = vadd.f32 %v12341_v11, %v5727_v28 }
 0x5fd   : > { %v5901_v49 = vmax.f32 %v5869_v8, 0.0  ;;  %v6122_v8 = vsel %vm3416_vm4, %v12334_v36, 0 }
 0x5fe   : > { %v5926_v57 = vmax.f32 %v5898_v1, %v5900_v16  ;;  %v5899_v46 = vmax.f32 %v5867_v21, 0.0  ;;  %v12401_v1 = vld [vmem:[%s12981_s5 + $0x8] sm:$0xf] }
 0x600   : > { %5942 = vst.msk [vmem:[#allocation4 + $0x20] sm:$0xff] %vm439_vm1, %v5926_v57  ;;  %v5927_v6 = vmax.f32 %v5899_v46, %v5901_v49  ;;  %v10018_v15 = vpop.f32.mrb[16].mxu1 }
 0x601   : > { %v5956_v55 = vld [vmem:[#allocation4 + $0x10] ss:$2 sm:$0xff]  ;;  %v5972_v23 = vld [vmem:[#allocation4 + $0x11] ss:$2 sm:$0xff]  ;;  %v5872_v30 = vadd.f32 %v10018_v15, %v12341_v11  ;;  %v5740_v38 = vpop.f32.mrb[17].mxu1 }
 0x602   : > { %v5986_v63 = vmax.f32 %v5956_v55, %v5972_v23  ;;  %5943 = vst.msk [vmem:[#allocation4 + $0x28] sm:$0xff] %vm439_vm1, %v5927_v6  ;;  %v5870_v7 = vadd.f32 %v12341_v11, %v5740_v38  ;;  %v10019_v9 = vpop.f32.mrb[18].mxu1 }
 0x603   : > { %v5904_v17 = vmax.f32 %v5872_v30, 0.0  ;;  %v5873_v43 = vadd.f32 %v10019_v9, %v12341_v11  ;;  %v5743_v4 = vpop.f32.mrb[19].mxu1  ;;  %v12367_v0 = vld [vmem:[#allocation3 + $0x11] sm:$0xff] }
 0x604   : > { %5995 = vst.msk [vmem:[#allocation3 + $0x21] sm:$0xff] %vm439_vm1, %v5986_v63  ;;  %v5902_v24 = vmax.f32 %v5870_v7, 0.0  ;;  %v5871_v32 = vadd.f32 %v12341_v11, %v5743_v4  ;;  %v6023_v54 = vpack.c.bf16 %v12367_v0, %v12362_v37 }
 0x605   : > { %v5905_v52 = vmax.f32 %v5873_v43, 0.0 }
 0x606   : > { %v5928_v41 = vmax.f32 %v5902_v24, %v5904_v17  ;;  %v5903_v48 = vmax.f32 %v5871_v32, 0.0  ;;  %10038 = vmatprep.mubr.msk.bf16.mxu0 %vm439_vm1, %v6023_v54 }
 0x608   : > { %5944 = vst.msk [vmem:[#allocation4 + $0x30] sm:$0xff] %vm439_vm1, %v5928_v41  ;;  %v5929_v56 = vmax.f32 %v5903_v48, %v5905_v52  ;;  %v10022_v22 = vpop.f32.mrb[20].mxu1 }
 0x609   : > { %v5958_v12 = vld [vmem:[#allocation4 + $0x20] ss:$2 sm:$0xff]  ;;  %v5974_v34 = vld [vmem:[#allocation4 + $0x21] ss:$2 sm:$0xff]  ;;  %v5876_v35 = vadd.f32 %v10022_v22, %v12341_v11  ;;  %v5756_v61 = vpop.f32.mrb[21].mxu1 }
 0x60a   : > { %v5987_v5 = vmax.f32 %v5958_v12, %v5974_v34  ;;  %5945 = vst.msk [vmem:[#allocation4 + $0x38] sm:$0xff] %vm439_vm1, %v5929_v56  ;;  %v5874_v18 = vadd.f32 %v12341_v11, %v5756_v61  ;;  %v10023_v25 = vpop.f32.mrb[22].mxu1 }
 0x60b   : > { %v5908_v53 = vmax.f32 %v5876_v35, 0.0  ;;  %v5877_v14 = vadd.f32 %v10023_v25, %v12341_v11  ;;  %v5759_v42 = vpop.f32.mrb[23].mxu1  ;;  %v12386_v27 = vld [vmem:[#allocation3 + $0x21] sm:$0xff] }
 0x60c   : > { %5996 = vst.msk [vmem:[#allocation3 + $0x31] sm:$0xff] %vm439_vm1, %v5987_v5  ;;  %v5906_v45 = vmax.f32 %v5874_v18, 0.0  ;;  %v5875_v39 = vadd.f32 %v12341_v11, %v5759_v42 }
 0x60d   : > { %v5909_v58 = vmax.f32 %v5877_v14, 0.0 }
 0x60e   : > { %v5930_v59 = vmax.f32 %v5906_v45, %v5908_v53  ;;  %v5907_v31 = vmax.f32 %v5875_v39, 0.0 }
 0x610   : > { %5946 = vst.msk [vmem:[#allocation4 + $0x40] sm:$0xff] %vm439_vm1, %v5930_v59  ;;  %v5931_v60 = vmax.f32 %v5907_v31, %v5909_v58  ;;  %v10026_v3 = vpop.f32.mrb[24].mxu1 }
 0x611   : > { %v5960_v47 = vld [vmem:[#allocation4 + $0x30] ss:$2 sm:$0xff]  ;;  %v5976_v26 = vld [vmem:[#allocation4 + $0x31] ss:$2 sm:$0xff]  ;;  %v5880_v33 = vadd.f32 %v10026_v3, %v12341_v11  ;;  %v5772_v19 = vpop.f32.mrb[25].mxu1 }
 0x612   : > { %v5988_v44 = vmax.f32 %v5960_v47, %v5976_v26  ;;  %5947 = vst.msk [vmem:[#allocation4 + $0x48] sm:$0xff] %vm439_vm1, %v5931_v60  ;;  %v5878_v62 = vadd.f32 %v12341_v11, %v5772_v19  ;;  %v10027_v50 = vpop.f32.mrb[26].mxu1  ;;  %v12434_v19 = vld [vmem:[#allocation3] sm:$0xff] }
 0x613   : > { %v5912_v13 = vmax.f32 %v5880_v33, 0.0  ;;  %v5881_v20 = vadd.f32 %v10027_v50, %v12341_v11  ;;  %v5775_v29 = vpop.f32.mrb[27].mxu1  ;;  %v12388_v40 = vld [vmem:[#allocation3 + $0x31] sm:$0xff] }
 0x614   : > { %5997 = vst.msk [vmem:[#allocation3 + $0x41] sm:$0xff] %vm439_vm1, %v5988_v44  ;;  %v5910_v51 = vmax.f32 %v5878_v62, 0.0  ;;  %v5879_v10 = vadd.f32 %v12341_v11, %v5775_v29  ;;  %v12394_v16 = vpack.c.bf16 %v12388_v40, %v12386_v27  ;;  %v6003_v44 = vld [vmem:[#allocation3 + $0x10] sm:$0xff]  ;;  %v10943_v29 = vld [vmem:[%s12983_s7 + $0x8] sm:$0xff]  }
 0x615   : > { %v5913_v28 = vmax.f32 %v5881_v20, 0.0  ;;  %v6010_v20 = vpack.c.bf16 %v6003_v44, %v12434_v19  ;;  %10126 = vmatprep.subr.bf16.mxu1 %v10943_v29 }
 0x616   : > { %v5932_v21 = vmax.f32 %v5910_v51, %v5912_v13  ;;  %v5911_v49 = vmax.f32 %v5879_v10, 0.0  ;;  %10039 = vmatmul.mubr.msk.bf16.vlgmr.msra.gmra.mrb[32].mxu0 %vm439_vm1, %v12394_v16  ;;  %v6005_v51 = vld [vmem:[#allocation3 + $0x30] sm:$0xff]  ;;  %10127 = vmatpush3.bf16.msra.mxu1 %v10943_v29 }
 0x617   : > { %10047 = vmatpush3.bf16.msra.mxu0 %v6122_v8  ;;  %v6004_v8 = vld [vmem:[#allocation3 + $0x20] sm:$0xff] }
 0x618   : > { %5948 = vst.msk [vmem:[#allocation4 + $0x50] sm:$0xff] %vm439_vm1, %v5932_v21  ;;  %v5933_v57 = vmax.f32 %v5911_v49, %v5913_v28  ;;  %v10030_v46 = vpop.f32.mrb[28].mxu1  ;;  %10887 = vmatprep.subr.msk.bf16.mxu0 %vm3416_vm4, %v12401_v1  ;;  %v12452_v28 = vpack.c.bf16 %v6005_v51, %v6004_v8  ;;  %v6216_v21 = vsel %vm3416_vm4, %v12401_v1, 0  ;;  %v6190_v1 = vld [vmem:[#allocation3 + $0x12] sm:$0xff] }
 0x619   : > { %v5962_v36 = vld [vmem:[#allocation4 + $0x40] ss:$2 sm:$0xff]  ;;  %v5978_v6 = vld [vmem:[#allocation4 + $0x41] ss:$2 sm:$0xff]  ;;  %v5884_v15 = vadd.f32 %v10030_v46, %v12341_v11  ;;  %v5788_v55 = vpop.f32.mrb[29].mxu1 }
 0x61a   : > { %v5989_v23 = vmax.f32 %v5962_v36, %v5978_v6  ;;  %5949 = vst.msk [vmem:[#allocation4 + $0x58] sm:$0xff] %vm439_vm1, %v5933_v57  ;;  %v5882_v30 = vadd.f32 %v12341_v11, %v5788_v55  ;;  %v10031_v38 = vpop.f32.mrb[30].mxu1  ;;  %v8873_v46 = vld [vmem:[%s12981_s5 + $0xc] sm:$0xf]  ;;  %v12466_v6 = vld [vmem:[#allocation3 + $0x2] sm:$0xff] }
 0x61b   : > { %v5916_v63 = vmax.f32 %v5884_v15, 0.0  ;;  %v5885_v7 = vadd.f32 %v10031_v38, %v12341_v11  ;;  %v5791_v9 = vpop.f32.mrb[31].mxu1  ;;  %v12419_v25 = vld [vmem:[#allocation3 + $0x41] sm:$0xff] }
 0x61c   : > { %5998 = vst.msk [vmem:[#allocation3 + $0x51] sm:$0xff] %vm439_vm1, %v5989_v23  ;;  %v5914_v17 = vmax.f32 %v5882_v30, 0.0  ;;  %v5883_v43 = vadd.f32 %v12341_v11, %v5791_v9  ;;  %v6006_v49 = vld [vmem:[#allocation3 + $0x40] sm:$0xff]  ;;  %v6197_v23 = vpack.c.bf16 %v6190_v1, %v12466_v6  ;;  %v6192_v30 = vld [vmem:[#allocation3 + $0x32] sm:$0xff]  ;;  %v6318_v9 = vsel %vm3416_vm4, %v8873_v46, 0 }
 0x61d   : > { %v5917_v4 = vmax.f32 %v5885_v7, 0.0 }
 0x61e   : > { %v5934_v24 = vmax.f32 %v5914_v17, %v5916_v63  ;;  %v5915_v32 = vmax.f32 %v5883_v43, 0.0  ;;  %v6191_v63 = vld [vmem:[#allocation3 + $0x22] sm:$0xff] }
 0x61f   : > { %v12474_v7 = vpack.c.bf16 %v6192_v30, %v6191_v63  ;;  %v6193_v17 = vld [vmem:[#allocation3 + $0x42] sm:$0xff] }
 0x620   : > { %5950 = vst.msk [vmem:[#allocation4 + $0x60] sm:$0xff] %vm439_vm1, %v5934_v24  ;;  %v5935_v54 = vmax.f32 %v5915_v32, %v5917_v4  ;;  %v10034_v52 = vpop.f32.mrb[32].mxu1  ;;  %v8878_v4 = vld [vmem:[%s12981_s5 + $0x10] sm:$0xf] }
 0x621   : > { %v5964_v41 = vld [vmem:[#allocation4 + $0x50] ss:$2 sm:$0xff]  ;;  %v5980_v48 = vld [vmem:[#allocation4 + $0x51] ss:$2 sm:$0xff]  ;;  %v5888_v56 = vadd.f32 %v10034_v52, %v12341_v11  ;;  %v5804_v22 = vpop.f32.mrb[33].mxu1  ;;  %v6299_v52 = vpack.c.bf16 %v6004_v8, %v6003_v44 }
 0x622   : > { %v5990_v12 = vmax.f32 %v5964_v41, %v5980_v48  ;;  %5951 = vst.msk [vmem:[#allocation4 + $0x68] sm:$0xff] %vm439_vm1, %v5935_v54  ;;  %v5886_v34 = vadd.f32 %v12341_v11, %v5804_v22  ;;  %v10035_v35 = vpop.f32.mrb[34].mxu1  ;;  %v6300_v41 = vpack.c.bf16 %v6006_v49, %v6005_v51  ;;  %v6420_v48 = vsel %vm3416_vm4, %v8878_v4, 0  ;;  %v8883_v22 = vld [vmem:[%s12981_s5 + $0x14] sm:$0xf]  ;;  %v10944_v44 = vld [vmem:[%s12983_s7] sm:$0xff]  }
 0x623   : > { %v5920_v61 = vmax.f32 %v5888_v56, 0.0  ;;  %v5889_v5 = vadd.f32 %v10035_v35, %v12341_v11  ;;  %v5807_v18 = vpop.f32.mrb[35].mxu1  ;;  %v12421_v53 = vld [vmem:[#allocation3 + $0x51] sm:$0xff]  ;;  %v6401_v35 = vpack.c.bf16 %v12386_v27, %v12367_v0  ;;  %10136 = vmatprep.subr.bf16.mxu1 %v10944_v44 }
 0x624   : > { %5999 = vst.msk [vmem:[#allocation3 + $0x61] sm:$0xff] %vm439_vm1, %v5990_v12  ;;  %v5918_v14 = vmax.f32 %v5886_v34, 0.0  ;;  %v5887_v42 = vadd.f32 %v12341_v11, %v5807_v18  ;;  %v12427_v45 = vpack.c.bf16 %v12421_v53, %v12419_v25  ;;  %v6007_v10 = vld [vmem:[#allocation3 + $0x50] sm:$0xff] }
 0x625   : > { %v5921_v39 = vmax.f32 %v5889_v5, 0.0  ;;  %v12456_v57 = vpack.c.bf16 %v6007_v10, %v6006_v49  ;;  %v6194_v38 = vld [vmem:[#allocation3 + $0x52] sm:$0xff]  ;;  %v6522_v5 = vsel %vm3416_vm4, %v8883_v22, 0 }
 0x626   : > { %v5936_v58 = vmax.f32 %v5918_v14, %v5920_v61  ;;  %v5919_v59 = vmax.f32 %v5887_v42, 0.0  ;;  %10042 = vmatprep.mubr.msk.bf16.mxu0 %vm439_vm1, %v12427_v45  ;;  %v12477_v43 = vpack.c.bf16 %v6194_v38, %v6193_v17  ;;  %v6402_v61 = vpack.c.bf16 %v12419_v25, %v12388_v40  ;;  %v8888_v14 = vld [vmem:[%s12981_s5 + $0x18] sm:$0xf] }
 0x627   : > { %v6503_v40 = vpack.c.bf16 %v6191_v63, %v6190_v1  ;;  %v6504_v25 = vpack.c.bf16 %v6193_v17, %v6192_v30 }
 0x628   : > { %5952 = vst.msk [vmem:[#allocation4 + $0x70] sm:$0xff] %vm439_vm1, %v5936_v58  ;;  %v5937_v31 = vmax.f32 %v5919_v59, %v5921_v39  ;;  %v8893_v39 = vld [vmem:[%s12981_s5 + $0x1c] sm:$0xf] }
 0x629   : > { %v5966_v60 = vld [vmem:[#allocation4 + $0x60] ss:$2 sm:$0xff]  ;;  %v5982_v3 = vld [vmem:[#allocation4 + $0x61] ss:$2 sm:$0xff] }
 0x62a   : > { %v5991_v47 = vmax.f32 %v5966_v60, %v5982_v3  ;;  %5953 = vst.msk [vmem:[#allocation4 + $0x78] sm:$0xff] %vm439_vm1, %v5937_v31  ;;  %v6727_v31 = vsel %vm3416_vm4, %v8893_v39, 0  ;;  %v8898_v60 = vld [vmem:[%s12981_s5 + $0x20] sm:$0xf] }
 0x62b   : > { %v12436_v62 = vld [vmem:[#allocation3 + $0x61] sm:$0xff]  ;;  %v12533_v3 = vld [vmem:[#allocation3 + $0x90] sm:$0xff] }
 0x62c   : > { %6000 = vst.msk [vmem:[#allocation3 + $0x71] sm:$0xff] %vm439_vm1, %v5991_v47  ;;  %v6008_v15 = vld [vmem:[#allocation3 + $0x60] sm:$0xff]  ;;  %v6403_v18 = vpack.c.bf16 %v12436_v62, %v12421_v53  ;;  %v6625_v53 = vsel %vm3416_vm4, %v8888_v14, 0 }
 0x62d   : > { %v6195_v32 = vld [vmem:[#allocation3 + $0x62] sm:$0xff]  ;;  %v6301_v56 = vpack.c.bf16 %v6008_v15, %v6007_v10 }
 0x62e   : > { %v6505_v42 = vpack.c.bf16 %v6195_v32, %v6194_v38 }
 0x631   : > { %v5968_v11 = vld [vmem:[#allocation4 + $0x70] ss:$2 sm:$0xff]  ;;  %v5984_v26 = vld [vmem:[#allocation4 + $0x71] ss:$2 sm:$0xff] }
 0x632   : > { %v5992_v33 = vmax.f32 %v5968_v11, %v5984_v26  ;;  %v6829_v11 = vsel %vm3416_vm4, %v8898_v60, 0  ;;  %v12544_v26 = vld [vmem:[#allocation3 + $0x91] sm:$0xff] }
 0x633   : > { %v12438_v50 = vld [vmem:[#allocation3 + $0x71] sm:$0xff] }
 0x634   : > { %6001 = vst.msk [vmem:[#allocation3 + $0x81] sm:$0xff] %vm439_vm1, %v5992_v33  ;;  %v12443_v13 = vpack.c.bf16 %v12438_v50, %v12436_v62  ;;  %v6009_v36 = vld [vmem:[#allocation3 + $0x70] sm:$0xff] }
 0x635   : > { %v12468_v55 = vpack.c.bf16 %v6009_v36, %v6008_v15  ;;  %v6196_v24 = vld [vmem:[#allocation3 + $0x72] sm:$0xff]  ;;  %v8903_v62 = vld [vmem:[%s12982_s6] ss:$0 sm:$0xff] }
 0x636   : > { %10043 = vmatmul.mubr.msk.bf16.gmra.mrb[36].mxu0 %vm439_vm1, %v12443_v13  ;;  %v6200_v54 = vpack.c.bf16 %v6196_v24, %v6195_v32 }
 0x637   : > { %10048 = vmatprep.mubr.msk.bf16.mxu0 %vm439_vm1, %v6010_v20 }
 0x63b   : > { %v6298_v12 = vld [vmem:[#allocation3 + $0x80] sm:$0xff] }
 0x63c   : > { %v6302_v34 = vpack.c.bf16 %v6298_v12, %v6009_v36  ;;  %v6400_v0 = vld [vmem:[#allocation3 + $0x81] sm:$0xff]  ;;  %v6609_v47 = vpack.c.bf16 %v12533_v3, %v6298_v12 }
 0x63d   : > { %v6404_v27 = vpack.c.bf16 %v6400_v0, %v12438_v50  ;;  %v6502_v58 = vld [vmem:[#allocation3 + $0x82] sm:$0xff]  ;;  %v6711_v33 = vpack.c.bf16 %v12544_v26, %v6400_v0 }
 0x63e   : > { %10049 = vmatmul.mubr.msk.bf16.vlgmr.msra.gmra.mrb[32].mxu0 %vm439_vm1, %v12452_v28  ;;  %v6506_v59 = vpack.c.bf16 %v6502_v58, %v6196_v24 }
 0x63f   : > { %10057 = vmatpush3.bf16.msra.mxu0 %v6216_v21  ;;  %10052 = vmatprep.mubr.msk.bf16.mxu0 %vm439_vm1, %v12456_v57 }
 0x640   : > { %10888 = vmatprep.subr.msk.bf16.mxu0 %vm3416_vm4, %v8873_v46 }
 0x646   : > { %10053 = vmatmul.mubr.msk.bf16.gmra.mrb[36].mxu0 %vm439_vm1, %v12468_v55 }
 0x647   : > { %10058 = vmatprep.mubr.msk.bf16.mxu0 %vm439_vm1, %v6197_v23 }
 0x64e   : > { %10059 = vmatmul.mubr.msk.bf16.vlgmr.msra.gmra.mrb[32].mxu0 %vm439_vm1, %v12474_v7 }
 0x64f   : > { %10067 = vmatpush3.bf16.msra.mxu0 %v6318_v9  ;;  %10062 = vmatprep.mubr.msk.bf16.mxu0 %vm439_vm1, %v12477_v43 }
 0x650   : > { %10889 = vmatprep.subr.msk.bf16.mxu0 %vm3416_vm4, %v8878_v4 }
 0x656   : > { %10063 = vmatmul.mubr.msk.bf16.gmra.mrb[36].mxu0 %vm439_vm1, %v6200_v54 }
 0x657   : > { %10068 = vmatprep.mubr.msk.bf16.mxu0 %vm439_vm1, %v6299_v52 }
 0x65e   : > { %10069 = vmatmul.mubr.msk.bf16.vlgmr.msra.gmra.mrb[32].mxu0 %vm439_vm1, %v6300_v41  ;;  %v10945_v41 = vld [vmem:[%s12983_s7 + $0x10] sm:$0xff]  }
 0x65f   : > { %10077 = vmatpush3.bf16.msra.mxu0 %v6420_v48  ;;  %10072 = vmatprep.mubr.msk.bf16.mxu0 %vm439_vm1, %v6301_v56 }
 0x660   : > { %10890 = vmatprep.subr.msk.bf16.mxu0 %vm3416_vm4, %v8883_v22 }
 0x666   : > { %10073 = vmatmul.mubr.msk.bf16.gmra.mrb[36].mxu0 %vm439_vm1, %v6302_v34 }
 0x667   : > { %10078 = vmatprep.mubr.msk.bf16.mxu0 %vm439_vm1, %v6401_v35 }
 0x66e   : > { %10079 = vmatmul.mubr.msk.bf16.vlgmr.msra.gmra.mrb[32].mxu0 %vm439_vm1, %v6402_v61 }
 0x66f   : > { %10087 = vmatpush3.bf16.msra.mxu0 %v6522_v5  ;;  %10082 = vmatprep.mubr.msk.bf16.mxu0 %vm439_vm1, %v6403_v18 }
 0x670   : > { %10891 = vmatprep.subr.msk.bf16.mxu0 %vm3416_vm4, %v8888_v14 }
 0x676   : > { %10083 = vmatmul.mubr.msk.bf16.gmra.mrb[36].mxu0 %vm439_vm1, %v6404_v27 }
 0x677   : > { %10088 = vmatprep.mubr.msk.bf16.mxu0 %vm439_vm1, %v6503_v40  ;;  %v10946_v40 = vld [vmem:[%s12983_s7 + $0x18] sm:$0xff]  }
 0x67e   : > { %10089 = vmatmul.mubr.msk.bf16.vlgmr.msra.gmra.mrb[32].mxu0 %vm439_vm1, %v6504_v25 }
 0x67f   : > { %10097 = vmatpush3.bf16.msra.mxu0 %v6625_v53  ;;  %10092 = vmatprep.mubr.msk.bf16.mxu0 %vm439_vm1, %v6505_v42 }
 0x680   : > { %10892 = vmatprep.subr.msk.bf16.mxu0 %vm3416_vm4, %v8893_v39 }
 0x686   : > { %10093 = vmatmul.mubr.msk.bf16.gmra.mrb[36].mxu0 %vm439_vm1, %v6506_v59 }
 0x687   : > { %10098 = vmatprep.mubr.msk.bf16.mxu0 %vm439_vm1, %v12452_v28 }
 0x68e   : > { %10099 = vmatmul.mubr.msk.bf16.vlgmr.msra.gmra.mrb[32].mxu0 %vm439_vm1, %v12456_v57 }
 0x68f   : > { %10107 = vmatpush3.bf16.msra.mxu0 %v6727_v31  ;;  %10102 = vmatprep.mubr.msk.bf16.mxu0 %vm439_vm1, %v12468_v55 }
 0x690   : > { %10893 = vmatprep.subr.msk.bf16.mxu0 %vm3416_vm4, %v8898_v60 }
 0x696   : > { %10103 = vmatmul.mubr.msk.bf16.gmra.mrb[36].mxu0 %vm439_vm1, %v6609_v47 }
 0x697   : > { %10108 = vmatprep.mubr.msk.bf16.mxu0 %vm439_vm1, %v12394_v16  ;;  %v12553_v16 = vld [vmem:[#allocation3 + $0x92] sm:$0xff] }
 0x69e   : > { %10109 = vmatmul.mubr.msk.bf16.vlgmr.msra.gmra.mrb[32].mxu0 %vm439_vm1, %v12427_v45  ;;  %v6813_v45 = vpack.c.bf16 %v12553_v16, %v6502_v58 }
 0x69f   : > { %10117 = vmatpush3.bf16.msra.mxu0 %v6829_v11  ;;  %10112 = vmatprep.mubr.msk.bf16.mxu0 %vm439_vm1, %v12443_v13 }
 0x6a6   : > { %10113 = vmatmul.mubr.msk.bf16.gmra.mrb[36].mxu0 %vm439_vm1, %v6711_v33  ;;  %v10947_v33 = vld [vmem:[%s12983_s7 + $0x20] sm:$0xff]  }
 0x6a7   : > { %10118 = vmatprep.mubr.msk.bf16.mxu0 %vm439_vm1, %v12474_v7 }
 0x6ae   : > { %10119 = vmatmul.mubr.msk.bf16.vlgmr.msra.gmra.mrb[32].mxu0 %vm439_vm1, %v12477_v43 }
 0x6af   : > { %10122 = vmatprep.mubr.msk.bf16.mxu0 %vm439_vm1, %v6200_v54 }
 0x6b6   : > { %10123 = vmatmul.mubr.msk.bf16.gmra.mrb[36].mxu0 %vm439_vm1, %v6813_v45 }
 0x781   : > { %v10120_v50 = vpop.f32.mrb[32].mxu0 }
 0x782   : > { %v6913_v13 = vadd.f32 %v10120_v50, %v8903_v62  ;;  %v6865_v20 = vpop.f32.mrb[33].mxu0 }
 0x783   : > { %v6911_v29 = vadd.f32 %v8903_v62, %v6865_v20  ;;  %v10121_v51 = vpop.f32.mrb[34].mxu0  ;;  %v10948_v20 = vld [vmem:[%s12983_s7 + $0x28] sm:$0xff]  }
 0x784   : > { %v6921_v10 = vmax.f32 %v6913_v13, 0.0  ;;  %v6914_v8 = vadd.f32 %v10121_v51, %v8903_v62  ;;  %v6868_v28 = vpop.f32.mrb[35].mxu0 }
 0x785   : > { %v6919_v21 = vmax.f32 %v6911_v29, 0.0  ;;  %v6912_v49 = vadd.f32 %v8903_v62, %v6868_v28 }
 0x786   : > { %6929 = vst.msk [vmem:[#allocation3 + $0x31] sm:$0xff] %vm495_vm5, %v6921_v10  ;;  %v6922_v57 = vmax.f32 %v6914_v8, 0.0 }
 0x787   : > { %6927 = vst.msk [vmem:[#allocation3 + $0x11] sm:$0xff] %vm495_vm5, %v6919_v21  ;;  %v6920_v46 = vmax.f32 %v6912_v49, 0.0  ;;  %v10949_v21 = vld [vmem:[%s12983_s7 + $0x30] sm:$0xff]  }
 0x788   : > { %6930 = vst.msk [vmem:[#allocation3 + $0x41] sm:$0xff] %vm495_vm5, %v6922_v57 }
 0x789   : > { %6928 = vst.msk [vmem:[#allocation3 + $0x21] sm:$0xff] %vm495_vm5, %v6920_v46  ;;  %v10124_v36 = vpop.f32.mrb[36].mxu0 }
 0x78a   : > { %v6917_v1 = vadd.f32 %v10124_v36, %v8903_v62  ;;  %v6881_v15 = vpop.f32.mrb[37].mxu0 }
 0x78b   : > { %v6915_v55 = vadd.f32 %v8903_v62, %v6881_v15  ;;  %v10125_v23 = vpop.f32.mrb[38].mxu0  ;;  %v10950_v15 = vld [vmem:[%s12983_s7 + $0x38] sm:$0xff]  }
 0x78c   : > { %v6925_v30 = vmax.f32 %v6917_v1, 0.0  ;;  %v6918_v38 = vadd.f32 %v10125_v23, %v8903_v62  ;;  %v6884_v63 = vpop.f32.mrb[39].mxu0 }
 0x78d   : > { %v6923_v7 = vmax.f32 %v6915_v55, 0.0  ;;  %v6916_v9 = vadd.f32 %v8903_v62, %v6884_v63  ;;  %v12576_v54 = vld [vmem:[#allocation3 + $0x31] sm:$0xff] }
 0x78e   : > { %6933 = vst.msk [vmem:[#allocation3 + $0x71] sm:$0xff] %vm495_vm5, %v6925_v30  ;;  %v6926_v17 = vmax.f32 %v6918_v38, 0.0  ;;  %v12568_v43 = vld [vmem:[#allocation3 + $0x11] sm:$0xff] }
 0x78f   : > { %6931 = vst.msk [vmem:[#allocation3 + $0x51] sm:$0xff] %vm495_vm5, %v6923_v7  ;;  %v6924_v4 = vmax.f32 %v6916_v9, 0.0  ;;  %v6957_v24 = vpack.c.bf16 %v12568_v43, %v12362_v37  ;;  %v6953_v37 = vld [vmem:[#allocation3 + $0x41] sm:$0xff]  ;;  %v6936_v22 = vld [vmem:[#allocation3 + $0x10] sm:$0xff] }
 0x790   : > { %6934 = vst.msk [vmem:[#allocation3 + $0x81] sm:$0xff] %vm495_vm5, %v6926_v17  ;;  %v12574_v32 = vld [vmem:[#allocation3 + $0x21] sm:$0xff]  ;;  %v6943_v61 = vpack.c.bf16 %v6936_v22, %v12434_v19  ;;  %v6938_v14 = vld [vmem:[#allocation3 + $0x30] sm:$0xff]  ;;  %v7351_v28 = vpack.c.bf16 %v6953_v37, %v12576_v54 }
 0x791   : > { %6932 = vst.msk [vmem:[#allocation3 + $0x61] sm:$0xff] %vm495_vm5, %v6924_v4  ;;  %10128 = vmatprep.mubr.msk.bf16.mxu1 %vm495_vm5, %v6957_v24  ;;  %v12582_v52 = vpack.c.bf16 %v12576_v54, %v12574_v32  ;;  %v6937_v5 = vld [vmem:[#allocation3 + $0x20] sm:$0xff]  ;;  %v7131_v53 = vld [vmem:[#allocation3 + $0x12] sm:$0xff]  ;;  %v7350_v8 = vpack.c.bf16 %v12574_v32, %v12568_v43  ;;  %v8965_v9 = vld [vmem:[%s12984_s8] ss:$0 sm:$0xff] }
 0x792   : > { %v12605_v0 = vpack.c.bf16 %v6938_v14, %v6937_v5  ;;  %v6939_v27 = vld [vmem:[#allocation3 + $0x40] sm:$0xff]  ;;  %v7138_v58 = vpack.c.bf16 %v7131_v53, %v12466_v6  ;;  %v7133_v60 = vld [vmem:[#allocation3 + $0x32] sm:$0xff]  ;;  %v7244_v50 = vpack.c.bf16 %v6937_v5, %v6936_v22 }
 0x793   : > { %10129 = vmatmul.mubr.msk.bf16.vlgmr.msra.gmra.mrb[36].mxu1 %vm495_vm5, %v12582_v52  ;;  %v7132_v59 = vld [vmem:[#allocation3 + $0x22] sm:$0xff]  ;;  %v7245_v13 = vpack.c.bf16 %v6939_v27, %v6938_v14  ;;  %v10951_v38 = vld [vmem:[%s12983_s7 + $0x40] sm:$0xff]  }
 0x794   : > { %10137 = vmatpush3.bf16.msra.mxu1 %v10944_v44  ;;  %v12619_v47 = vpack.c.bf16 %v7133_v60, %v7132_v59  ;;  %v7134_v11 = vld [vmem:[#allocation3 + $0x42] sm:$0xff]  ;;  %v7456_v36 = vpack.c.bf16 %v7132_v59, %v7131_v53 }
 0x795   : > { %10146 = vmatprep.subr.bf16.mxu1 %v10945_v41  ;;  %v12594_v34 = vld [vmem:[#allocation3 + $0x71] sm:$0xff]  ;;  %v7457_v1 = vpack.c.bf16 %v7134_v11, %v7133_v60 }
 0x796   : > { %v12589_v48 = vld [vmem:[#allocation3 + $0x51] sm:$0xff] }
 0x797   : > { %v12592_v56 = vpack.c.bf16 %v12589_v48, %v6953_v37  ;;  %v6940_v18 = vld [vmem:[#allocation3 + $0x50] sm:$0xff]  ;;  %v7243_v51 = vld [vmem:[#allocation3 + $0x80] sm:$0xff] }
 0x798   : > { %v6955_v12 = vld [vmem:[#allocation3 + $0x61] sm:$0xff]  ;;  %v12610_v25 = vpack.c.bf16 %v6940_v18, %v6939_v27  ;;  %v6942_v42 = vld [vmem:[#allocation3 + $0x70] sm:$0xff]  ;;  %v7565_v63 = vpack.c.bf16 %v12533_v3, %v7243_v51 }
 0x799   : > { %10132 = vmatprep.mubr.msk.bf16.mxu1 %vm495_vm5, %v12592_v56  ;;  %v12599_v35 = vpack.c.bf16 %v12594_v34, %v6955_v12  ;;  %v6941_v19 = vld [vmem:[#allocation3 + $0x60] sm:$0xff]  ;;  %v7135_v31 = vld [vmem:[#allocation3 + $0x52] sm:$0xff]  ;;  %v7247_v10 = vpack.c.bf16 %v7243_v51, %v6942_v42  ;;  %v7352_v49 = vpack.c.bf16 %v6955_v12, %v12589_v48 }
 0x79a   : > { %v6946_v39 = vpack.c.bf16 %v6942_v42, %v6941_v19  ;;  %v7140_v45 = vpack.c.bf16 %v7135_v31, %v7134_v11  ;;  %v7136_v6 = vld [vmem:[#allocation3 + $0x62] sm:$0xff]  ;;  %v7137_v44 = vld [vmem:[#allocation3 + $0x72] sm:$0xff]  ;;  %v7246_v29 = vpack.c.bf16 %v6941_v19, %v6940_v18  ;;  %v7921_v42 = vlaneseq }
 0x79b   : > { %10133 = vmatmul.mubr.msk.bf16.gmra.mrb[40].mxu1 %vm495_vm5, %v12599_v35  ;;  %v7141_v62 = vpack.c.bf16 %v7137_v44, %v7136_v6  ;;  %v7349_v57 = vld [vmem:[#allocation3 + $0x81] sm:$0xff]  ;;  %v7458_v55 = vpack.c.bf16 %v7136_v6, %v7135_v31 }
 0x79c   : > { %10138 = vmatprep.mubr.msk.bf16.mxu1 %vm495_vm5, %v6943_v61  ;;  %v7353_v46 = vpack.c.bf16 %v7349_v57, %v12594_v34  ;;  %v7455_v23 = vld [vmem:[#allocation3 + $0x82] sm:$0xff]  ;;  %v7671_v7 = vpack.c.bf16 %v12544_v26, %v7349_v57  ;;  %vm12695_vm8 = vcmp.lt.s32.totalorder %v7921_v42, 16  ;;  %vm12776_vm9 = vcmp.ge.s32.totalorder %v7921_v42, 16 }
 0x79d   : > { %v7459_v30 = vpack.c.bf16 %v7455_v23, %v7137_v44  ;;  %v7777_v3 = vpack.c.bf16 %v12553_v16, %v7455_v23  ;;  %v12688_v44 = vshrl.u32 %v7921_v42, 7  ;;  %v10954_v23 = vld [vmem:[%s12985_s9 + $0x48] sm:$0xff]   ;;  %vm12781_vm10 = vcmp.lt.s32.totalorder %v7921_v42, 32 }
 0x79e   : > { %vm12786_vm11 = vcmp.ge.s32.totalorder %v7921_v42, 32  ;;  %vm12791_vm12 = vcmp.lt.s32.totalorder %v7921_v42, 48  ;;  %vm7947_vm13 = vmand %vm12776_vm9, %vm12781_vm10  ;;  %vm12804_vm15 = vcmp.ge.s32.totalorder %v7921_v42, 48  ;;  %vm12809_vm0 = vcmp.lt.s32.totalorder %v7921_v42, 64 }
 0x79f   : > { %vm12991_vm14 = vmand %vm12786_vm11, %vm12791_vm12  ;;  %vm12814_vm1 = vcmp.ge.s32.totalorder %v7921_v42, 64  ;;  %vm12819_vm2 = vcmp.lt.s32.totalorder %v7921_v42, 80  ;;  %vm12829_vm3 = vcmp.ge.s32.totalorder %v7921_v42, 80  ;;  %vm12834_vm4 = vcmp.lt.s32.totalorder %v7921_v42, 96 }
 0x7a0   : > { %vm12993_vm6 = vmand %vm12814_vm1, %vm12819_vm2 }
 0x7a1   : > { %vm13030_vm9 = vmand %vm12786_vm11, %vm12791_vm12  ;;  %vm11043_vm12 = vmmov 0  }
 0x7a2   : > { %vm13033_vm11 = vmand %vm12829_vm3, %vm12834_vm4 }
 0x7a3   : > { %10139 = vmatmul.mubr.msk.bf16.vlgmr.msra.gmra.mrb[36].mxu1 %vm495_vm5, %v12605_v0 }
 0x7a4   : > { %10147 = vmatpush3.bf16.msra.mxu1 %v10945_v41  ;;  %10142 = vmatprep.mubr.msk.bf16.mxu1 %vm495_vm5, %v12610_v25 }
 0x7a5   : > { %10156 = vmatprep.subr.bf16.mxu1 %v10946_v40 }
 0x7ab   : > { %10143 = vmatmul.mubr.msk.bf16.gmra.mrb[40].mxu1 %vm495_vm5, %v6946_v39 }
 0x7ac   : > { %10148 = vmatprep.mubr.msk.bf16.mxu1 %vm495_vm5, %v7138_v58 }
 0x7b3   : > { %10149 = vmatmul.mubr.msk.bf16.vlgmr.msra.gmra.mrb[36].mxu1 %vm495_vm5, %v12619_v47 }
 0x7b4   : > { %10157 = vmatpush3.bf16.msra.mxu1 %v10946_v40  ;;  %10152 = vmatprep.mubr.msk.bf16.mxu1 %vm495_vm5, %v7140_v45 }
 0x7b5   : > { %10166 = vmatprep.subr.bf16.mxu1 %v10947_v33 }
 0x7bb   : > { %10153 = vmatmul.mubr.msk.bf16.gmra.mrb[40].mxu1 %vm495_vm5, %v7141_v62 }
 0x7bc   : > { %10158 = vmatprep.mubr.msk.bf16.mxu1 %vm495_vm5, %v7244_v50 }
 0x7c3   : > { %10159 = vmatmul.mubr.msk.bf16.vlgmr.msra.gmra.mrb[36].mxu1 %vm495_vm5, %v7245_v13 }
 0x7c4   : > { %10167 = vmatpush3.bf16.msra.mxu1 %v10947_v33  ;;  %10162 = vmatprep.mubr.msk.bf16.mxu1 %vm495_vm5, %v7246_v29 }
 0x7c5   : > { %10176 = vmatprep.subr.bf16.mxu1 %v10948_v20 }
 0x7cb   : > { %10163 = vmatmul.mubr.msk.bf16.gmra.mrb[40].mxu1 %vm495_vm5, %v7247_v10 }
 0x7cc   : > { %10168 = vmatprep.mubr.msk.bf16.mxu1 %vm495_vm5, %v7350_v8 }
 0x7d3   : > { %10169 = vmatmul.mubr.msk.bf16.vlgmr.msra.gmra.mrb[36].mxu1 %vm495_vm5, %v7351_v28 }
 0x7d4   : > { %10177 = vmatpush3.bf16.msra.mxu1 %v10948_v20  ;;  %10172 = vmatprep.mubr.msk.bf16.mxu1 %vm495_vm5, %v7352_v49  ;;  %v10953_v49 = vld [vmem:[%s12985_s9] sm:$0xff]  }
 0x7d5   : > { %10186 = vmatprep.subr.bf16.mxu1 %v10949_v21 }
 0x7db   : > { %10173 = vmatmul.mubr.msk.bf16.gmra.mrb[40].mxu1 %vm495_vm5, %v7353_v46 }
 0x7dc   : > { %10178 = vmatprep.mubr.msk.bf16.mxu1 %vm495_vm5, %v7456_v36 }
 0x7e3   : > { %10179 = vmatmul.mubr.msk.bf16.vlgmr.msra.gmra.mrb[36].mxu1 %vm495_vm5, %v7457_v1 }
 0x7e4   : > { %10187 = vmatpush3.bf16.msra.mxu1 %v10949_v21  ;;  %10182 = vmatprep.mubr.msk.bf16.mxu1 %vm495_vm5, %v7458_v55  ;;  %v10952_v21 = vld [vmem:[%s12985_s9 + $0x40] sm:$0xff]  }
 0x7e5   : > { %10196 = vmatprep.subr.bf16.mxu1 %v10950_v15  ;;  %9399 = vmatprep.subr.bf16.mxu0 %v10952_v21 }
 0x7e6   : > { %9400 = vmatpush3.bf16.msra.mxu0 %v10953_v49 }
 0x7e7   : > { %9401 = vmatprep.subr.bf16.mxu0 %v10954_v23 }
 0x7eb   : > { %10183 = vmatmul.mubr.msk.bf16.gmra.mrb[40].mxu1 %vm495_vm5, %v7459_v30 }
 0x7ec   : > { %10188 = vmatprep.mubr.msk.bf16.mxu1 %vm495_vm5, %v12605_v0 }
 0x7f3   : > { %10189 = vmatmul.mubr.msk.bf16.vlgmr.msra.gmra.mrb[36].mxu1 %vm495_vm5, %v12610_v25 }
 0x7f4   : > { %10197 = vmatpush3.bf16.msra.mxu1 %v10950_v15  ;;  %10192 = vmatprep.mubr.msk.bf16.mxu1 %vm495_vm5, %v6946_v39  ;;  %v11035_v39 = vmov 1966171168  }
 0x7f5   : > { %10206 = vmatprep.subr.bf16.mxu1 %v10951_v38  ;;  %v7936_v58 = vunpack.c.l.s4 %v11035_v39  ;;  %v10966_v39 = vld [vmem:[%s12985_s9 + $0x78] sm:$0xff]  }
 0x7f7   : > { %v7937_v6 = vunpack.c.0.s8 %v7936_v58 }
 0x7fb   : > { %10193 = vmatmul.mubr.msk.bf16.gmra.mrb[40].mxu1 %vm495_vm5, %v7565_v63  ;;  %v10956_v63 = vld [vmem:[%s12985_s9 + $0x50] sm:$0xff]  }
 0x7fc   : > { %10198 = vmatprep.mubr.msk.bf16.mxu1 %vm495_vm5, %v12582_v52 }
 0x803   : > { %10199 = vmatmul.mubr.msk.bf16.vlgmr.msra.gmra.mrb[36].mxu1 %vm495_vm5, %v12592_v56 }
 0x804   : > { %10207 = vmatpush3.bf16.msra.mxu1 %v10951_v38  ;;  %10202 = vmatprep.mubr.msk.bf16.mxu1 %vm495_vm5, %v12599_v35  ;;  %v10955_v38 = vld [vmem:[%s12985_s9 + $0x8] sm:$0xff]  }
 0x805   : > { %10216 = vmatprep.subr.bf16.mxu1 %v11034_v2  ;;  %9402 = vmatpush3.bf16.msra.mxu0 %v10955_v38 }
 0x806   : > { %9403 = vmatprep.subr.bf16.mxu0 %v10956_v63  ;;  %v8236_v63 = vsub.s32 0, %v12688_v44 }
 0x80b   : > { %10203 = vmatmul.mubr.msk.bf16.gmra.mrb[40].mxu1 %vm495_vm5, %v7671_v7 }
 0x80c   : > { %10208 = vmatprep.mubr.msk.bf16.mxu1 %vm495_vm5, %v12619_v47 }
 0x813   : > { %10209 = vmatmul.mubr.msk.bf16.vlgmr.msra.gmra.mrb[36].mxu1 %vm495_vm5, %v7140_v45 }
 0x814   : > { %10212 = vmatprep.mubr.msk.bf16.mxu1 %vm495_vm5, %v7141_v62  ;;  %v12692_v62 = vsub.s32 %v7937_v6, %v12688_v44 }
 0x81b   : > { %10213 = vmatmul.mubr.msk.bf16.gmra.mrb[40].mxu1 %vm495_vm5, %v7777_v3  ;;  %v10957_v3 = vld [vmem:[%s12985_s9 + $0x10] sm:$0xff]  }
 0x81c   : > { %9404 = vmatpush3.bf16.msra.mxu0 %v10957_v3  ;;  %10220 = vmatprep.mubr.msk.bf16.mxu1 %vm11043_vm12, %v11034_v2 }
 0x8e6   : > { %v10210_v17 = vpop.f32.mrb[36].mxu1 }
 0x8e7   : > { %v7881_v43 = vadd.f32 %v10210_v17, %v8965_v9  ;;  %v7833_v26 = vpop.f32.mrb[37].mxu1 }
 0x8e8   : > { %v7879_v4 = vadd.f32 %v8965_v9, %v7833_v26  ;;  %v10211_v24 = vpop.f32.mrb[38].mxu1 }
 0x8e9   : > { %v7882_v32 = vadd.f32 %v10211_v24, %v8965_v9  ;;  %v7836_v54 = vpop.f32.mrb[39].mxu1  ;;  %v7889_v41 = vmax.f32 %v7881_v43, 0.0  ;;  %v10958_v24 = vld [vmem:[%s12985_s9 + $0x58] sm:$0xff]  }
 0x8ea   : > { %v7880_v52 = vadd.f32 %v8965_v9, %v7836_v54  ;;  %v7887_v48 = vmax.f32 %v7879_v4, 0.0  ;;  %9405 = vmatprep.subr.bf16.mxu0 %v10958_v24 }
 0x8eb   : > { %v7890_v37 = vmax.f32 %v7882_v32, 0.0  ;;  %v10959_v32 = vld [vmem:[%s12985_s9 + $0x18] sm:$0xff]  }
 0x8ec   : > { %v7888_v56 = vmax.f32 %v7880_v52, 0.0  ;;  %9406 = vmatpush3.bf16.msra.mxu0 %v10959_v32 }
 0x8ed   : > { %v7896_v22 = vmax.f32 %v7889_v41, %v7890_v37 }
 0x8ee   : > { %v7895_v16 = vmax.f32 %v7887_v48, %v7888_v56  ;;  %v10214_v12 = vpop.f32.mrb[40].mxu1 }
 0x8ef   : > { %7900 = vst.msk [vmem:[#allocation4 + $0x10] sm:$0xff] %vm495_vm5, %v7896_v22  ;;  %v7885_v34 = vadd.f32 %v10214_v12, %v8965_v9  ;;  %v7849_v35 = vpop.f32.mrb[41].mxu1  ;;  %v10961_v12 = vld [vmem:[%s12985_s9 + $0x20] sm:$0xff]  }
 0x8f0   : > { %7899 = vst.msk [vmem:[#allocation4] sm:$0xff] %vm495_vm5, %v7895_v16  ;;  %v7883_v61 = vadd.f32 %v8965_v9, %v7849_v35  ;;  %v10215_v5 = vpop.f32.mrb[42].mxu1  ;;  %v10960_v16 = vld [vmem:[%s12985_s9 + $0x60] sm:$0xff]   ;;  %v10962_v35 = vld [vmem:[%s12985_s9 + $0x68] sm:$0xff]  }
 0x8f1   : > { %v7886_v18 = vadd.f32 %v10215_v5, %v8965_v9  ;;  %v7852_v14 = vpop.f32.mrb[43].mxu1  ;;  %v7893_v27 = vmax.f32 %v7885_v34, 0.0  ;;  %9407 = vmatprep.subr.bf16.mxu0 %v10960_v16 }
 0x8f2   : > { %v7884_v0 = vadd.f32 %v8965_v9, %v7852_v14  ;;  %v7891_v25 = vmax.f32 %v7883_v61, 0.0  ;;  %9408 = vmatpush3.bf16.msra.mxu0 %v10961_v12  ;;  %v10963_v14 = vld [vmem:[%s12985_s9 + $0x28] sm:$0xff]  }
 0x8f3   : > { %v7894_v40 = vmax.f32 %v7886_v18, 0.0  ;;  %9409 = vmatprep.subr.bf16.mxu0 %v10962_v35 }
 0x8f4   : > { %v7892_v19 = vmax.f32 %v7884_v0, 0.0 }
 0x8f5   : > { %v7898_v53 = vmax.f32 %v7893_v27, %v7894_v40  ;;  %v10964_v27 = vld [vmem:[%s12985_s9 + $0x70] sm:$0xff]  }
 0x8f6   : > { %v7897_v59 = vmax.f32 %v7891_v25, %v7892_v19  ;;  %v7904_v31 = vld [vmem:[#allocation4 + $0x10] ss:$2 sm:$0xf]  ;;  %v7908_v60 = vld [vmem:[#allocation4 + $0x11] ss:$2 sm:$0xf]  ;;  %9410 = vmatpush3.bf16.msra.mxu0 %v10963_v14 }
 0x8f7   : > { %7902 = vst.msk [vmem:[#allocation4 + $0x30] sm:$0xff] %vm495_vm5, %v7898_v53  ;;  %v7912_v47 = vmax.f32 %v7904_v31, %v7908_v60  ;;  %v7903_v11 = vld [vmem:[#allocation4] ss:$2 sm:$0xf]  ;;  %9411 = vmatprep.subr.bf16.mxu0 %v10964_v27  ;;  %v10968_v31 = vld [vmem:[%s12987_s11] sm:$0xff]  }
 0x8f8   : > { %v7907_v33 = vld [vmem:[#allocation4 + $0x1] ss:$2 sm:$0xf]  ;;  %7901 = vst.msk [vmem:[#allocation4 + $0x20] sm:$0xff] %vm495_vm5, %v7897_v59  ;;  %v10967_v59 = vld [vmem:[%s12985_s9 + $0x38] sm:$0xff]   ;;  %10217 = vmatpush3.bf16.msra.mxu1 %v10968_v31  ;;  %vm12994_vm5 = vmand %vm12804_vm15, %vm12809_vm0 }
 0x8f9   : > { %v7911_v45 = vmax.f32 %v7903_v11, %v7907_v33  ;;  %7917 = vst.msk [vmem:[#allocation5 + $0x4] sm:$0xf] %vm7915_vm7, %v7912_v47  ;;  %v10965_v19 = vld [vmem:[%s12985_s9 + $0x30] sm:$0xff]   ;;  %10218 = vmatprep.subr.bf16.mxu1 %v11034_v2  ;;  %v8421_v2 = vld [vmem:[%s12988_s12] sm:$0x1] }
 0x8fa   : > { %9412 = vmatpush3.bf16.msra.mxu0 %v10965_v19 }
 0x8fb   : > { %7916 = vst.msk [vmem:[#allocation5] sm:$0xf] %vm7915_vm7, %v7911_v45  ;;  %9413 = vmatprep.subr.bf16.mxu0 %v10966_v39 }
 0x8fe   : > { %v7906_v13 = vld [vmem:[#allocation4 + $0x30] ss:$2 sm:$0xf]  ;;  %v7910_v20 = vld [vmem:[#allocation4 + $0x31] ss:$2 sm:$0xf]  ;;  %9414 = vmatpush3.bf16.msra.mxu0 %v10967_v59 }
 0x8ff   : > { %v7914_v29 = vmax.f32 %v7906_v13, %v7910_v20  ;;  %v7905_v51 = vld [vmem:[#allocation4 + $0x20] ss:$2 sm:$0xf]  ;;  %v7909_v10 = vld [vmem:[#allocation4 + $0x21] ss:$2 sm:$0xf] }
 0x900   : > { %v8969_v8 = vld.sshfl [vmem:[#allocation5 + $0x4] sm:$0x1 pattern:$0x75316420]  ;;  %v7913_v28 = vmax.f32 %v7905_v51, %v7909_v10 }
 0x901   : > { %v8011_v57 = vrot.slane %v8969_v8, %v12692_v62  ;;  %7919 = vst.msk [vmem:[#allocation5 + $0xc] sm:$0xf] %vm7915_vm7, %v7914_v29  ;;  %v8970_v15 = vld.sshfl [vmem:[#allocation5 + $0x5] sm:$0x1 pattern:$0x75316420] }
 0x902   : > { %v8967_v46 = vld.sshfl [vmem:[#allocation5 + $0x2] sm:$0x1 pattern:$0x75316420]  ;;  %v7920_v36 = vld [vmem:[#allocation5] sm:$0x1]  ;;  %v8034_v55 = vrot.slane %v8970_v15, %v12692_v62 }
 0x903   : > { %v7964_v1 = vrot.slane %v8967_v46, %v12692_v62  ;;  %7918 = vst.msk [vmem:[#allocation5 + $0x8] sm:$0xf] %vm7915_vm7, %v7913_v28  ;;  %8012 = vrot.lane.b32.xlu0 %v8011_v57, %s11036_s21  ;;  %v8966_v30 = vld.sshfl [vmem:[#allocation5 + $0x1] sm:$0x1 pattern:$0x75316420]  ;;  %vm12992_vm7 = vmand %vm12829_vm3, %vm12834_vm4 }
 0x904   : > { %7925 = vst.msk [vmem:[#allocation6] sm:$0x1] %vm12695_vm8, %v7920_v36  ;;  %v7941_v9 = vrot.slane %v8966_v30, %v12692_v62  ;;  %v8968_v43 = vld.sshfl [vmem:[#allocation5 + $0x3] sm:$0x1 pattern:$0x75316420] }
 0x905   : > { %7965 = vrot.lane.b32.xlu1 %v7964_v1, %s12990_s22  ;;  %v7987_v54 = vrot.slane %v8968_v43, %v12692_v62  ;;  %v8971_v22 = vld.sshfl [vmem:[#allocation5 + $0x6] sm:$0x1 pattern:$0x75316420]  ;;  %s431_s22 = sand.u32 1, %s11024_s26  }
 0x906   : > { %v8057_v5 = vrot.slane %v8971_v22, %v12692_v62  ;;  %v8972_v18 = vld.sshfl [vmem:[#allocation5 + $0x7] sm:$0x1 pattern:$0x75316420]  ;;  %s432_s20 = scalar_lea.vmem [#allocation7], %s431_s22  ;;  %s8480_s1 = scalar_lea.sflag [#allocation8], %s431_s22 }
 0x907   : > { %8035 = vrot.lane.b32.xlu0 %v8034_v55, %s11038_s0  ;;  %v8080_v25 = vrot.slane %v8972_v18, %v12692_v62 }
 0x908   : > { %v8976_v7 = vld.sshfl [vmem:[#allocation5 + $0xc] sm:$0x1 pattern:$0x75316420] }
 0x909   : > { %v8167_v17 = vrot.slane %v8976_v7, %v12692_v62  ;;  %v8977_v4 = vld.sshfl [vmem:[#allocation5 + $0xd] sm:$0x1 pattern:$0x75316420]  ;;  %v8240_v7 = vsub.s32 1, %v12688_v44 }
 0x90a   : > { %v8089_v26 = vld [vmem:[#allocation5 + $0x8] sm:$0x1]  ;;  %v8187_v52 = vrot.slane %v8977_v4, %v12692_v62  ;;  %v8978_v41 = vld.sshfl [vmem:[#allocation5 + $0xe] sm:$0x1 pattern:$0x75316420] }
 0x90b   : > { %8090 = vst.msk [vmem:[#allocation6 + $0x1] sm:$0x1] %vm12695_vm8, %v8089_v26  ;;  %7942 = vrot.lane.b32.xlu0 %v7941_v9, %s11039_s23  ;;  %8168 = vrot.lane.b32.xlu1 %v8167_v17, %s11036_s21  ;;  %v8973_v37 = vld.sshfl [vmem:[#allocation5 + $0x9] sm:$0x1 pattern:$0x75316420]  ;;  %v8207_v48 = vrot.slane %v8978_v41, %v12692_v62 }
 0x90c   : > { %v8106_v56 = vrot.slane %v8973_v37, %v12692_v62  ;;  %v8974_v34 = vld.sshfl [vmem:[#allocation5 + $0xa] sm:$0x1 pattern:$0x75316420]  ;;  %s11042_s21 = smov 112   ;;  %vm12871_vm8 = vcmp.ge.s32.totalorder %v7921_v42, 96 }
 0x90d   : > { %v8126_v61 = vrot.slane %v8974_v34, %v12692_v62  ;;  %v8975_v0 = vld.sshfl [vmem:[#allocation5 + $0xb] sm:$0x1 pattern:$0x75316420]  ;;  %v10969_v4 = vld [vmem:[%s12987_s11 + $0x8] sm:$0xff]  }
 0x90e   : > { %v8146_v40 = vrot.slane %v8975_v0, %v12692_v62  ;;  %v8979_v53 = vld.sshfl [vmem:[#allocation5 + $0xf] sm:$0x1 pattern:$0x75316420]  ;;  %10219 = vmatpush3.bf16.msra.mxu1 %v10969_v4  ;;  %v8278_v44 = vld [vmem:[%s12986_s10] sm:$0x1] }
 0x90f   : > { %7988 = vrot.lane.b32.xlu0 %v7987_v54, %s11040_s15  ;;  %8188 = vrot.lane.b32.xlu1 %v8187_v52, %s11038_s0  ;;  %s11041_s0 = smov 96   ;;  %v8227_v58 = vrot.slane %v8979_v53, %v12692_v62 }
 0x913   : > { %8208 = vrot.lane.b32.xlu1 %v8207_v48, %s11041_s0  ;;  %8107 = vrot.lane.b32.xlu0 %v8106_v56, %s11039_s23 }
 0x917   : > { %8127 = vrot.lane.b32.xlu1 %v8126_v61, %s13003_s24  ;;  %8058 = vrot.lane.b32.xlu0 %v8057_v5, %s11041_s0  ;;  %s8492_s24 = sshll.u32 %s432_s20, 4  ;;  %s12936_s24 = int_to_ptr.vmem [resolvable:$true] %s8492_s24 }
 0x918   : > { %s10970_s29 = scalar_lea.vmem %s12936_s24, 16 }
 0x919   : > { %p10971_p11 = scmp.ne.s32.totalorder %s12936_s24, %s10970_s29 }
 0x91b   : > { %8147 = vrot.lane.b32.xlu1 %v8146_v40, %s11040_s15  ;;  %8081 = vrot.lane.b32.xlu0 %v8080_v25, %s11042_s21  ;;  %p10972_p12 = pnand %p10971_p11, %p11153_p5 }
 0x91d   : > { %p10973_p13 = pneg %p10972_p12 }
 0x91f   : > { %8228 = vrot.lane.b32.xlu1 %v8227_v58, %s11042_s21  ;;  %s11044_s21 = smov [#allocation7]  }
 0x920   : > { %s10974_s0 = sshll.u32 %s11044_s21, 4  ;;  %s10975_s0 = int_to_ptr.vmem [resolvable:$false] %s10974_s0 }
 0x921   : > { %s10976_s15 = scalar_lea.vmem %s10975_s0, 32  ;;  %p10977_p0 = scmp.lt.s32.totalorder %s12936_s24, %s10975_s0 }
 0x922   : > { %p10978_p1 = scmp.lt.s32.totalorder %s10976_s15, %s10970_s29 }
 0x924   : > { %p10979_p2 = por %p10978_p1, %p10977_p0 }
 0x926   : > { %p10980_p3 = pnand %p10979_p2, %p10973_p13 }
 0x975   : > { %v8013_v60 = vpop.permute.xlu0 %8012 }
 0x977   : > { %v7966_v33 = vpop.permute.xlu1 %7965 }
 0x979   : > { %v8036_v45 = vpop.permute.xlu0 %8035 }
 0x97d   : > { %v7943_v20 = vpop.permute.xlu0 %7942  ;;  %v8169_v29 = vpop.permute.xlu1 %8168 }
 0x97e   : > { %7948 = vst.msk [vmem:[#allocation6] sm:$0x1] %vm7947_vm13, %v7943_v20 }
 0x97f   : > { %7971 = vst.msk [vmem:[#allocation6] sm:$0x1] %vm12991_vm14, %v7966_v33  ;;  %vm12876_vm14 = vcmp.lt.s32.totalorder %v7921_v42, 112 }
 0x981   : > { %v7989_v21 = vpop.permute.xlu0 %7988  ;;  %v8189_v49 = vpop.permute.xlu1 %8188 }
 0x982   : > { %7994 = vst.msk [vmem:[#allocation6] sm:$0x1] %vm12994_vm5, %v7989_v21  ;;  %vm8085_vm5 = vcmp.lt.s32.totalorder %v7921_v42, 128 }
 0x983   : > { %8018 = vst.msk [vmem:[#allocation6] sm:$0x1] %vm12993_vm6, %v8013_v60  ;;  %vm12890_vm6 = vcmp.ge.s32.totalorder %v7921_v42, 112 }
 0x984   : > { %8041 = vst.msk [vmem:[#allocation6] sm:$0x1] %vm12992_vm7, %v8036_v45  ;;  %vm8063_vm7 = vmand %vm12871_vm8, %vm12876_vm14 }
 0x985   : > { %v8209_v36 = vpop.permute.xlu1 %8208  ;;  %v8108_v1 = vpop.permute.xlu0 %8107  ;;  %vm8086_vm10 = vmand %vm12890_vm6, %vm8085_vm5 }
 0x986   : > { %8110 = vst.msk [vmem:[#allocation6 + $0x1] sm:$0x1] %vm7947_vm13, %v8108_v1  ;;  %vm13031_vm13 = vmand %vm12804_vm15, %vm12809_vm0  ;;  %vm8434_vm15 = vcmask 261120  }
 0x987   : > { %vm13032_vm14 = vmand %vm12814_vm1, %vm12819_vm2 }
 0x989   : > { %v8128_v55 = vpop.permute.xlu1 %8127  ;;  %v8059_v23 = vpop.permute.xlu0 %8058 }
 0x98a   : > { %8130 = vst.msk [vmem:[#allocation6 + $0x1] sm:$0x1] %vm13030_vm9, %v8128_v55 }
 0x98b   : > { %8064 = vst.msk [vmem:[#allocation6] sm:$0x1] %vm8063_vm7, %v8059_v23 }
 0x98d   : > { %v8148_v30 = vpop.permute.xlu1 %8147  ;;  %v8082_v38 = vpop.permute.xlu0 %8081 }
 0x98e   : > { %8150 = vst.msk [vmem:[#allocation6 + $0x1] sm:$0x1] %vm13031_vm13, %v8148_v30 }
 0x98f   : > { %8087 = vst.msk [vmem:[#allocation6] sm:$0x1] %vm8086_vm10, %v8082_v38 }
 0x990   : > { %8171 = vst.msk [vmem:[#allocation6 + $0x1] sm:$0x1] %vm13032_vm14, %v8169_v29 }
 0x991   : > { %8191 = vst.msk [vmem:[#allocation6 + $0x1] sm:$0x1] %vm13033_vm11, %v8189_v49  ;;  %v8229_v42 = vpop.permute.xlu1 %8228 }
 0x992   : > { %8211 = vst.msk [vmem:[#allocation6 + $0x1] sm:$0x1] %vm8063_vm7, %v8209_v36 }
 0x993   : > { %8231 = vst.msk [vmem:[#allocation6 + $0x1] sm:$0x1] %vm8086_vm10, %v8229_v42 }
 0x99a   : > { %v8232_v3 = vld [vmem:[#allocation6] sm:$0x3] }
 0x99b   : > { %v8237_v9 = vrot.slane %v8232_v3, %v8236_v63  ;;  %v8241_v17 = vrot.slane %v8232_v3, %v8240_v7 }
 0x99d   : > { %v8244_v43 = vpack.c.bf16 %v8237_v9, %v8237_v9  ;;  %v8245_v26 = vpack.c.bf16 %v8241_v17, %v8241_v17 }
 0x99f   : > { %8407 = vmatprep.mubr.bf16.mxu0 %v8245_v26 }
 0x9a0   : > { %8408 = vmatmul.mubr.bf16.vlgmr.msra.gmra.mrb[40].mxu0 %v8244_v43 }
 0xa73   : > { %v9415_v24 = vpop.f32.mrb[40].mxu0 }
 0xa74   : > { %v9416_v32 = vpop.f32.mrb[41].mxu0 }
 0xa75   : > { %v9417_v54 = vadd.f32 %v9416_v32, %v9415_v24  ;;  %v9418_v52 = vpop.f32.mrb[42].mxu0 }
 0xa76   : > { %v9419_v41 = vpop.f32.mrb[43].mxu0 }
 0xa77   : > { %v8410_v37 = vadd.f32 %v9417_v54, %v8278_v44 }
 0xa79   : > { %v8415_v48 = vmax.f32 %v8410_v37, 0.0 }
 0xa7b   : > { %v8416_v56 = vpack.c.bf16 %v8415_v48, %v8415_v48 }
 0xa7d   : > { %10221 = vmatmul.mubr.msk.bf16.vlgmr.msra.gmra.mrb[44].mxu1 %vm8434_vm15, %v8416_v56 }
 0xb50   : > { %v8472_v22 = vpop.f32.mrb[44].mxu1 }
 0xb51   : > { %v8473_v16 = vadd.f32 %v8472_v22, %v8421_v2  ;;  %v10222_v12 = vpop.f32.mrb[45].mxu1 }
 0xb52   : > { %v8475_v34 = vpop.f32.mrb[46].mxu1 }
 0xb53   : > { %8478 = vst [vmem:[%s432_s20] sm:$0x1] %v8473_v16  ;;  %v10223_v35 = vpop.f32.mrb[47].mxu1 }
 0xb54   : > { %10983 = shalt.err (!%p10980_p3)
}
 0xb55   : > { %s10984_s22 = scalar_lea.hbm %s12934_s30, 16  ;;  %s10988_s23 = scalar_lea.hbm %s12989_s13, 32 }
 0xb56   : > { %p10985_p4 = scmp.ne.s32.totalorder %s12934_s30, %s10984_s22  ;;  %p10989_p9 = scmp.lt.u32.totalorder %s12934_s30, %s12989_s13 }
 0xb57   : > { %p10990_p10 = scmp.lt.u32.totalorder %s10988_s23, %s10984_s22  ;;  %p10992_p12 = scmp.lt.u32.totalorder %s10984_s22, %s12934_s30 }
 0xb58   : > { %p10986_p7 = pnand %p10985_p4, %p11153_p5 }
 0xb59   : > { %p10991_p11 = por %p10990_p10, %p10989_p9 }
 0xb5a   : > { %p10987_p8 = pneg %p10986_p7 }
 0xb5b   : > { %p10993_p13 = por %p10992_p12, %p10991_p11 }
 0xb5d   : > { %p10994_p0 = pnand %p10993_p13, %p10987_p8 }
 0xb5f   : > { %10997 = shalt.err (!%p10994_p0)
}
 0xb60   : > { %10894 = dma.vmem_to_hbm [thread:$0]  (%p11153_p5), %s12936_s24, 16, %s12934_s30, %s8480_s1  }
 0xb61 PF: > { %p10900_p1 = scmp.ge.s32.totalorder %s11032_s28, 2  ;;  %s8504_s29 = sand.u32 1, %s11020_s25  }
 0xb62   : > { %s8505_s15 = scalar_lea.sflag [#allocation8], %s8504_s29 }
 0xb63   : > { %p10897_p2 = pnand %p10900_p1, %p11157_p6 }
 0xb65   : > { %11015 = dma.done.wait (!%p10897_p2), %s8505_s15, 16  }
 0xb66   : > { %11017 = vsyncadd (!%p10897_p2), %s8505_s15, 4294967280  ;;  %p23_p3 = scmp.ge.s32.totalorder %s11140_s14, 4   ;;  %s13034_s25 = smov %s11024_s26 }
 0xb67   : > { %s13035_s26 = smov %s11028_s27  ;;  %s13036_s27 = smov %s11151_s17 }
 0xb68   : > { %s13037_s28 = smov %s11140_s14  ;;  %25 = sbr.rel (!%p23_p3) target bundleno = 6 (0x6), region = 161 }
 0xb6f   :  { %8509 = vsyncpa [#allocation8], 1 }
 0xb70   :  { %8511 = vsyncpa [#allocation8 + $0x1], 1 }

</bundles_post_ra>
